<compile_context>
chip_gen: v7x
topology: tpu7x:2x2x1
jax: 0.10.0
libtpu: 0.0.40
codegen_flags: <defaults>
</compile_context>

<pallas_src>
import functools

import jax
import jax.numpy as jnp
from jax import lax
from jax.experimental import pallas as pl
from jax.experimental.pallas import tpu as pltpu

LN_EPS = 1e-5
MXU_DTYPE = jnp.bfloat16   # MXU input dtype (accumulation is always f32)
HEAD_PAD = 128             # pad classifier output to a full 128-lane store


# ----------------------------------------------------------------- helpers ----
def _gelu_tanh(x):
    c = 0.7978845608028654  # sqrt(2/pi)
    return 0.5 * x * (1.0 + jnp.tanh(c * (x + 0.044715 * x * x * x)))


def _layernorm(x, g, b):
    mu = jnp.mean(x, axis=-1, keepdims=True)
    xc = x - mu
    var = jnp.mean(xc * xc, axis=-1, keepdims=True)       # shifted -> no cancellation
    return xc * lax.rsqrt(var + LN_EPS) * g + b


def _mm(a, w):
    """MXU matmul: bf16 inputs, f32 accumulation."""
    return jnp.dot(a.astype(MXU_DTYPE), w.astype(MXU_DTYPE),
                   preferred_element_type=jnp.float32)


# ------------------------------------------------------------------ kernel ----
def _vit_kernel(patches_ref, pos_cls_ref, w_patch_ref, b_patch_ref,
                ln1_g_ref, ln1_b_ref, w_qkv_ref, b_qkv_ref, w_out_ref, b_out_ref,
                ln2_g_ref, ln2_b_ref, w_fc1_ref, b_fc1_ref, w_fc2_ref, b_fc2_ref,
                ln_g_ref, ln_b_ref, w_head_ref, b_head_ref, out_ref,
                *, depth, n_heads, head_dim):
    D = w_patch_ref.shape[1]
    scale = 1.0 / (head_dim ** 0.5)

    # Patch embedding (non-overlapping conv == per-patch matmul) + bias + cls/pos add.
    # Token 0's patch row is all zeros; pos_cls row 0 carries (cls + pos0 - b_patch).
    x = (_mm(patches_ref[0], w_patch_ref[...]) + b_patch_ref[...]
         + pos_cls_ref[...])                                           # (S, D) f32

    for l in range(depth):
        # ---- attention sub-layer: LN1 -> QKV -> per-head softmax(QK^T/sqrt(hd)) V ----
        xn = _layernorm(x, ln1_g_ref[l], ln1_b_ref[l])
        qkv = _mm(xn, w_qkv_ref[l]) + b_qkv_ref[l]                     # (S, 3D) lane-dense
        heads = []
        for h in range(n_heads):                                       # static unroll, in-VMEM slices
            q = qkv[:, h * head_dim:(h + 1) * head_dim]
            k = qkv[:, D + h * head_dim:D + (h + 1) * head_dim]
            v = qkv[:, 2 * D + h * head_dim:2 * D + (h + 1) * head_dim]
            s = lax.dot_general(q.astype(MXU_DTYPE), k.astype(MXU_DTYPE),
                                (((1,), (1,)), ((), ())),
                                preferred_element_type=jnp.float32) * scale   # (S, S)
            s = s - jnp.max(s, axis=-1, keepdims=True)
            probs = jnp.exp(s)
            probs = probs * pl.reciprocal(jnp.sum(probs, axis=-1, keepdims=True),
                                          approx=True)
            heads.append(_mm(probs, v))                                # (S, hd)
        attn = jnp.concatenate(heads, axis=-1)                         # (S, D) lane-dense
        x = _mm(attn, w_out_ref[l]) + b_out_ref[l] + x                 # out-proj + residual

        # ---- MLP sub-layer: LN2 -> fc1 -> GELU -> fc2 -> + residual ----
        xn = _layernorm(x, ln2_g_ref[l], ln2_b_ref[l])
        hmid = _gelu_tanh(_mm(xn, w_fc1_ref[l]) + b_fc1_ref[l])
        x = _mm(hmid, w_fc2_ref[l]) + b_fc2_ref[l] + x

    # Final LN on the cls token + (lane-padded) classifier head.
    cls = _layernorm(x[0:1, :], ln_g_ref[...], ln_b_ref[...])          # (1, D)
    out_ref[0] = (_mm(cls, w_head_ref[...]) + b_head_ref[...]).astype(out_ref.dtype)


# ------------------------------------------------------------- forward pass ----
def vit_forward(x_nchw, p, cfg):
    B, C, img, _ = x_nchw.shape
    P, D, H, depth = cfg["patch_size"], cfg["embed_dim"], cfg["n_heads"], cfg["depth"]
    gp = img // P
    Np = gp * gp
    S = Np + 1
    hd = D // H
    hid = cfg["mlp_ratio"] * D
    ppc = P * P * C
    n_cls = p["w_head"].shape[1]
    npad = ((max(n_cls, HEAD_PAD) + 127) // 128) * 128

    # One-off XLA glue at the HBM boundary: extract patches (inner order kh, kw, c) and
    # prepend a zero "patch" for the cls slot so the kernel needs no sublane concat.
    xh = jnp.transpose(x_nchw, (0, 2, 3, 1)).astype(jnp.float32)       # NHWC
    patches = (xh.reshape(B, gp, P, gp, P, C)
                 .transpose(0, 1, 3, 2, 4, 5)
                 .reshape(B, Np, ppc))
    patches = jnp.pad(patches, ((0, 0), (1, 0), (0, 0)))               # (B, S, ppc)

    f32, bf = jnp.float32, MXU_DTYPE
    # Row 0: cls + pos[0] - b_patch (b_patch is re-added in-kernel); rows 1..: pos[1:].
    pos_cls = jnp.concatenate(
        [p["cls"] + p["pos"][0:1] - p["b_patch"][None, :], p["pos"][1:]], axis=0)  # (S, D)

    def stack_w(name):     # (depth, din, dout), bf16 for the MXU / halved DMA+VMEM
        return jnp.stack([blk[name] for blk in p["blocks"]], axis=0).astype(bf)

    def stack_v(name):     # (depth, 1, dim), f32 (added to f32 accumulators)
        return jnp.stack([blk[name][None, :] for blk in p["blocks"]], axis=0).astype(f32)

    w_head = jnp.zeros((D, npad), f32).at[:, :n_cls].set(p["w_head"]).astype(bf)
    b_head = jnp.zeros((1, npad), f32).at[0, :n_cls].set(p["b_head"])

    args = [
        patches,
        pos_cls.astype(f32),
        p["w_patch"].astype(bf), p["b_patch"][None, :].astype(f32),
        stack_v("ln1_g"), stack_v("ln1_b"),
        stack_w("w_qkv"), stack_v("b_qkv"),
        stack_w("w_out"), stack_v("b_out"),
        stack_v("ln2_g"), stack_v("ln2_b"),
        stack_w("w_fc1"), stack_v("b_fc1"),
        stack_w("w_fc2"), stack_v("b_fc2"),
        p["ln_g"][None, :].astype(f32), p["ln_b"][None, :].astype(f32),
        w_head, b_head,
    ]

    def bcast(shape):      # full-array block, same copy for every grid step
        return pl.BlockSpec(shape, lambda b: (0,) * len(shape))

    in_specs = [pl.BlockSpec((1, S, ppc), lambda b: (b, 0, 0))]
    in_specs += [bcast(tuple(a.shape)) for a in args[1:]]

    out = pl.pallas_call(
        functools.partial(_vit_kernel, depth=depth, n_heads=H, head_dim=hd),
        out_shape=jax.ShapeDtypeStruct((B, 1, npad), jnp.float32),
        grid=(B,),
        in_specs=in_specs,
        out_specs=pl.BlockSpec((1, 1, npad), lambda b: (b, 0, 0)),
        compiler_params=pltpu.CompilerParams(dimension_semantics=("parallel",)),
    )(*args)
    return out.reshape(B, npad)[:, :n_cls]


# ----------------------------------------------------------------- params ----
def init_params(key, cfg, in_channels, num_classes):
    P, D, depth, R = cfg["patch_size"], cfg["embed_dim"], cfg["depth"], cfg["mlp_ratio"]
    Np = (cfg["img_size"] // P) ** 2
    ppc = P * P * in_channels
    keys = jax.random.split(key, 8 + depth)

    def nrm(k, shape, scale):
        return jax.random.normal(k, shape, jnp.float32) * scale

    p = dict(
        w_patch=nrm(keys[0], (ppc, D), ppc ** -0.5),
        b_patch=nrm(keys[1], (D,), 0.02),
        cls=nrm(keys[2], (1, D), 0.02),
        pos=nrm(keys[3], (Np + 1, D), 0.02),
        ln_g=1.0 + nrm(keys[4], (D,), 0.05),
        ln_b=nrm(keys[5], (D,), 0.05),
        w_head=nrm(keys[6], (D, num_classes), 0.02),
        b_head=nrm(keys[7], (num_classes,), 0.02),
        blocks=[],
    )
    for i in range(depth):
        ks = jax.random.split(keys[8 + i], 12)
        p["blocks"].append(dict(
            ln1_g=1.0 + nrm(ks[0], (D,), 0.05), ln1_b=nrm(ks[1], (D,), 0.05),
            w_qkv=nrm(ks[2], (D, 3 * D), D ** -0.5), b_qkv=nrm(ks[3], (3 * D,), 0.02),
            w_out=nrm(ks[4], (D, D), D ** -0.5), b_out=nrm(ks[5], (D,), 0.02),
            ln2_g=1.0 + nrm(ks[6], (D,), 0.05), ln2_b=nrm(ks[7], (D,), 0.05),
            w_fc1=nrm(ks[8], (D, R * D), D ** -0.5), b_fc1=nrm(ks[9], (R * D,), 0.02),
            w_fc2=nrm(ks[10], (R * D, D), (R * D) ** -0.5), b_fc2=nrm(ks[11], (D,), 0.02),
        ))
    return p


# -------------------------------------------------------------- reference ----
def reference(x_nchw, p, cfg, mxu_dtype=jnp.float32):
    """Pure-JAX reference.  mxu_dtype=bf16 reproduces the kernel's numerical scheme
    (bf16 MXU inputs, f32 accumulation, f32 elementwise); f32 is full-precision parity."""
    B, C, img, _ = x_nchw.shape
    P, D, H = cfg["patch_size"], cfg["embed_dim"], cfg["n_heads"]
    gp = img // P
    Np = gp * gp
    S = Np + 1
    hd = D // H

    def mm(a, w):
        return jnp.dot(a.astype(mxu_dtype), w.astype(mxu_dtype),
                       preferred_element_type=jnp.float32)

    xh = jnp.transpose(x_nchw, (0, 2, 3, 1)).astype(jnp.float32)
    w_conv = p["w_patch"].reshape(P, P, C, D)                 # HWIO, same (kh, kw, c) order
    emb = lax.conv_general_dilated(
        xh.astype(mxu_dtype), w_conv.astype(mxu_dtype), (P, P), "VALID",
        dimension_numbers=("NHWC", "HWIO", "NHWC"),
        preferred_element_type=jnp.float32)
    emb = emb.reshape(B, Np, D) + p["b_patch"]
    cls = jnp.broadcast_to(p["cls"], (B, 1, D))
    x = jnp.concatenate([cls, emb], axis=1) + p["pos"]        # (B, S, D)

    def layernorm(v, g, b):
        mu = v.mean(-1, keepdims=True)
        var = ((v - mu) ** 2).mean(-1, keepdims=True)
        return (v - mu) / jnp.sqrt(var + LN_EPS) * g + b

    for blk in p["blocks"]:
        xn = layernorm(x, blk["ln1_g"], blk["ln1_b"])
        qkv = mm(xn, blk["w_qkv"]) + blk["b_qkv"]
        q, k, v = jnp.split(qkv, 3, axis=-1)
        q = q.reshape(B, S, H, hd).transpose(0, 2, 1, 3)
        k = k.reshape(B, S, H, hd).transpose(0, 2, 1, 3)
        v = v.reshape(B, S, H, hd).transpose(0, 2, 1, 3)
        s = jnp.einsum("bhqd,bhkd->bhqk", q.astype(mxu_dtype), k.astype(mxu_dtype),
                       preferred_element_type=jnp.float32) / (hd ** 0.5)
        a = jax.nn.softmax(s, axis=-1)
        o = jnp.einsum("bhqk,bhkd->bhqd", a.astype(mxu_dtype), v.astype(mxu_dtype),
                       preferred_element_type=jnp.float32)
        o = o.transpose(0, 2, 1, 3).reshape(B, S, D)
        x = mm(o, blk["w_out"]) + blk["b_out"] + x
        xn = layernorm(x, blk["ln2_g"], blk["ln2_b"])
        h = _gelu_tanh(mm(xn, blk["w_fc1"]) + blk["b_fc1"])
        x = mm(h, blk["w_fc2"]) + blk["b_fc2"] + x

    xn = layernorm(x[:, 0], p["ln_g"], p["ln_b"])
    return mm(xn, p["w_head"]) + p["b_head"]


if __name__ == "__main__":
    # Small shapes consistent with the module: img 16, patch 8 -> 4 patches (+1 cls),
    # embed_dim 128 (lane-dense), 4 heads, depth 3, mlp_ratio 2, 101 classes, batch 2.
    cfg = dict(img_size=16, patch_size=8, embed_dim=128, depth=3, n_heads=4, mlp_ratio=2)
    B, C, NUM_CLASSES = 2, 3, 101

    key = jax.random.PRNGKey(0)
    kx, kp = jax.random.split(key)
    x = jax.random.normal(kx, (B, C, cfg["img_size"], cfg["img_size"]), jnp.float32)
    params = init_params(kp, cfg, C, NUM_CLASSES)

    fwd = jax.jit(lambda xx, pp: vit_forward(xx, pp, cfg))
    out = jax.block_until_ready(fwd(x, params))
    assert out.shape == (B, NUM_CLASSES), out.shape

    # Scheme-matched check (reference also feeds the MXU bf16 inputs / f32 accumulation).
    ref_scheme = reference(x, params, cfg, mxu_dtype=MXU_DTYPE)
    err_scheme = float(jnp.max(jnp.abs(out - ref_scheme)))
    assert jnp.allclose(out, ref_scheme, atol=5e-3, rtol=5e-3), err_scheme

    # Full-precision parity check (gap is the intentional bf16 MXU-input cast, ~1e-2).
    ref_f32 = reference(x, params, cfg, mxu_dtype=jnp.float32)
    err_parity = float(jnp.max(jnp.abs(out - ref_f32)))
    assert jnp.allclose(out, ref_f32, atol=5e-2, rtol=5e-2), err_parity

    print("KERNEL_OK")
</pallas_src>

<mosaic_0001>
module attributes {stable_mosaic.version = 11 : i64} {
  func.func @_vit_kernel(%arg0: i32, %arg1: memref<1x5x192xf32, #tpu.memory_space<vmem>>, %arg2: memref<5x128xf32, #tpu.memory_space<vmem>>, %arg3: memref<192x128xbf16, #tpu.memory_space<vmem>>, %arg4: memref<1x128xf32, #tpu.memory_space<vmem>>, %arg5: memref<3x1x128xf32, #tpu.memory_space<vmem>>, %arg6: memref<3x1x128xf32, #tpu.memory_space<vmem>>, %arg7: memref<3x128x384xbf16, #tpu.memory_space<vmem>>, %arg8: memref<3x1x384xf32, #tpu.memory_space<vmem>>, %arg9: memref<3x128x128xbf16, #tpu.memory_space<vmem>>, %arg10: memref<3x1x128xf32, #tpu.memory_space<vmem>>, %arg11: memref<3x1x128xf32, #tpu.memory_space<vmem>>, %arg12: memref<3x1x128xf32, #tpu.memory_space<vmem>>, %arg13: memref<3x128x256xbf16, #tpu.memory_space<vmem>>, %arg14: memref<3x1x256xf32, #tpu.memory_space<vmem>>, %arg15: memref<3x256x128xbf16, #tpu.memory_space<vmem>>, %arg16: memref<3x1x128xf32, #tpu.memory_space<vmem>>, %arg17: memref<1x128xf32, #tpu.memory_space<vmem>>, %arg18: memref<1x128xf32, #tpu.memory_space<vmem>>, %arg19: memref<128x128xbf16, #tpu.memory_space<vmem>>, %arg20: memref<1x128xf32, #tpu.memory_space<vmem>>, %arg21: memref<1x1x128xf32, #tpu.memory_space<vmem>>) attributes {dimension_semantics = [#tpu.dimension_semantics<parallel>], iteration_bounds = array<i64: 2>, scalar_prefetch = 0 : i64, scratch_operands = 0 : i64, tpu.core_type = #tpu.core_type<tc>, window_params = [{transform_indices = @transform_0, window_bounds = array<i64: 1, 5, 192>}, {pipeline_mode = #tpu.pipeline_mode<synchronous>, transform_indices = @transform_1, window_bounds = array<i64: 5, 128>}, {pipeline_mode = #tpu.pipeline_mode<synchronous>, transform_indices = @transform_2, window_bounds = array<i64: 192, 128>}, {pipeline_mode = #tpu.pipeline_mode<synchronous>, transform_indices = @transform_3, window_bounds = array<i64: 1, 128>}, {pipeline_mode = #tpu.pipeline_mode<synchronous>, transform_indices = @transform_4, window_bounds = array<i64: 3, 1, 128>}, {pipeline_mode = #tpu.pipeline_mode<synchronous>, transform_indices = @transform_5, window_bounds = array<i64: 3, 1, 128>}, {pipeline_mode = #tpu.pipeline_mode<synchronous>, transform_indices = @transform_6, window_bounds = array<i64: 3, 128, 384>}, {pipeline_mode = #tpu.pipeline_mode<synchronous>, transform_indices = @transform_7, window_bounds = array<i64: 3, 1, 384>}, {pipeline_mode = #tpu.pipeline_mode<synchronous>, transform_indices = @transform_8, window_bounds = array<i64: 3, 128, 128>}, {pipeline_mode = #tpu.pipeline_mode<synchronous>, transform_indices = @transform_9, window_bounds = array<i64: 3, 1, 128>}, {pipeline_mode = #tpu.pipeline_mode<synchronous>, transform_indices = @transform_10, window_bounds = array<i64: 3, 1, 128>}, {pipeline_mode = #tpu.pipeline_mode<synchronous>, transform_indices = @transform_11, window_bounds = array<i64: 3, 1, 128>}, {pipeline_mode = #tpu.pipeline_mode<synchronous>, transform_indices = @transform_12, window_bounds = array<i64: 3, 128, 256>}, {pipeline_mode = #tpu.pipeline_mode<synchronous>, transform_indices = @transform_13, window_bounds = array<i64: 3, 1, 256>}, {pipeline_mode = #tpu.pipeline_mode<synchronous>, transform_indices = @transform_14, window_bounds = array<i64: 3, 256, 128>}, {pipeline_mode = #tpu.pipeline_mode<synchronous>, transform_indices = @transform_15, window_bounds = array<i64: 3, 1, 128>}, {pipeline_mode = #tpu.pipeline_mode<synchronous>, transform_indices = @transform_16, window_bounds = array<i64: 1, 128>}, {pipeline_mode = #tpu.pipeline_mode<synchronous>, transform_indices = @transform_17, window_bounds = array<i64: 1, 128>}, {pipeline_mode = #tpu.pipeline_mode<synchronous>, transform_indices = @transform_18, window_bounds = array<i64: 128, 128>}, {pipeline_mode = #tpu.pipeline_mode<synchronous>, transform_indices = @transform_19, window_bounds = array<i64: 1, 128>}, {transform_indices = @transform_20, window_bounds = array<i64: 1, 1, 128>}]} {
    %c0 = arith.constant 0 : index
    %c0_0 = arith.constant 0 : index
    %c0_1 = arith.constant 0 : index
    %0 = vector.load %arg1[%c0, %c0_0, %c0_1] : memref<1x5x192xf32, #tpu.memory_space<vmem>>, vector<1x5x192xf32>
    %1 = vector.shape_cast %0 : vector<1x5x192xf32> to vector<5x192xf32>
    %c0_2 = arith.constant 0 : index
    %c0_3 = arith.constant 0 : index
    %2 = vector.load %arg3[%c0_2, %c0_3] : memref<192x128xbf16, #tpu.memory_space<vmem>>, vector<192x128xbf16>
    %3 = arith.truncf %1 : vector<5x192xf32> to vector<5x192xbf16>
    %cst = arith.constant dense<0.000000e+00> : vector<5x128xf32>
    %4 = tpu.matmul %3, %2, %cst {dimension_numbers = #tpu.dot_dimension_numbers<[1], [0], [0], [1], [0, 0, 1, 1], [], []>} : vector<5x192xbf16>, vector<192x128xbf16>, vector<5x128xf32> -> vector<5x128xf32>
    %c0_4 = arith.constant 0 : index
    %c0_5 = arith.constant 0 : index
    %5 = vector.load %arg4[%c0_4, %c0_5] : memref<1x128xf32, #tpu.memory_space<vmem>>, vector<1x128xf32>
    %6 = vector.broadcast %5 : vector<1x128xf32> to vector<5x128xf32>
    %7 = arith.addf %4, %6 : vector<5x128xf32>
    %c0_6 = arith.constant 0 : index
    %c0_7 = arith.constant 0 : index
    %8 = vector.load %arg2[%c0_6, %c0_7] : memref<5x128xf32, #tpu.memory_space<vmem>>, vector<5x128xf32>
    %9 = arith.addf %7, %8 : vector<5x128xf32>
    %c0_8 = arith.constant 0 : index
    %c0_9 = arith.constant 0 : index
    %c0_10 = arith.constant 0 : index
    %10 = vector.load %arg5[%c0_8, %c0_9, %c0_10] : memref<3x1x128xf32, #tpu.memory_space<vmem>>, vector<1x1x128xf32>
    %11 = vector.shape_cast %10 : vector<1x1x128xf32> to vector<1x128xf32>
    %c0_11 = arith.constant 0 : index
    %c0_12 = arith.constant 0 : index
    %c0_13 = arith.constant 0 : index
    %12 = vector.load %arg6[%c0_11, %c0_12, %c0_13] : memref<3x1x128xf32, #tpu.memory_space<vmem>>, vector<1x1x128xf32>
    %13 = vector.shape_cast %12 : vector<1x1x128xf32> to vector<1x128xf32>
    %cst_14 = arith.constant dense<0.000000e+00> : vector<5xf32>
    %14 = vector.multi_reduction <add>, %9, %cst_14 [1] : vector<5x128xf32> to vector<5xf32>
    %15 = vector.shape_cast %14 : vector<5xf32> to vector<5x1xf32>
    %cst_15 = arith.constant 1.280000e+02 : f32
    %16 = vector.broadcast %cst_15 : f32 to vector<5x1xf32>
    %17 = arith.divf %15, %16 : vector<5x1xf32>
    %18 = vector.broadcast %17 : vector<5x1xf32> to vector<5x128xf32>
    %19 = arith.subf %9, %18 : vector<5x128xf32>
    %20 = arith.mulf %19, %19 : vector<5x128xf32>
    %cst_16 = arith.constant dense<0.000000e+00> : vector<5xf32>
    %21 = vector.multi_reduction <add>, %20, %cst_16 [1] : vector<5x128xf32> to vector<5xf32>
    %22 = vector.shape_cast %21 : vector<5xf32> to vector<5x1xf32>
    %cst_17 = arith.constant 1.280000e+02 : f32
    %23 = vector.broadcast %cst_17 : f32 to vector<5x1xf32>
    %24 = arith.divf %22, %23 : vector<5x1xf32>
    %cst_18 = arith.constant 9.99999974E-6 : f32
    %25 = vector.broadcast %cst_18 : f32 to vector<5x1xf32>
    %26 = arith.addf %24, %25 : vector<5x1xf32>
    %27 = math.rsqrt %26 : vector<5x1xf32>
    %28 = vector.broadcast %27 : vector<5x1xf32> to vector<5x128xf32>
    %29 = arith.mulf %19, %28 : vector<5x128xf32>
    %30 = vector.broadcast %11 : vector<1x128xf32> to vector<5x128xf32>
    %31 = arith.mulf %29, %30 : vector<5x128xf32>
    %32 = vector.broadcast %13 : vector<1x128xf32> to vector<5x128xf32>
    %33 = arith.addf %31, %32 : vector<5x128xf32>
    %c0_19 = arith.constant 0 : index
    %c0_20 = arith.constant 0 : index
    %c0_21 = arith.constant 0 : index
    %34 = vector.load %arg7[%c0_19, %c0_20, %c0_21] : memref<3x128x384xbf16, #tpu.memory_space<vmem>>, vector<1x128x384xbf16>
    %35 = vector.shape_cast %34 : vector<1x128x384xbf16> to vector<128x384xbf16>
    %36 = arith.truncf %33 : vector<5x128xf32> to vector<5x128xbf16>
    %cst_22 = arith.constant dense<0.000000e+00> : vector<5x384xf32>
    %37 = tpu.matmul %36, %35, %cst_22 {dimension_numbers = #tpu.dot_dimension_numbers<[1], [0], [0], [1], [0, 0, 1, 1], [], []>} : vector<5x128xbf16>, vector<128x384xbf16>, vector<5x384xf32> -> vector<5x384xf32>
    %c0_23 = arith.constant 0 : index
    %c0_24 = arith.constant 0 : index
    %c0_25 = arith.constant 0 : index
    %38 = vector.load %arg8[%c0_23, %c0_24, %c0_25] : memref<3x1x384xf32, #tpu.memory_space<vmem>>, vector<1x1x384xf32>
    %39 = vector.shape_cast %38 : vector<1x1x384xf32> to vector<1x384xf32>
    %40 = vector.broadcast %39 : vector<1x384xf32> to vector<5x384xf32>
    %41 = arith.addf %37, %40 : vector<5x384xf32>
    %42 = vector.extract_strided_slice %41 {offsets = [0, 0], sizes = [5, 32], strides = [1, 1]} : vector<5x384xf32> to vector<5x32xf32>
    %43 = vector.extract_strided_slice %41 {offsets = [0, 128], sizes = [5, 32], strides = [1, 1]} : vector<5x384xf32> to vector<5x32xf32>
    %44 = vector.extract_strided_slice %41 {offsets = [0, 256], sizes = [5, 32], strides = [1, 1]} : vector<5x384xf32> to vector<5x32xf32>
    %45 = arith.truncf %42 : vector<5x32xf32> to vector<5x32xbf16>
    %46 = arith.truncf %43 : vector<5x32xf32> to vector<5x32xbf16>
    %cst_26 = arith.constant dense<0.000000e+00> : vector<5x5xf32>
    %47 = tpu.matmul %45, %46, %cst_26 {dimension_numbers = #tpu.dot_dimension_numbers<[1], [1], [0], [0], [0, 0, 1, 0], [], []>} : vector<5x32xbf16>, vector<5x32xbf16>, vector<5x5xf32> -> vector<5x5xf32>
    %cst_27 = arith.constant 0.176776692 : f32
    %48 = vector.broadcast %cst_27 : f32 to vector<5x5xf32>
    %49 = arith.mulf %47, %48 : vector<5x5xf32>
    %cst_28 = arith.constant dense<0xFF800000> : vector<5xf32>
    %50 = vector.multi_reduction <maximumf>, %49, %cst_28 [1] : vector<5x5xf32> to vector<5xf32>
    %51 = vector.shape_cast %50 : vector<5xf32> to vector<5x1xf32>
    %52 = vector.broadcast %51 : vector<5x1xf32> to vector<5x5xf32>
    %53 = arith.subf %49, %52 : vector<5x5xf32>
    %54 = math.exp %53 : vector<5x5xf32>
    %cst_29 = arith.constant dense<0.000000e+00> : vector<5xf32>
    %55 = vector.multi_reduction <add>, %54, %cst_29 [1] : vector<5x5xf32> to vector<5xf32>
    %56 = vector.shape_cast %55 : vector<5xf32> to vector<5x1xf32>
    %57 = tpu.reciprocal %56 {approx = true} : vector<5x1xf32> -> vector<5x1xf32>
    %58 = vector.broadcast %57 : vector<5x1xf32> to vector<5x5xf32>
    %59 = arith.mulf %54, %58 : vector<5x5xf32>
    %60 = arith.truncf %59 : vector<5x5xf32> to vector<5x5xbf16>
    %61 = arith.truncf %44 : vector<5x32xf32> to vector<5x32xbf16>
    %cst_30 = arith.constant dense<0.000000e+00> : vector<5x32xf32>
    %62 = tpu.matmul %60, %61, %cst_30 {dimension_numbers = #tpu.dot_dimension_numbers<[1], [0], [0], [1], [0, 0, 1, 1], [], []>} : vector<5x5xbf16>, vector<5x32xbf16>, vector<5x32xf32> -> vector<5x32xf32>
    %63 = vector.extract_strided_slice %41 {offsets = [0, 32], sizes = [5, 32], strides = [1, 1]} : vector<5x384xf32> to vector<5x32xf32>
    %64 = vector.extract_strided_slice %41 {offsets = [0, 160], sizes = [5, 32], strides = [1, 1]} : vector<5x384xf32> to vector<5x32xf32>
    %65 = vector.extract_strided_slice %41 {offsets = [0, 288], sizes = [5, 32], strides = [1, 1]} : vector<5x384xf32> to vector<5x32xf32>
    %66 = arith.truncf %63 : vector<5x32xf32> to vector<5x32xbf16>
    %67 = arith.truncf %64 : vector<5x32xf32> to vector<5x32xbf16>
    %cst_31 = arith.constant dense<0.000000e+00> : vector<5x5xf32>
    %68 = tpu.matmul %66, %67, %cst_31 {dimension_numbers = #tpu.dot_dimension_numbers<[1], [1], [0], [0], [0, 0, 1, 0], [], []>} : vector<5x32xbf16>, vector<5x32xbf16>, vector<5x5xf32> -> vector<5x5xf32>
    %cst_32 = arith.constant 0.176776692 : f32
    %69 = vector.broadcast %cst_32 : f32 to vector<5x5xf32>
    %70 = arith.mulf %68, %69 : vector<5x5xf32>
    %cst_33 = arith.constant dense<0xFF800000> : vector<5xf32>
    %71 = vector.multi_reduction <maximumf>, %70, %cst_33 [1] : vector<5x5xf32> to vector<5xf32>
    %72 = vector.shape_cast %71 : vector<5xf32> to vector<5x1xf32>
    %73 = vector.broadcast %72 : vector<5x1xf32> to vector<5x5xf32>
    %74 = arith.subf %70, %73 : vector<5x5xf32>
    %75 = math.exp %74 : vector<5x5xf32>
    %cst_34 = arith.constant dense<0.000000e+00> : vector<5xf32>
    %76 = vector.multi_reduction <add>, %75, %cst_34 [1] : vector<5x5xf32> to vector<5xf32>
    %77 = vector.shape_cast %76 : vector<5xf32> to vector<5x1xf32>
    %78 = tpu.reciprocal %77 {approx = true} : vector<5x1xf32> -> vector<5x1xf32>
    %79 = vector.broadcast %78 : vector<5x1xf32> to vector<5x5xf32>
    %80 = arith.mulf %75, %79 : vector<5x5xf32>
    %81 = arith.truncf %80 : vector<5x5xf32> to vector<5x5xbf16>
    %82 = arith.truncf %65 : vector<5x32xf32> to vector<5x32xbf16>
    %cst_35 = arith.constant dense<0.000000e+00> : vector<5x32xf32>
    %83 = tpu.matmul %81, %82, %cst_35 {dimension_numbers = #tpu.dot_dimension_numbers<[1], [0], [0], [1], [0, 0, 1, 1], [], []>} : vector<5x5xbf16>, vector<5x32xbf16>, vector<5x32xf32> -> vector<5x32xf32>
    %84 = vector.extract_strided_slice %41 {offsets = [0, 64], sizes = [5, 32], strides = [1, 1]} : vector<5x384xf32> to vector<5x32xf32>
    %85 = vector.extract_strided_slice %41 {offsets = [0, 192], sizes = [5, 32], strides = [1, 1]} : vector<5x384xf32> to vector<5x32xf32>
    %86 = vector.extract_strided_slice %41 {offsets = [0, 320], sizes = [5, 32], strides = [1, 1]} : vector<5x384xf32> to vector<5x32xf32>
    %87 = arith.truncf %84 : vector<5x32xf32> to vector<5x32xbf16>
    %88 = arith.truncf %85 : vector<5x32xf32> to vector<5x32xbf16>
    %cst_36 = arith.constant dense<0.000000e+00> : vector<5x5xf32>
    %89 = tpu.matmul %87, %88, %cst_36 {dimension_numbers = #tpu.dot_dimension_numbers<[1], [1], [0], [0], [0, 0, 1, 0], [], []>} : vector<5x32xbf16>, vector<5x32xbf16>, vector<5x5xf32> -> vector<5x5xf32>
    %cst_37 = arith.constant 0.176776692 : f32
    %90 = vector.broadcast %cst_37 : f32 to vector<5x5xf32>
    %91 = arith.mulf %89, %90 : vector<5x5xf32>
    %cst_38 = arith.constant dense<0xFF800000> : vector<5xf32>
    %92 = vector.multi_reduction <maximumf>, %91, %cst_38 [1] : vector<5x5xf32> to vector<5xf32>
    %93 = vector.shape_cast %92 : vector<5xf32> to vector<5x1xf32>
    %94 = vector.broadcast %93 : vector<5x1xf32> to vector<5x5xf32>
    %95 = arith.subf %91, %94 : vector<5x5xf32>
    %96 = math.exp %95 : vector<5x5xf32>
    %cst_39 = arith.constant dense<0.000000e+00> : vector<5xf32>
    %97 = vector.multi_reduction <add>, %96, %cst_39 [1] : vector<5x5xf32> to vector<5xf32>
    %98 = vector.shape_cast %97 : vector<5xf32> to vector<5x1xf32>
    %99 = tpu.reciprocal %98 {approx = true} : vector<5x1xf32> -> vector<5x1xf32>
    %100 = vector.broadcast %99 : vector<5x1xf32> to vector<5x5xf32>
    %101 = arith.mulf %96, %100 : vector<5x5xf32>
    %102 = arith.truncf %101 : vector<5x5xf32> to vector<5x5xbf16>
    %103 = arith.truncf %86 : vector<5x32xf32> to vector<5x32xbf16>
    %cst_40 = arith.constant dense<0.000000e+00> : vector<5x32xf32>
    %104 = tpu.matmul %102, %103, %cst_40 {dimension_numbers = #tpu.dot_dimension_numbers<[1], [0], [0], [1], [0, 0, 1, 1], [], []>} : vector<5x5xbf16>, vector<5x32xbf16>, vector<5x32xf32> -> vector<5x32xf32>
    %105 = vector.extract_strided_slice %41 {offsets = [0, 96], sizes = [5, 32], strides = [1, 1]} : vector<5x384xf32> to vector<5x32xf32>
    %106 = vector.extract_strided_slice %41 {offsets = [0, 224], sizes = [5, 32], strides = [1, 1]} : vector<5x384xf32> to vector<5x32xf32>
    %107 = vector.extract_strided_slice %41 {offsets = [0, 352], sizes = [5, 32], strides = [1, 1]} : vector<5x384xf32> to vector<5x32xf32>
    %108 = arith.truncf %105 : vector<5x32xf32> to vector<5x32xbf16>
    %109 = arith.truncf %106 : vector<5x32xf32> to vector<5x32xbf16>
    %cst_41 = arith.constant dense<0.000000e+00> : vector<5x5xf32>
    %110 = tpu.matmul %108, %109, %cst_41 {dimension_numbers = #tpu.dot_dimension_numbers<[1], [1], [0], [0], [0, 0, 1, 0], [], []>} : vector<5x32xbf16>, vector<5x32xbf16>, vector<5x5xf32> -> vector<5x5xf32>
    %cst_42 = arith.constant 0.176776692 : f32
    %111 = vector.broadcast %cst_42 : f32 to vector<5x5xf32>
    %112 = arith.mulf %110, %111 : vector<5x5xf32>
    %cst_43 = arith.constant dense<0xFF800000> : vector<5xf32>
    %113 = vector.multi_reduction <maximumf>, %112, %cst_43 [1] : vector<5x5xf32> to vector<5xf32>
    %114 = vector.shape_cast %113 : vector<5xf32> to vector<5x1xf32>
    %115 = vector.broadcast %114 : vector<5x1xf32> to vector<5x5xf32>
    %116 = arith.subf %112, %115 : vector<5x5xf32>
    %117 = math.exp %116 : vector<5x5xf32>
    %cst_44 = arith.constant dense<0.000000e+00> : vector<5xf32>
    %118 = vector.multi_reduction <add>, %117, %cst_44 [1] : vector<5x5xf32> to vector<5xf32>
    %119 = vector.shape_cast %118 : vector<5xf32> to vector<5x1xf32>
    %120 = tpu.reciprocal %119 {approx = true} : vector<5x1xf32> -> vector<5x1xf32>
    %121 = vector.broadcast %120 : vector<5x1xf32> to vector<5x5xf32>
    %122 = arith.mulf %117, %121 : vector<5x5xf32>
    %123 = arith.truncf %122 : vector<5x5xf32> to vector<5x5xbf16>
    %124 = arith.truncf %107 : vector<5x32xf32> to vector<5x32xbf16>
    %cst_45 = arith.constant dense<0.000000e+00> : vector<5x32xf32>
    %125 = tpu.matmul %123, %124, %cst_45 {dimension_numbers = #tpu.dot_dimension_numbers<[1], [0], [0], [1], [0, 0, 1, 1], [], []>} : vector<5x5xbf16>, vector<5x32xbf16>, vector<5x32xf32> -> vector<5x32xf32>
    %126 = tpu.concatenate %62, %83, %104, %125 in 1 : vector<5x32xf32>, vector<5x32xf32>, vector<5x32xf32>, vector<5x32xf32> -> vector<5x128xf32>
    %c0_46 = arith.constant 0 : index
    %c0_47 = arith.constant 0 : index
    %c0_48 = arith.constant 0 : index
    %127 = vector.load %arg9[%c0_46, %c0_47, %c0_48] : memref<3x128x128xbf16, #tpu.memory_space<vmem>>, vector<1x128x128xbf16>
    %128 = vector.shape_cast %127 : vector<1x128x128xbf16> to vector<128x128xbf16>
    %129 = arith.truncf %126 : vector<5x128xf32> to vector<5x128xbf16>
    %cst_49 = arith.constant dense<0.000000e+00> : vector<5x128xf32>
    %130 = tpu.matmul %129, %128, %cst_49 {dimension_numbers = #tpu.dot_dimension_numbers<[1], [0], [0], [1], [0, 0, 1, 1], [], []>} : vector<5x128xbf16>, vector<128x128xbf16>, vector<5x128xf32> -> vector<5x128xf32>
    %c0_50 = arith.constant 0 : index
    %c0_51 = arith.constant 0 : index
    %c0_52 = arith.constant 0 : index
    %131 = vector.load %arg10[%c0_50, %c0_51, %c0_52] : memref<3x1x128xf32, #tpu.memory_space<vmem>>, vector<1x1x128xf32>
    %132 = vector.shape_cast %131 : vector<1x1x128xf32> to vector<1x128xf32>
    %133 = vector.broadcast %132 : vector<1x128xf32> to vector<5x128xf32>
    %134 = arith.addf %130, %133 : vector<5x128xf32>
    %135 = arith.addf %134, %9 : vector<5x128xf32>
    %c0_53 = arith.constant 0 : index
    %c0_54 = arith.constant 0 : index
    %c0_55 = arith.constant 0 : index
    %136 = vector.load %arg11[%c0_53, %c0_54, %c0_55] : memref<3x1x128xf32, #tpu.memory_space<vmem>>, vector<1x1x128xf32>
    %137 = vector.shape_cast %136 : vector<1x1x128xf32> to vector<1x128xf32>
    %c0_56 = arith.constant 0 : index
    %c0_57 = arith.constant 0 : index
    %c0_58 = arith.constant 0 : index
    %138 = vector.load %arg12[%c0_56, %c0_57, %c0_58] : memref<3x1x128xf32, #tpu.memory_space<vmem>>, vector<1x1x128xf32>
    %139 = vector.shape_cast %138 : vector<1x1x128xf32> to vector<1x128xf32>
    %cst_59 = arith.constant dense<0.000000e+00> : vector<5xf32>
    %140 = vector.multi_reduction <add>, %135, %cst_59 [1] : vector<5x128xf32> to vector<5xf32>
    %141 = vector.shape_cast %140 : vector<5xf32> to vector<5x1xf32>
    %cst_60 = arith.constant 1.280000e+02 : f32
    %142 = vector.broadcast %cst_60 : f32 to vector<5x1xf32>
    %143 = arith.divf %141, %142 : vector<5x1xf32>
    %144 = vector.broadcast %143 : vector<5x1xf32> to vector<5x128xf32>
    %145 = arith.subf %135, %144 : vector<5x128xf32>
    %146 = arith.mulf %145, %145 : vector<5x128xf32>
    %cst_61 = arith.constant dense<0.000000e+00> : vector<5xf32>
    %147 = vector.multi_reduction <add>, %146, %cst_61 [1] : vector<5x128xf32> to vector<5xf32>
    %148 = vector.shape_cast %147 : vector<5xf32> to vector<5x1xf32>
    %cst_62 = arith.constant 1.280000e+02 : f32
    %149 = vector.broadcast %cst_62 : f32 to vector<5x1xf32>
    %150 = arith.divf %148, %149 : vector<5x1xf32>
    %cst_63 = arith.constant 9.99999974E-6 : f32
    %151 = vector.broadcast %cst_63 : f32 to vector<5x1xf32>
    %152 = arith.addf %150, %151 : vector<5x1xf32>
    %153 = math.rsqrt %152 : vector<5x1xf32>
    %154 = vector.broadcast %153 : vector<5x1xf32> to vector<5x128xf32>
    %155 = arith.mulf %145, %154 : vector<5x128xf32>
    %156 = vector.broadcast %137 : vector<1x128xf32> to vector<5x128xf32>
    %157 = arith.mulf %155, %156 : vector<5x128xf32>
    %158 = vector.broadcast %139 : vector<1x128xf32> to vector<5x128xf32>
    %159 = arith.addf %157, %158 : vector<5x128xf32>
    %c0_64 = arith.constant 0 : index
    %c0_65 = arith.constant 0 : index
    %c0_66 = arith.constant 0 : index
    %160 = vector.load %arg13[%c0_64, %c0_65, %c0_66] : memref<3x128x256xbf16, #tpu.memory_space<vmem>>, vector<1x128x256xbf16>
    %161 = vector.shape_cast %160 : vector<1x128x256xbf16> to vector<128x256xbf16>
    %162 = arith.truncf %159 : vector<5x128xf32> to vector<5x128xbf16>
    %cst_67 = arith.constant dense<0.000000e+00> : vector<5x256xf32>
    %163 = tpu.matmul %162, %161, %cst_67 {dimension_numbers = #tpu.dot_dimension_numbers<[1], [0], [0], [1], [0, 0, 1, 1], [], []>} : vector<5x128xbf16>, vector<128x256xbf16>, vector<5x256xf32> -> vector<5x256xf32>
    %c0_68 = arith.constant 0 : index
    %c0_69 = arith.constant 0 : index
    %c0_70 = arith.constant 0 : index
    %164 = vector.load %arg14[%c0_68, %c0_69, %c0_70] : memref<3x1x256xf32, #tpu.memory_space<vmem>>, vector<1x1x256xf32>
    %165 = vector.shape_cast %164 : vector<1x1x256xf32> to vector<1x256xf32>
    %166 = vector.broadcast %165 : vector<1x256xf32> to vector<5x256xf32>
    %167 = arith.addf %163, %166 : vector<5x256xf32>
    %cst_71 = arith.constant 5.000000e-01 : f32
    %168 = vector.broadcast %cst_71 : f32 to vector<5x256xf32>
    %169 = arith.mulf %168, %167 : vector<5x256xf32>
    %cst_72 = arith.constant 4.471500e-02 : f32
    %170 = vector.broadcast %cst_72 : f32 to vector<5x256xf32>
    %171 = arith.mulf %170, %167 : vector<5x256xf32>
    %172 = arith.mulf %171, %167 : vector<5x256xf32>
    %173 = arith.mulf %172, %167 : vector<5x256xf32>
    %174 = arith.addf %167, %173 : vector<5x256xf32>
    %cst_73 = arith.constant 0.797884583 : f32
    %175 = vector.broadcast %cst_73 : f32 to vector<5x256xf32>
    %176 = arith.mulf %175, %174 : vector<5x256xf32>
    %177 = math.tanh %176 : vector<5x256xf32>
    %cst_74 = arith.constant 1.000000e+00 : f32
    %178 = vector.broadcast %cst_74 : f32 to vector<5x256xf32>
    %179 = arith.addf %178, %177 : vector<5x256xf32>
    %180 = arith.mulf %169, %179 : vector<5x256xf32>
    %c0_75 = arith.constant 0 : index
    %c0_76 = arith.constant 0 : index
    %c0_77 = arith.constant 0 : index
    %181 = vector.load %arg15[%c0_75, %c0_76, %c0_77] : memref<3x256x128xbf16, #tpu.memory_space<vmem>>, vector<1x256x128xbf16>
    %182 = vector.shape_cast %181 : vector<1x256x128xbf16> to vector<256x128xbf16>
    %183 = arith.truncf %180 : vector<5x256xf32> to vector<5x256xbf16>
    %cst_78 = arith.constant dense<0.000000e+00> : vector<5x128xf32>
    %184 = tpu.matmul %183, %182, %cst_78 {dimension_numbers = #tpu.dot_dimension_numbers<[1], [0], [0], [1], [0, 0, 1, 1], [], []>} : vector<5x256xbf16>, vector<256x128xbf16>, vector<5x128xf32> -> vector<5x128xf32>
    %c0_79 = arith.constant 0 : index
    %c0_80 = arith.constant 0 : index
    %c0_81 = arith.constant 0 : index
    %185 = vector.load %arg16[%c0_79, %c0_80, %c0_81] : memref<3x1x128xf32, #tpu.memory_space<vmem>>, vector<1x1x128xf32>
    %186 = vector.shape_cast %185 : vector<1x1x128xf32> to vector<1x128xf32>
    %187 = vector.broadcast %186 : vector<1x128xf32> to vector<5x128xf32>
    %188 = arith.addf %184, %187 : vector<5x128xf32>
    %189 = arith.addf %188, %135 : vector<5x128xf32>
    %c1 = arith.constant 1 : index
    %c0_82 = arith.constant 0 : index
    %c0_83 = arith.constant 0 : index
    %190 = vector.load %arg5[%c1, %c0_82, %c0_83] : memref<3x1x128xf32, #tpu.memory_space<vmem>>, vector<1x1x128xf32>
    %191 = vector.shape_cast %190 : vector<1x1x128xf32> to vector<1x128xf32>
    %c1_84 = arith.constant 1 : index
    %c0_85 = arith.constant 0 : index
    %c0_86 = arith.constant 0 : index
    %192 = vector.load %arg6[%c1_84, %c0_85, %c0_86] : memref<3x1x128xf32, #tpu.memory_space<vmem>>, vector<1x1x128xf32>
    %193 = vector.shape_cast %192 : vector<1x1x128xf32> to vector<1x128xf32>
    %cst_87 = arith.constant dense<0.000000e+00> : vector<5xf32>
    %194 = vector.multi_reduction <add>, %189, %cst_87 [1] : vector<5x128xf32> to vector<5xf32>
    %195 = vector.shape_cast %194 : vector<5xf32> to vector<5x1xf32>
    %cst_88 = arith.constant 1.280000e+02 : f32
    %196 = vector.broadcast %cst_88 : f32 to vector<5x1xf32>
    %197 = arith.divf %195, %196 : vector<5x1xf32>
    %198 = vector.broadcast %197 : vector<5x1xf32> to vector<5x128xf32>
    %199 = arith.subf %189, %198 : vector<5x128xf32>
    %200 = arith.mulf %199, %199 : vector<5x128xf32>
    %cst_89 = arith.constant dense<0.000000e+00> : vector<5xf32>
    %201 = vector.multi_reduction <add>, %200, %cst_89 [1] : vector<5x128xf32> to vector<5xf32>
    %202 = vector.shape_cast %201 : vector<5xf32> to vector<5x1xf32>
    %cst_90 = arith.constant 1.280000e+02 : f32
    %203 = vector.broadcast %cst_90 : f32 to vector<5x1xf32>
    %204 = arith.divf %202, %203 : vector<5x1xf32>
    %cst_91 = arith.constant 9.99999974E-6 : f32
    %205 = vector.broadcast %cst_91 : f32 to vector<5x1xf32>
    %206 = arith.addf %204, %205 : vector<5x1xf32>
    %207 = math.rsqrt %206 : vector<5x1xf32>
    %208 = vector.broadcast %207 : vector<5x1xf32> to vector<5x128xf32>
    %209 = arith.mulf %199, %208 : vector<5x128xf32>
    %210 = vector.broadcast %191 : vector<1x128xf32> to vector<5x128xf32>
    %211 = arith.mulf %209, %210 : vector<5x128xf32>
    %212 = vector.broadcast %193 : vector<1x128xf32> to vector<5x128xf32>
    %213 = arith.addf %211, %212 : vector<5x128xf32>
    %c1_92 = arith.constant 1 : index
    %c0_93 = arith.constant 0 : index
    %c0_94 = arith.constant 0 : index
    %214 = vector.load %arg7[%c1_92, %c0_93, %c0_94] : memref<3x128x384xbf16, #tpu.memory_space<vmem>>, vector<1x128x384xbf16>
    %215 = vector.shape_cast %214 : vector<1x128x384xbf16> to vector<128x384xbf16>
    %216 = arith.truncf %213 : vector<5x128xf32> to vector<5x128xbf16>
    %cst_95 = arith.constant dense<0.000000e+00> : vector<5x384xf32>
    %217 = tpu.matmul %216, %215, %cst_95 {dimension_numbers = #tpu.dot_dimension_numbers<[1], [0], [0], [1], [0, 0, 1, 1], [], []>} : vector<5x128xbf16>, vector<128x384xbf16>, vector<5x384xf32> -> vector<5x384xf32>
    %c1_96 = arith.constant 1 : index
    %c0_97 = arith.constant 0 : index
    %c0_98 = arith.constant 0 : index
    %218 = vector.load %arg8[%c1_96, %c0_97, %c0_98] : memref<3x1x384xf32, #tpu.memory_space<vmem>>, vector<1x1x384xf32>
    %219 = vector.shape_cast %218 : vector<1x1x384xf32> to vector<1x384xf32>
    %220 = vector.broadcast %219 : vector<1x384xf32> to vector<5x384xf32>
    %221 = arith.addf %217, %220 : vector<5x384xf32>
    %222 = vector.extract_strided_slice %221 {offsets = [0, 0], sizes = [5, 32], strides = [1, 1]} : vector<5x384xf32> to vector<5x32xf32>
    %223 = vector.extract_strided_slice %221 {offsets = [0, 128], sizes = [5, 32], strides = [1, 1]} : vector<5x384xf32> to vector<5x32xf32>
    %224 = vector.extract_strided_slice %221 {offsets = [0, 256], sizes = [5, 32], strides = [1, 1]} : vector<5x384xf32> to vector<5x32xf32>
    %225 = arith.truncf %222 : vector<5x32xf32> to vector<5x32xbf16>
    %226 = arith.truncf %223 : vector<5x32xf32> to vector<5x32xbf16>
    %cst_99 = arith.constant dense<0.000000e+00> : vector<5x5xf32>
    %227 = tpu.matmul %225, %226, %cst_99 {dimension_numbers = #tpu.dot_dimension_numbers<[1], [1], [0], [0], [0, 0, 1, 0], [], []>} : vector<5x32xbf16>, vector<5x32xbf16>, vector<5x5xf32> -> vector<5x5xf32>
    %cst_100 = arith.constant 0.176776692 : f32
    %228 = vector.broadcast %cst_100 : f32 to vector<5x5xf32>
    %229 = arith.mulf %227, %228 : vector<5x5xf32>
    %cst_101 = arith.constant dense<0xFF800000> : vector<5xf32>
    %230 = vector.multi_reduction <maximumf>, %229, %cst_101 [1] : vector<5x5xf32> to vector<5xf32>
    %231 = vector.shape_cast %230 : vector<5xf32> to vector<5x1xf32>
    %232 = vector.broadcast %231 : vector<5x1xf32> to vector<5x5xf32>
    %233 = arith.subf %229, %232 : vector<5x5xf32>
    %234 = math.exp %233 : vector<5x5xf32>
    %cst_102 = arith.constant dense<0.000000e+00> : vector<5xf32>
    %235 = vector.multi_reduction <add>, %234, %cst_102 [1] : vector<5x5xf32> to vector<5xf32>
    %236 = vector.shape_cast %235 : vector<5xf32> to vector<5x1xf32>
    %237 = tpu.reciprocal %236 {approx = true} : vector<5x1xf32> -> vector<5x1xf32>
    %238 = vector.broadcast %237 : vector<5x1xf32> to vector<5x5xf32>
    %239 = arith.mulf %234, %238 : vector<5x5xf32>
    %240 = arith.truncf %239 : vector<5x5xf32> to vector<5x5xbf16>
    %241 = arith.truncf %224 : vector<5x32xf32> to vector<5x32xbf16>
    %cst_103 = arith.constant dense<0.000000e+00> : vector<5x32xf32>
    %242 = tpu.matmul %240, %241, %cst_103 {dimension_numbers = #tpu.dot_dimension_numbers<[1], [0], [0], [1], [0, 0, 1, 1], [], []>} : vector<5x5xbf16>, vector<5x32xbf16>, vector<5x32xf32> -> vector<5x32xf32>
    %243 = vector.extract_strided_slice %221 {offsets = [0, 32], sizes = [5, 32], strides = [1, 1]} : vector<5x384xf32> to vector<5x32xf32>
    %244 = vector.extract_strided_slice %221 {offsets = [0, 160], sizes = [5, 32], strides = [1, 1]} : vector<5x384xf32> to vector<5x32xf32>
    %245 = vector.extract_strided_slice %221 {offsets = [0, 288], sizes = [5, 32], strides = [1, 1]} : vector<5x384xf32> to vector<5x32xf32>
    %246 = arith.truncf %243 : vector<5x32xf32> to vector<5x32xbf16>
    %247 = arith.truncf %244 : vector<5x32xf32> to vector<5x32xbf16>
    %cst_104 = arith.constant dense<0.000000e+00> : vector<5x5xf32>
    %248 = tpu.matmul %246, %247, %cst_104 {dimension_numbers = #tpu.dot_dimension_numbers<[1], [1], [0], [0], [0, 0, 1, 0], [], []>} : vector<5x32xbf16>, vector<5x32xbf16>, vector<5x5xf32> -> vector<5x5xf32>
    %cst_105 = arith.constant 0.176776692 : f32
    %249 = vector.broadcast %cst_105 : f32 to vector<5x5xf32>
    %250 = arith.mulf %248, %249 : vector<5x5xf32>
    %cst_106 = arith.constant dense<0xFF800000> : vector<5xf32>
    %251 = vector.multi_reduction <maximumf>, %250, %cst_106 [1] : vector<5x5xf32> to vector<5xf32>
    %252 = vector.shape_cast %251 : vector<5xf32> to vector<5x1xf32>
    %253 = vector.broadcast %252 : vector<5x1xf32> to vector<5x5xf32>
    %254 = arith.subf %250, %253 : vector<5x5xf32>
    %255 = math.exp %254 : vector<5x5xf32>
    %cst_107 = arith.constant dense<0.000000e+00> : vector<5xf32>
    %256 = vector.multi_reduction <add>, %255, %cst_107 [1] : vector<5x5xf32> to vector<5xf32>
    %257 = vector.shape_cast %256 : vector<5xf32> to vector<5x1xf32>
    %258 = tpu.reciprocal %257 {approx = true} : vector<5x1xf32> -> vector<5x1xf32>
    %259 = vector.broadcast %258 : vector<5x1xf32> to vector<5x5xf32>
    %260 = arith.mulf %255, %259 : vector<5x5xf32>
    %261 = arith.truncf %260 : vector<5x5xf32> to vector<5x5xbf16>
    %262 = arith.truncf %245 : vector<5x32xf32> to vector<5x32xbf16>
    %cst_108 = arith.constant dense<0.000000e+00> : vector<5x32xf32>
    %263 = tpu.matmul %261, %262, %cst_108 {dimension_numbers = #tpu.dot_dimension_numbers<[1], [0], [0], [1], [0, 0, 1, 1], [], []>} : vector<5x5xbf16>, vector<5x32xbf16>, vector<5x32xf32> -> vector<5x32xf32>
    %264 = vector.extract_strided_slice %221 {offsets = [0, 64], sizes = [5, 32], strides = [1, 1]} : vector<5x384xf32> to vector<5x32xf32>
    %265 = vector.extract_strided_slice %221 {offsets = [0, 192], sizes = [5, 32], strides = [1, 1]} : vector<5x384xf32> to vector<5x32xf32>
    %266 = vector.extract_strided_slice %221 {offsets = [0, 320], sizes = [5, 32], strides = [1, 1]} : vector<5x384xf32> to vector<5x32xf32>
    %267 = arith.truncf %264 : vector<5x32xf32> to vector<5x32xbf16>
    %268 = arith.truncf %265 : vector<5x32xf32> to vector<5x32xbf16>
    %cst_109 = arith.constant dense<0.000000e+00> : vector<5x5xf32>
    %269 = tpu.matmul %267, %268, %cst_109 {dimension_numbers = #tpu.dot_dimension_numbers<[1], [1], [0], [0], [0, 0, 1, 0], [], []>} : vector<5x32xbf16>, vector<5x32xbf16>, vector<5x5xf32> -> vector<5x5xf32>
    %cst_110 = arith.constant 0.176776692 : f32
    %270 = vector.broadcast %cst_110 : f32 to vector<5x5xf32>
    %271 = arith.mulf %269, %270 : vector<5x5xf32>
    %cst_111 = arith.constant dense<0xFF800000> : vector<5xf32>
    %272 = vector.multi_reduction <maximumf>, %271, %cst_111 [1] : vector<5x5xf32> to vector<5xf32>
    %273 = vector.shape_cast %272 : vector<5xf32> to vector<5x1xf32>
    %274 = vector.broadcast %273 : vector<5x1xf32> to vector<5x5xf32>
    %275 = arith.subf %271, %274 : vector<5x5xf32>
    %276 = math.exp %275 : vector<5x5xf32>
    %cst_112 = arith.constant dense<0.000000e+00> : vector<5xf32>
    %277 = vector.multi_reduction <add>, %276, %cst_112 [1] : vector<5x5xf32> to vector<5xf32>
    %278 = vector.shape_cast %277 : vector<5xf32> to vector<5x1xf32>
    %279 = tpu.reciprocal %278 {approx = true} : vector<5x1xf32> -> vector<5x1xf32>
    %280 = vector.broadcast %279 : vector<5x1xf32> to vector<5x5xf32>
    %281 = arith.mulf %276, %280 : vector<5x5xf32>
    %282 = arith.truncf %281 : vector<5x5xf32> to vector<5x5xbf16>
    %283 = arith.truncf %266 : vector<5x32xf32> to vector<5x32xbf16>
    %cst_113 = arith.constant dense<0.000000e+00> : vector<5x32xf32>
    %284 = tpu.matmul %282, %283, %cst_113 {dimension_numbers = #tpu.dot_dimension_numbers<[1], [0], [0], [1], [0, 0, 1, 1], [], []>} : vector<5x5xbf16>, vector<5x32xbf16>, vector<5x32xf32> -> vector<5x32xf32>
    %285 = vector.extract_strided_slice %221 {offsets = [0, 96], sizes = [5, 32], strides = [1, 1]} : vector<5x384xf32> to vector<5x32xf32>
    %286 = vector.extract_strided_slice %221 {offsets = [0, 224], sizes = [5, 32], strides = [1, 1]} : vector<5x384xf32> to vector<5x32xf32>
    %287 = vector.extract_strided_slice %221 {offsets = [0, 352], sizes = [5, 32], strides = [1, 1]} : vector<5x384xf32> to vector<5x32xf32>
    %288 = arith.truncf %285 : vector<5x32xf32> to vector<5x32xbf16>
    %289 = arith.truncf %286 : vector<5x32xf32> to vector<5x32xbf16>
    %cst_114 = arith.constant dense<0.000000e+00> : vector<5x5xf32>
    %290 = tpu.matmul %288, %289, %cst_114 {dimension_numbers = #tpu.dot_dimension_numbers<[1], [1], [0], [0], [0, 0, 1, 0], [], []>} : vector<5x32xbf16>, vector<5x32xbf16>, vector<5x5xf32> -> vector<5x5xf32>
    %cst_115 = arith.constant 0.176776692 : f32
    %291 = vector.broadcast %cst_115 : f32 to vector<5x5xf32>
    %292 = arith.mulf %290, %291 : vector<5x5xf32>
    %cst_116 = arith.constant dense<0xFF800000> : vector<5xf32>
    %293 = vector.multi_reduction <maximumf>, %292, %cst_116 [1] : vector<5x5xf32> to vector<5xf32>
    %294 = vector.shape_cast %293 : vector<5xf32> to vector<5x1xf32>
    %295 = vector.broadcast %294 : vector<5x1xf32> to vector<5x5xf32>
    %296 = arith.subf %292, %295 : vector<5x5xf32>
    %297 = math.exp %296 : vector<5x5xf32>
    %cst_117 = arith.constant dense<0.000000e+00> : vector<5xf32>
    %298 = vector.multi_reduction <add>, %297, %cst_117 [1] : vector<5x5xf32> to vector<5xf32>
    %299 = vector.shape_cast %298 : vector<5xf32> to vector<5x1xf32>
    %300 = tpu.reciprocal %299 {approx = true} : vector<5x1xf32> -> vector<5x1xf32>
    %301 = vector.broadcast %300 : vector<5x1xf32> to vector<5x5xf32>
    %302 = arith.mulf %297, %301 : vector<5x5xf32>
    %303 = arith.truncf %302 : vector<5x5xf32> to vector<5x5xbf16>
    %304 = arith.truncf %287 : vector<5x32xf32> to vector<5x32xbf16>
    %cst_118 = arith.constant dense<0.000000e+00> : vector<5x32xf32>
    %305 = tpu.matmul %303, %304, %cst_118 {dimension_numbers = #tpu.dot_dimension_numbers<[1], [0], [0], [1], [0, 0, 1, 1], [], []>} : vector<5x5xbf16>, vector<5x32xbf16>, vector<5x32xf32> -> vector<5x32xf32>
    %306 = tpu.concatenate %242, %263, %284, %305 in 1 : vector<5x32xf32>, vector<5x32xf32>, vector<5x32xf32>, vector<5x32xf32> -> vector<5x128xf32>
    %c1_119 = arith.constant 1 : index
    %c0_120 = arith.constant 0 : index
    %c0_121 = arith.constant 0 : index
    %307 = vector.load %arg9[%c1_119, %c0_120, %c0_121] : memref<3x128x128xbf16, #tpu.memory_space<vmem>>, vector<1x128x128xbf16>
    %308 = vector.shape_cast %307 : vector<1x128x128xbf16> to vector<128x128xbf16>
    %309 = arith.truncf %306 : vector<5x128xf32> to vector<5x128xbf16>
    %cst_122 = arith.constant dense<0.000000e+00> : vector<5x128xf32>
    %310 = tpu.matmul %309, %308, %cst_122 {dimension_numbers = #tpu.dot_dimension_numbers<[1], [0], [0], [1], [0, 0, 1, 1], [], []>} : vector<5x128xbf16>, vector<128x128xbf16>, vector<5x128xf32> -> vector<5x128xf32>
    %c1_123 = arith.constant 1 : index
    %c0_124 = arith.constant 0 : index
    %c0_125 = arith.constant 0 : index
    %311 = vector.load %arg10[%c1_123, %c0_124, %c0_125] : memref<3x1x128xf32, #tpu.memory_space<vmem>>, vector<1x1x128xf32>
    %312 = vector.shape_cast %311 : vector<1x1x128xf32> to vector<1x128xf32>
    %313 = vector.broadcast %312 : vector<1x128xf32> to vector<5x128xf32>
    %314 = arith.addf %310, %313 : vector<5x128xf32>
    %315 = arith.addf %314, %189 : vector<5x128xf32>
    %c1_126 = arith.constant 1 : index
    %c0_127 = arith.constant 0 : index
    %c0_128 = arith.constant 0 : index
    %316 = vector.load %arg11[%c1_126, %c0_127, %c0_128] : memref<3x1x128xf32, #tpu.memory_space<vmem>>, vector<1x1x128xf32>
    %317 = vector.shape_cast %316 : vector<1x1x128xf32> to vector<1x128xf32>
    %c1_129 = arith.constant 1 : index
    %c0_130 = arith.constant 0 : index
    %c0_131 = arith.constant 0 : index
    %318 = vector.load %arg12[%c1_129, %c0_130, %c0_131] : memref<3x1x128xf32, #tpu.memory_space<vmem>>, vector<1x1x128xf32>
    %319 = vector.shape_cast %318 : vector<1x1x128xf32> to vector<1x128xf32>
    %cst_132 = arith.constant dense<0.000000e+00> : vector<5xf32>
    %320 = vector.multi_reduction <add>, %315, %cst_132 [1] : vector<5x128xf32> to vector<5xf32>
    %321 = vector.shape_cast %320 : vector<5xf32> to vector<5x1xf32>
    %cst_133 = arith.constant 1.280000e+02 : f32
    %322 = vector.broadcast %cst_133 : f32 to vector<5x1xf32>
    %323 = arith.divf %321, %322 : vector<5x1xf32>
    %324 = vector.broadcast %323 : vector<5x1xf32> to vector<5x128xf32>
    %325 = arith.subf %315, %324 : vector<5x128xf32>
    %326 = arith.mulf %325, %325 : vector<5x128xf32>
    %cst_134 = arith.constant dense<0.000000e+00> : vector<5xf32>
    %327 = vector.multi_reduction <add>, %326, %cst_134 [1] : vector<5x128xf32> to vector<5xf32>
    %328 = vector.shape_cast %327 : vector<5xf32> to vector<5x1xf32>
    %cst_135 = arith.constant 1.280000e+02 : f32
    %329 = vector.broadcast %cst_135 : f32 to vector<5x1xf32>
    %330 = arith.divf %328, %329 : vector<5x1xf32>
    %cst_136 = arith.constant 9.99999974E-6 : f32
    %331 = vector.broadcast %cst_136 : f32 to vector<5x1xf32>
    %332 = arith.addf %330, %331 : vector<5x1xf32>
    %333 = math.rsqrt %332 : vector<5x1xf32>
    %334 = vector.broadcast %333 : vector<5x1xf32> to vector<5x128xf32>
    %335 = arith.mulf %325, %334 : vector<5x128xf32>
    %336 = vector.broadcast %317 : vector<1x128xf32> to vector<5x128xf32>
    %337 = arith.mulf %335, %336 : vector<5x128xf32>
    %338 = vector.broadcast %319 : vector<1x128xf32> to vector<5x128xf32>
    %339 = arith.addf %337, %338 : vector<5x128xf32>
    %c1_137 = arith.constant 1 : index
    %c0_138 = arith.constant 0 : index
    %c0_139 = arith.constant 0 : index
    %340 = vector.load %arg13[%c1_137, %c0_138, %c0_139] : memref<3x128x256xbf16, #tpu.memory_space<vmem>>, vector<1x128x256xbf16>
    %341 = vector.shape_cast %340 : vector<1x128x256xbf16> to vector<128x256xbf16>
    %342 = arith.truncf %339 : vector<5x128xf32> to vector<5x128xbf16>
    %cst_140 = arith.constant dense<0.000000e+00> : vector<5x256xf32>
    %343 = tpu.matmul %342, %341, %cst_140 {dimension_numbers = #tpu.dot_dimension_numbers<[1], [0], [0], [1], [0, 0, 1, 1], [], []>} : vector<5x128xbf16>, vector<128x256xbf16>, vector<5x256xf32> -> vector<5x256xf32>
    %c1_141 = arith.constant 1 : index
    %c0_142 = arith.constant 0 : index
    %c0_143 = arith.constant 0 : index
    %344 = vector.load %arg14[%c1_141, %c0_142, %c0_143] : memref<3x1x256xf32, #tpu.memory_space<vmem>>, vector<1x1x256xf32>
    %345 = vector.shape_cast %344 : vector<1x1x256xf32> to vector<1x256xf32>
    %346 = vector.broadcast %345 : vector<1x256xf32> to vector<5x256xf32>
    %347 = arith.addf %343, %346 : vector<5x256xf32>
    %cst_144 = arith.constant 5.000000e-01 : f32
    %348 = vector.broadcast %cst_144 : f32 to vector<5x256xf32>
    %349 = arith.mulf %348, %347 : vector<5x256xf32>
    %cst_145 = arith.constant 4.471500e-02 : f32
    %350 = vector.broadcast %cst_145 : f32 to vector<5x256xf32>
    %351 = arith.mulf %350, %347 : vector<5x256xf32>
    %352 = arith.mulf %351, %347 : vector<5x256xf32>
    %353 = arith.mulf %352, %347 : vector<5x256xf32>
    %354 = arith.addf %347, %353 : vector<5x256xf32>
    %cst_146 = arith.constant 0.797884583 : f32
    %355 = vector.broadcast %cst_146 : f32 to vector<5x256xf32>
    %356 = arith.mulf %355, %354 : vector<5x256xf32>
    %357 = math.tanh %356 : vector<5x256xf32>
    %cst_147 = arith.constant 1.000000e+00 : f32
    %358 = vector.broadcast %cst_147 : f32 to vector<5x256xf32>
    %359 = arith.addf %358, %357 : vector<5x256xf32>
    %360 = arith.mulf %349, %359 : vector<5x256xf32>
    %c1_148 = arith.constant 1 : index
    %c0_149 = arith.constant 0 : index
    %c0_150 = arith.constant 0 : index
    %361 = vector.load %arg15[%c1_148, %c0_149, %c0_150] : memref<3x256x128xbf16, #tpu.memory_space<vmem>>, vector<1x256x128xbf16>
    %362 = vector.shape_cast %361 : vector<1x256x128xbf16> to vector<256x128xbf16>
    %363 = arith.truncf %360 : vector<5x256xf32> to vector<5x256xbf16>
    %cst_151 = arith.constant dense<0.000000e+00> : vector<5x128xf32>
    %364 = tpu.matmul %363, %362, %cst_151 {dimension_numbers = #tpu.dot_dimension_numbers<[1], [0], [0], [1], [0, 0, 1, 1], [], []>} : vector<5x256xbf16>, vector<256x128xbf16>, vector<5x128xf32> -> vector<5x128xf32>
    %c1_152 = arith.constant 1 : index
    %c0_153 = arith.constant 0 : index
    %c0_154 = arith.constant 0 : index
    %365 = vector.load %arg16[%c1_152, %c0_153, %c0_154] : memref<3x1x128xf32, #tpu.memory_space<vmem>>, vector<1x1x128xf32>
    %366 = vector.shape_cast %365 : vector<1x1x128xf32> to vector<1x128xf32>
    %367 = vector.broadcast %366 : vector<1x128xf32> to vector<5x128xf32>
    %368 = arith.addf %364, %367 : vector<5x128xf32>
    %369 = arith.addf %368, %315 : vector<5x128xf32>
    %c2 = arith.constant 2 : index
    %c0_155 = arith.constant 0 : index
    %c0_156 = arith.constant 0 : index
    %370 = vector.load %arg5[%c2, %c0_155, %c0_156] : memref<3x1x128xf32, #tpu.memory_space<vmem>>, vector<1x1x128xf32>
    %371 = vector.shape_cast %370 : vector<1x1x128xf32> to vector<1x128xf32>
    %c2_157 = arith.constant 2 : index
    %c0_158 = arith.constant 0 : index
    %c0_159 = arith.constant 0 : index
    %372 = vector.load %arg6[%c2_157, %c0_158, %c0_159] : memref<3x1x128xf32, #tpu.memory_space<vmem>>, vector<1x1x128xf32>
    %373 = vector.shape_cast %372 : vector<1x1x128xf32> to vector<1x128xf32>
    %cst_160 = arith.constant dense<0.000000e+00> : vector<5xf32>
    %374 = vector.multi_reduction <add>, %369, %cst_160 [1] : vector<5x128xf32> to vector<5xf32>
    %375 = vector.shape_cast %374 : vector<5xf32> to vector<5x1xf32>
    %cst_161 = arith.constant 1.280000e+02 : f32
    %376 = vector.broadcast %cst_161 : f32 to vector<5x1xf32>
    %377 = arith.divf %375, %376 : vector<5x1xf32>
    %378 = vector.broadcast %377 : vector<5x1xf32> to vector<5x128xf32>
    %379 = arith.subf %369, %378 : vector<5x128xf32>
    %380 = arith.mulf %379, %379 : vector<5x128xf32>
    %cst_162 = arith.constant dense<0.000000e+00> : vector<5xf32>
    %381 = vector.multi_reduction <add>, %380, %cst_162 [1] : vector<5x128xf32> to vector<5xf32>
    %382 = vector.shape_cast %381 : vector<5xf32> to vector<5x1xf32>
    %cst_163 = arith.constant 1.280000e+02 : f32
    %383 = vector.broadcast %cst_163 : f32 to vector<5x1xf32>
    %384 = arith.divf %382, %383 : vector<5x1xf32>
    %cst_164 = arith.constant 9.99999974E-6 : f32
    %385 = vector.broadcast %cst_164 : f32 to vector<5x1xf32>
    %386 = arith.addf %384, %385 : vector<5x1xf32>
    %387 = math.rsqrt %386 : vector<5x1xf32>
    %388 = vector.broadcast %387 : vector<5x1xf32> to vector<5x128xf32>
    %389 = arith.mulf %379, %388 : vector<5x128xf32>
    %390 = vector.broadcast %371 : vector<1x128xf32> to vector<5x128xf32>
    %391 = arith.mulf %389, %390 : vector<5x128xf32>
    %392 = vector.broadcast %373 : vector<1x128xf32> to vector<5x128xf32>
    %393 = arith.addf %391, %392 : vector<5x128xf32>
    %c2_165 = arith.constant 2 : index
    %c0_166 = arith.constant 0 : index
    %c0_167 = arith.constant 0 : index
    %394 = vector.load %arg7[%c2_165, %c0_166, %c0_167] : memref<3x128x384xbf16, #tpu.memory_space<vmem>>, vector<1x128x384xbf16>
    %395 = vector.shape_cast %394 : vector<1x128x384xbf16> to vector<128x384xbf16>
    %396 = arith.truncf %393 : vector<5x128xf32> to vector<5x128xbf16>
    %cst_168 = arith.constant dense<0.000000e+00> : vector<5x384xf32>
    %397 = tpu.matmul %396, %395, %cst_168 {dimension_numbers = #tpu.dot_dimension_numbers<[1], [0], [0], [1], [0, 0, 1, 1], [], []>} : vector<5x128xbf16>, vector<128x384xbf16>, vector<5x384xf32> -> vector<5x384xf32>
    %c2_169 = arith.constant 2 : index
    %c0_170 = arith.constant 0 : index
    %c0_171 = arith.constant 0 : index
    %398 = vector.load %arg8[%c2_169, %c0_170, %c0_171] : memref<3x1x384xf32, #tpu.memory_space<vmem>>, vector<1x1x384xf32>
    %399 = vector.shape_cast %398 : vector<1x1x384xf32> to vector<1x384xf32>
    %400 = vector.broadcast %399 : vector<1x384xf32> to vector<5x384xf32>
    %401 = arith.addf %397, %400 : vector<5x384xf32>
    %402 = vector.extract_strided_slice %401 {offsets = [0, 0], sizes = [5, 32], strides = [1, 1]} : vector<5x384xf32> to vector<5x32xf32>
    %403 = vector.extract_strided_slice %401 {offsets = [0, 128], sizes = [5, 32], strides = [1, 1]} : vector<5x384xf32> to vector<5x32xf32>
    %404 = vector.extract_strided_slice %401 {offsets = [0, 256], sizes = [5, 32], strides = [1, 1]} : vector<5x384xf32> to vector<5x32xf32>
    %405 = arith.truncf %402 : vector<5x32xf32> to vector<5x32xbf16>
    %406 = arith.truncf %403 : vector<5x32xf32> to vector<5x32xbf16>
    %cst_172 = arith.constant dense<0.000000e+00> : vector<5x5xf32>
    %407 = tpu.matmul %405, %406, %cst_172 {dimension_numbers = #tpu.dot_dimension_numbers<[1], [1], [0], [0], [0, 0, 1, 0], [], []>} : vector<5x32xbf16>, vector<5x32xbf16>, vector<5x5xf32> -> vector<5x5xf32>
    %cst_173 = arith.constant 0.176776692 : f32
    %408 = vector.broadcast %cst_173 : f32 to vector<5x5xf32>
    %409 = arith.mulf %407, %408 : vector<5x5xf32>
    %cst_174 = arith.constant dense<0xFF800000> : vector<5xf32>
    %410 = vector.multi_reduction <maximumf>, %409, %cst_174 [1] : vector<5x5xf32> to vector<5xf32>
    %411 = vector.shape_cast %410 : vector<5xf32> to vector<5x1xf32>
    %412 = vector.broadcast %411 : vector<5x1xf32> to vector<5x5xf32>
    %413 = arith.subf %409, %412 : vector<5x5xf32>
    %414 = math.exp %413 : vector<5x5xf32>
    %cst_175 = arith.constant dense<0.000000e+00> : vector<5xf32>
    %415 = vector.multi_reduction <add>, %414, %cst_175 [1] : vector<5x5xf32> to vector<5xf32>
    %416 = vector.shape_cast %415 : vector<5xf32> to vector<5x1xf32>
    %417 = tpu.reciprocal %416 {approx = true} : vector<5x1xf32> -> vector<5x1xf32>
    %418 = vector.broadcast %417 : vector<5x1xf32> to vector<5x5xf32>
    %419 = arith.mulf %414, %418 : vector<5x5xf32>
    %420 = arith.truncf %419 : vector<5x5xf32> to vector<5x5xbf16>
    %421 = arith.truncf %404 : vector<5x32xf32> to vector<5x32xbf16>
    %cst_176 = arith.constant dense<0.000000e+00> : vector<5x32xf32>
    %422 = tpu.matmul %420, %421, %cst_176 {dimension_numbers = #tpu.dot_dimension_numbers<[1], [0], [0], [1], [0, 0, 1, 1], [], []>} : vector<5x5xbf16>, vector<5x32xbf16>, vector<5x32xf32> -> vector<5x32xf32>
    %423 = vector.extract_strided_slice %401 {offsets = [0, 32], sizes = [5, 32], strides = [1, 1]} : vector<5x384xf32> to vector<5x32xf32>
    %424 = vector.extract_strided_slice %401 {offsets = [0, 160], sizes = [5, 32], strides = [1, 1]} : vector<5x384xf32> to vector<5x32xf32>
    %425 = vector.extract_strided_slice %401 {offsets = [0, 288], sizes = [5, 32], strides = [1, 1]} : vector<5x384xf32> to vector<5x32xf32>
    %426 = arith.truncf %423 : vector<5x32xf32> to vector<5x32xbf16>
    %427 = arith.truncf %424 : vector<5x32xf32> to vector<5x32xbf16>
    %cst_177 = arith.constant dense<0.000000e+00> : vector<5x5xf32>
    %428 = tpu.matmul %426, %427, %cst_177 {dimension_numbers = #tpu.dot_dimension_numbers<[1], [1], [0], [0], [0, 0, 1, 0], [], []>} : vector<5x32xbf16>, vector<5x32xbf16>, vector<5x5xf32> -> vector<5x5xf32>
    %cst_178 = arith.constant 0.176776692 : f32
    %429 = vector.broadcast %cst_178 : f32 to vector<5x5xf32>
    %430 = arith.mulf %428, %429 : vector<5x5xf32>
    %cst_179 = arith.constant dense<0xFF800000> : vector<5xf32>
    %431 = vector.multi_reduction <maximumf>, %430, %cst_179 [1] : vector<5x5xf32> to vector<5xf32>
    %432 = vector.shape_cast %431 : vector<5xf32> to vector<5x1xf32>
    %433 = vector.broadcast %432 : vector<5x1xf32> to vector<5x5xf32>
    %434 = arith.subf %430, %433 : vector<5x5xf32>
    %435 = math.exp %434 : vector<5x5xf32>
    %cst_180 = arith.constant dense<0.000000e+00> : vector<5xf32>
    %436 = vector.multi_reduction <add>, %435, %cst_180 [1] : vector<5x5xf32> to vector<5xf32>
    %437 = vector.shape_cast %436 : vector<5xf32> to vector<5x1xf32>
    %438 = tpu.reciprocal %437 {approx = true} : vector<5x1xf32> -> vector<5x1xf32>
    %439 = vector.broadcast %438 : vector<5x1xf32> to vector<5x5xf32>
    %440 = arith.mulf %435, %439 : vector<5x5xf32>
    %441 = arith.truncf %440 : vector<5x5xf32> to vector<5x5xbf16>
    %442 = arith.truncf %425 : vector<5x32xf32> to vector<5x32xbf16>
    %cst_181 = arith.constant dense<0.000000e+00> : vector<5x32xf32>
    %443 = tpu.matmul %441, %442, %cst_181 {dimension_numbers = #tpu.dot_dimension_numbers<[1], [0], [0], [1], [0, 0, 1, 1], [], []>} : vector<5x5xbf16>, vector<5x32xbf16>, vector<5x32xf32> -> vector<5x32xf32>
    %444 = vector.extract_strided_slice %401 {offsets = [0, 64], sizes = [5, 32], strides = [1, 1]} : vector<5x384xf32> to vector<5x32xf32>
    %445 = vector.extract_strided_slice %401 {offsets = [0, 192], sizes = [5, 32], strides = [1, 1]} : vector<5x384xf32> to vector<5x32xf32>
    %446 = vector.extract_strided_slice %401 {offsets = [0, 320], sizes = [5, 32], strides = [1, 1]} : vector<5x384xf32> to vector<5x32xf32>
    %447 = arith.truncf %444 : vector<5x32xf32> to vector<5x32xbf16>
    %448 = arith.truncf %445 : vector<5x32xf32> to vector<5x32xbf16>
    %cst_182 = arith.constant dense<0.000000e+00> : vector<5x5xf32>
    %449 = tpu.matmul %447, %448, %cst_182 {dimension_numbers = #tpu.dot_dimension_numbers<[1], [1], [0], [0], [0, 0, 1, 0], [], []>} : vector<5x32xbf16>, vector<5x32xbf16>, vector<5x5xf32> -> vector<5x5xf32>
    %cst_183 = arith.constant 0.176776692 : f32
    %450 = vector.broadcast %cst_183 : f32 to vector<5x5xf32>
    %451 = arith.mulf %449, %450 : vector<5x5xf32>
    %cst_184 = arith.constant dense<0xFF800000> : vector<5xf32>
    %452 = vector.multi_reduction <maximumf>, %451, %cst_184 [1] : vector<5x5xf32> to vector<5xf32>
    %453 = vector.shape_cast %452 : vector<5xf32> to vector<5x1xf32>
    %454 = vector.broadcast %453 : vector<5x1xf32> to vector<5x5xf32>
    %455 = arith.subf %451, %454 : vector<5x5xf32>
    %456 = math.exp %455 : vector<5x5xf32>
    %cst_185 = arith.constant dense<0.000000e+00> : vector<5xf32>
    %457 = vector.multi_reduction <add>, %456, %cst_185 [1] : vector<5x5xf32> to vector<5xf32>
    %458 = vector.shape_cast %457 : vector<5xf32> to vector<5x1xf32>
    %459 = tpu.reciprocal %458 {approx = true} : vector<5x1xf32> -> vector<5x1xf32>
    %460 = vector.broadcast %459 : vector<5x1xf32> to vector<5x5xf32>
    %461 = arith.mulf %456, %460 : vector<5x5xf32>
    %462 = arith.truncf %461 : vector<5x5xf32> to vector<5x5xbf16>
    %463 = arith.truncf %446 : vector<5x32xf32> to vector<5x32xbf16>
    %cst_186 = arith.constant dense<0.000000e+00> : vector<5x32xf32>
    %464 = tpu.matmul %462, %463, %cst_186 {dimension_numbers = #tpu.dot_dimension_numbers<[1], [0], [0], [1], [0, 0, 1, 1], [], []>} : vector<5x5xbf16>, vector<5x32xbf16>, vector<5x32xf32> -> vector<5x32xf32>
    %465 = vector.extract_strided_slice %401 {offsets = [0, 96], sizes = [5, 32], strides = [1, 1]} : vector<5x384xf32> to vector<5x32xf32>
    %466 = vector.extract_strided_slice %401 {offsets = [0, 224], sizes = [5, 32], strides = [1, 1]} : vector<5x384xf32> to vector<5x32xf32>
    %467 = vector.extract_strided_slice %401 {offsets = [0, 352], sizes = [5, 32], strides = [1, 1]} : vector<5x384xf32> to vector<5x32xf32>
    %468 = arith.truncf %465 : vector<5x32xf32> to vector<5x32xbf16>
    %469 = arith.truncf %466 : vector<5x32xf32> to vector<5x32xbf16>
    %cst_187 = arith.constant dense<0.000000e+00> : vector<5x5xf32>
    %470 = tpu.matmul %468, %469, %cst_187 {dimension_numbers = #tpu.dot_dimension_numbers<[1], [1], [0], [0], [0, 0, 1, 0], [], []>} : vector<5x32xbf16>, vector<5x32xbf16>, vector<5x5xf32> -> vector<5x5xf32>
    %cst_188 = arith.constant 0.176776692 : f32
    %471 = vector.broadcast %cst_188 : f32 to vector<5x5xf32>
    %472 = arith.mulf %470, %471 : vector<5x5xf32>
    %cst_189 = arith.constant dense<0xFF800000> : vector<5xf32>
    %473 = vector.multi_reduction <maximumf>, %472, %cst_189 [1] : vector<5x5xf32> to vector<5xf32>
    %474 = vector.shape_cast %473 : vector<5xf32> to vector<5x1xf32>
    %475 = vector.broadcast %474 : vector<5x1xf32> to vector<5x5xf32>
    %476 = arith.subf %472, %475 : vector<5x5xf32>
    %477 = math.exp %476 : vector<5x5xf32>
    %cst_190 = arith.constant dense<0.000000e+00> : vector<5xf32>
    %478 = vector.multi_reduction <add>, %477, %cst_190 [1] : vector<5x5xf32> to vector<5xf32>
    %479 = vector.shape_cast %478 : vector<5xf32> to vector<5x1xf32>
    %480 = tpu.reciprocal %479 {approx = true} : vector<5x1xf32> -> vector<5x1xf32>
    %481 = vector.broadcast %480 : vector<5x1xf32> to vector<5x5xf32>
    %482 = arith.mulf %477, %481 : vector<5x5xf32>
    %483 = arith.truncf %482 : vector<5x5xf32> to vector<5x5xbf16>
    %484 = arith.truncf %467 : vector<5x32xf32> to vector<5x32xbf16>
    %cst_191 = arith.constant dense<0.000000e+00> : vector<5x32xf32>
    %485 = tpu.matmul %483, %484, %cst_191 {dimension_numbers = #tpu.dot_dimension_numbers<[1], [0], [0], [1], [0, 0, 1, 1], [], []>} : vector<5x5xbf16>, vector<5x32xbf16>, vector<5x32xf32> -> vector<5x32xf32>
    %486 = tpu.concatenate %422, %443, %464, %485 in 1 : vector<5x32xf32>, vector<5x32xf32>, vector<5x32xf32>, vector<5x32xf32> -> vector<5x128xf32>
    %c2_192 = arith.constant 2 : index
    %c0_193 = arith.constant 0 : index
    %c0_194 = arith.constant 0 : index
    %487 = vector.load %arg9[%c2_192, %c0_193, %c0_194] : memref<3x128x128xbf16, #tpu.memory_space<vmem>>, vector<1x128x128xbf16>
    %488 = vector.shape_cast %487 : vector<1x128x128xbf16> to vector<128x128xbf16>
    %489 = arith.truncf %486 : vector<5x128xf32> to vector<5x128xbf16>
    %cst_195 = arith.constant dense<0.000000e+00> : vector<5x128xf32>
    %490 = tpu.matmul %489, %488, %cst_195 {dimension_numbers = #tpu.dot_dimension_numbers<[1], [0], [0], [1], [0, 0, 1, 1], [], []>} : vector<5x128xbf16>, vector<128x128xbf16>, vector<5x128xf32> -> vector<5x128xf32>
    %c2_196 = arith.constant 2 : index
    %c0_197 = arith.constant 0 : index
    %c0_198 = arith.constant 0 : index
    %491 = vector.load %arg10[%c2_196, %c0_197, %c0_198] : memref<3x1x128xf32, #tpu.memory_space<vmem>>, vector<1x1x128xf32>
    %492 = vector.shape_cast %491 : vector<1x1x128xf32> to vector<1x128xf32>
    %493 = vector.broadcast %492 : vector<1x128xf32> to vector<5x128xf32>
    %494 = arith.addf %490, %493 : vector<5x128xf32>
    %495 = arith.addf %494, %369 : vector<5x128xf32>
    %c2_199 = arith.constant 2 : index
    %c0_200 = arith.constant 0 : index
    %c0_201 = arith.constant 0 : index
    %496 = vector.load %arg11[%c2_199, %c0_200, %c0_201] : memref<3x1x128xf32, #tpu.memory_space<vmem>>, vector<1x1x128xf32>
    %497 = vector.shape_cast %496 : vector<1x1x128xf32> to vector<1x128xf32>
    %c2_202 = arith.constant 2 : index
    %c0_203 = arith.constant 0 : index
    %c0_204 = arith.constant 0 : index
    %498 = vector.load %arg12[%c2_202, %c0_203, %c0_204] : memref<3x1x128xf32, #tpu.memory_space<vmem>>, vector<1x1x128xf32>
    %499 = vector.shape_cast %498 : vector<1x1x128xf32> to vector<1x128xf32>
    %cst_205 = arith.constant dense<0.000000e+00> : vector<5xf32>
    %500 = vector.multi_reduction <add>, %495, %cst_205 [1] : vector<5x128xf32> to vector<5xf32>
    %501 = vector.shape_cast %500 : vector<5xf32> to vector<5x1xf32>
    %cst_206 = arith.constant 1.280000e+02 : f32
    %502 = vector.broadcast %cst_206 : f32 to vector<5x1xf32>
    %503 = arith.divf %501, %502 : vector<5x1xf32>
    %504 = vector.broadcast %503 : vector<5x1xf32> to vector<5x128xf32>
    %505 = arith.subf %495, %504 : vector<5x128xf32>
    %506 = arith.mulf %505, %505 : vector<5x128xf32>
    %cst_207 = arith.constant dense<0.000000e+00> : vector<5xf32>
    %507 = vector.multi_reduction <add>, %506, %cst_207 [1] : vector<5x128xf32> to vector<5xf32>
    %508 = vector.shape_cast %507 : vector<5xf32> to vector<5x1xf32>
    %cst_208 = arith.constant 1.280000e+02 : f32
    %509 = vector.broadcast %cst_208 : f32 to vector<5x1xf32>
    %510 = arith.divf %508, %509 : vector<5x1xf32>
    %cst_209 = arith.constant 9.99999974E-6 : f32
    %511 = vector.broadcast %cst_209 : f32 to vector<5x1xf32>
    %512 = arith.addf %510, %511 : vector<5x1xf32>
    %513 = math.rsqrt %512 : vector<5x1xf32>
    %514 = vector.broadcast %513 : vector<5x1xf32> to vector<5x128xf32>
    %515 = arith.mulf %505, %514 : vector<5x128xf32>
    %516 = vector.broadcast %497 : vector<1x128xf32> to vector<5x128xf32>
    %517 = arith.mulf %515, %516 : vector<5x128xf32>
    %518 = vector.broadcast %499 : vector<1x128xf32> to vector<5x128xf32>
    %519 = arith.addf %517, %518 : vector<5x128xf32>
    %c2_210 = arith.constant 2 : index
    %c0_211 = arith.constant 0 : index
    %c0_212 = arith.constant 0 : index
    %520 = vector.load %arg13[%c2_210, %c0_211, %c0_212] : memref<3x128x256xbf16, #tpu.memory_space<vmem>>, vector<1x128x256xbf16>
    %521 = vector.shape_cast %520 : vector<1x128x256xbf16> to vector<128x256xbf16>
    %522 = arith.truncf %519 : vector<5x128xf32> to vector<5x128xbf16>
    %cst_213 = arith.constant dense<0.000000e+00> : vector<5x256xf32>
    %523 = tpu.matmul %522, %521, %cst_213 {dimension_numbers = #tpu.dot_dimension_numbers<[1], [0], [0], [1], [0, 0, 1, 1], [], []>} : vector<5x128xbf16>, vector<128x256xbf16>, vector<5x256xf32> -> vector<5x256xf32>
    %c2_214 = arith.constant 2 : index
    %c0_215 = arith.constant 0 : index
    %c0_216 = arith.constant 0 : index
    %524 = vector.load %arg14[%c2_214, %c0_215, %c0_216] : memref<3x1x256xf32, #tpu.memory_space<vmem>>, vector<1x1x256xf32>
    %525 = vector.shape_cast %524 : vector<1x1x256xf32> to vector<1x256xf32>
    %526 = vector.broadcast %525 : vector<1x256xf32> to vector<5x256xf32>
    %527 = arith.addf %523, %526 : vector<5x256xf32>
    %cst_217 = arith.constant 5.000000e-01 : f32
    %528 = vector.broadcast %cst_217 : f32 to vector<5x256xf32>
    %529 = arith.mulf %528, %527 : vector<5x256xf32>
    %cst_218 = arith.constant 4.471500e-02 : f32
    %530 = vector.broadcast %cst_218 : f32 to vector<5x256xf32>
    %531 = arith.mulf %530, %527 : vector<5x256xf32>
    %532 = arith.mulf %531, %527 : vector<5x256xf32>
    %533 = arith.mulf %532, %527 : vector<5x256xf32>
    %534 = arith.addf %527, %533 : vector<5x256xf32>
    %cst_219 = arith.constant 0.797884583 : f32
    %535 = vector.broadcast %cst_219 : f32 to vector<5x256xf32>
    %536 = arith.mulf %535, %534 : vector<5x256xf32>
    %537 = math.tanh %536 : vector<5x256xf32>
    %cst_220 = arith.constant 1.000000e+00 : f32
    %538 = vector.broadcast %cst_220 : f32 to vector<5x256xf32>
    %539 = arith.addf %538, %537 : vector<5x256xf32>
    %540 = arith.mulf %529, %539 : vector<5x256xf32>
    %c2_221 = arith.constant 2 : index
    %c0_222 = arith.constant 0 : index
    %c0_223 = arith.constant 0 : index
    %541 = vector.load %arg15[%c2_221, %c0_222, %c0_223] : memref<3x256x128xbf16, #tpu.memory_space<vmem>>, vector<1x256x128xbf16>
    %542 = vector.shape_cast %541 : vector<1x256x128xbf16> to vector<256x128xbf16>
    %543 = arith.truncf %540 : vector<5x256xf32> to vector<5x256xbf16>
    %cst_224 = arith.constant dense<0.000000e+00> : vector<5x128xf32>
    %544 = tpu.matmul %543, %542, %cst_224 {dimension_numbers = #tpu.dot_dimension_numbers<[1], [0], [0], [1], [0, 0, 1, 1], [], []>} : vector<5x256xbf16>, vector<256x128xbf16>, vector<5x128xf32> -> vector<5x128xf32>
    %c2_225 = arith.constant 2 : index
    %c0_226 = arith.constant 0 : index
    %c0_227 = arith.constant 0 : index
    %545 = vector.load %arg16[%c2_225, %c0_226, %c0_227] : memref<3x1x128xf32, #tpu.memory_space<vmem>>, vector<1x1x128xf32>
    %546 = vector.shape_cast %545 : vector<1x1x128xf32> to vector<1x128xf32>
    %547 = vector.broadcast %546 : vector<1x128xf32> to vector<5x128xf32>
    %548 = arith.addf %544, %547 : vector<5x128xf32>
    %549 = arith.addf %548, %495 : vector<5x128xf32>
    %550 = vector.extract_strided_slice %549 {offsets = [0, 0], sizes = [1, 128], strides = [1, 1]} : vector<5x128xf32> to vector<1x128xf32>
    %c0_228 = arith.constant 0 : index
    %c0_229 = arith.constant 0 : index
    %551 = vector.load %arg17[%c0_228, %c0_229] : memref<1x128xf32, #tpu.memory_space<vmem>>, vector<1x128xf32>
    %c0_230 = arith.constant 0 : index
    %c0_231 = arith.constant 0 : index
    %552 = vector.load %arg18[%c0_230, %c0_231] : memref<1x128xf32, #tpu.memory_space<vmem>>, vector<1x128xf32>
    %cst_232 = arith.constant dense<0.000000e+00> : vector<1xf32>
    %553 = vector.multi_reduction <add>, %550, %cst_232 [1] : vector<1x128xf32> to vector<1xf32>
    %554 = vector.shape_cast %553 : vector<1xf32> to vector<1x1xf32>
    %cst_233 = arith.constant 1.280000e+02 : f32
    %555 = vector.broadcast %cst_233 : f32 to vector<1x1xf32>
    %556 = arith.divf %554, %555 : vector<1x1xf32>
    %557 = vector.broadcast %556 : vector<1x1xf32> to vector<1x128xf32>
    %558 = arith.subf %550, %557 : vector<1x128xf32>
    %559 = arith.mulf %558, %558 : vector<1x128xf32>
    %cst_234 = arith.constant dense<0.000000e+00> : vector<1xf32>
    %560 = vector.multi_reduction <add>, %559, %cst_234 [1] : vector<1x128xf32> to vector<1xf32>
    %561 = vector.shape_cast %560 : vector<1xf32> to vector<1x1xf32>
    %cst_235 = arith.constant 1.280000e+02 : f32
    %562 = vector.broadcast %cst_235 : f32 to vector<1x1xf32>
    %563 = arith.divf %561, %562 : vector<1x1xf32>
    %cst_236 = arith.constant 9.99999974E-6 : f32
    %564 = vector.broadcast %cst_236 : f32 to vector<1x1xf32>
    %565 = arith.addf %563, %564 : vector<1x1xf32>
    %566 = math.rsqrt %565 : vector<1x1xf32>
    %567 = vector.broadcast %566 : vector<1x1xf32> to vector<1x128xf32>
    %568 = arith.mulf %558, %567 : vector<1x128xf32>
    %569 = arith.mulf %568, %551 : vector<1x128xf32>
    %570 = arith.addf %569, %552 : vector<1x128xf32>
    %c0_237 = arith.constant 0 : index
    %c0_238 = arith.constant 0 : index
    %571 = vector.load %arg19[%c0_237, %c0_238] : memref<128x128xbf16, #tpu.memory_space<vmem>>, vector<128x128xbf16>
    %572 = arith.truncf %570 : vector<1x128xf32> to vector<1x128xbf16>
    %cst_239 = arith.constant dense<0.000000e+00> : vector<1x128xf32>
    %573 = tpu.matmul %572, %571, %cst_239 {dimension_numbers = #tpu.dot_dimension_numbers<[1], [0], [0], [1], [0, 0, 1, 1], [], []>} : vector<1x128xbf16>, vector<128x128xbf16>, vector<1x128xf32> -> vector<1x128xf32>
    %c0_240 = arith.constant 0 : index
    %c0_241 = arith.constant 0 : index
    %574 = vector.load %arg20[%c0_240, %c0_241] : memref<1x128xf32, #tpu.memory_space<vmem>>, vector<1x128xf32>
    %575 = arith.addf %573, %574 : vector<1x128xf32>
    %c0_242 = arith.constant 0 : index
    %c0_243 = arith.constant 0 : index
    %c0_244 = arith.constant 0 : index
    %576 = vector.load %arg21[%c0_242, %c0_243, %c0_244] : memref<1x1x128xf32, #tpu.memory_space<vmem>>, vector<1x1x128xf32>
    %577 = vector.shape_cast %576 : vector<1x1x128xf32> to vector<1x128xf32>
    %578 = vector.shape_cast %575 : vector<1x128xf32> to vector<1x1x128xf32>
    tpu.vector_store %arg21[%c0_242, %c0_243, %c0_244], %578 {strides = array<i32>} : memref<1x1x128xf32, #tpu.memory_space<vmem>>, vector<1x1x128xf32>,
    return
  }
  func.func @transform_0(%arg0: i32) -> (i32, i32, i32) {
    %c0_i32 = arith.constant 0 : i32
    %c0_i32_0 = arith.constant 0 : i32
    %c0_i32_1 = arith.constant 0 : i32
    return %arg0, %c0_i32, %c0_i32_0 : i32, i32, i32
  }
  func.func @transform_1(%arg0: i32) -> (i32, i32) {
    %c0_i32 = arith.constant 0 : i32
    %c0_i32_0 = arith.constant 0 : i32
    %c0_i32_1 = arith.constant 0 : i32
    return %c0_i32, %c0_i32_0 : i32, i32
  }
  func.func @transform_2(%arg0: i32) -> (i32, i32) {
    %c0_i32 = arith.constant 0 : i32
    %c0_i32_0 = arith.constant 0 : i32
    %c0_i32_1 = arith.constant 0 : i32
    return %c0_i32, %c0_i32_0 : i32, i32
  }
  func.func @transform_3(%arg0: i32) -> (i32, i32) {
    %c0_i32 = arith.constant 0 : i32
    %c0_i32_0 = arith.constant 0 : i32
    %c0_i32_1 = arith.constant 0 : i32
    return %c0_i32, %c0_i32_0 : i32, i32
  }
  func.func @transform_4(%arg0: i32) -> (i32, i32, i32) {
    %c0_i32 = arith.constant 0 : i32
    %c0_i32_0 = arith.constant 0 : i32
    %c0_i32_1 = arith.constant 0 : i32
    %c0_i32_2 = arith.constant 0 : i32
    return %c0_i32, %c0_i32_0, %c0_i32_1 : i32, i32, i32
  }
  func.func @transform_5(%arg0: i32) -> (i32, i32, i32) {
    %c0_i32 = arith.constant 0 : i32
    %c0_i32_0 = arith.constant 0 : i32
    %c0_i32_1 = arith.constant 0 : i32
    %c0_i32_2 = arith.constant 0 : i32
    return %c0_i32, %c0_i32_0, %c0_i32_1 : i32, i32, i32
  }
  func.func @transform_6(%arg0: i32) -> (i32, i32, i32) {
    %c0_i32 = arith.constant 0 : i32
    %c0_i32_0 = arith.constant 0 : i32
    %c0_i32_1 = arith.constant 0 : i32
    %c0_i32_2 = arith.constant 0 : i32
    return %c0_i32, %c0_i32_0, %c0_i32_1 : i32, i32, i32
  }
  func.func @transform_7(%arg0: i32) -> (i32, i32, i32) {
    %c0_i32 = arith.constant 0 : i32
    %c0_i32_0 = arith.constant 0 : i32
    %c0_i32_1 = arith.constant 0 : i32
    %c0_i32_2 = arith.constant 0 : i32
    return %c0_i32, %c0_i32_0, %c0_i32_1 : i32, i32, i32
  }
  func.func @transform_8(%arg0: i32) -> (i32, i32, i32) {
    %c0_i32 = arith.constant 0 : i32
    %c0_i32_0 = arith.constant 0 : i32
    %c0_i32_1 = arith.constant 0 : i32
    %c0_i32_2 = arith.constant 0 : i32
    return %c0_i32, %c0_i32_0, %c0_i32_1 : i32, i32, i32
  }
  func.func @transform_9(%arg0: i32) -> (i32, i32, i32) {
    %c0_i32 = arith.constant 0 : i32
    %c0_i32_0 = arith.constant 0 : i32
    %c0_i32_1 = arith.constant 0 : i32
    %c0_i32_2 = arith.constant 0 : i32
    return %c0_i32, %c0_i32_0, %c0_i32_1 : i32, i32, i32
  }
  func.func @transform_10(%arg0: i32) -> (i32, i32, i32) {
    %c0_i32 = arith.constant 0 : i32
    %c0_i32_0 = arith.constant 0 : i32
    %c0_i32_1 = arith.constant 0 : i32
    %c0_i32_2 = arith.constant 0 : i32
    return %c0_i32, %c0_i32_0, %c0_i32_1 : i32, i32, i32
  }
  func.func @transform_11(%arg0: i32) -> (i32, i32, i32) {
    %c0_i32 = arith.constant 0 : i32
    %c0_i32_0 = arith.constant 0 : i32
    %c0_i32_1 = arith.constant 0 : i32
    %c0_i32_2 = arith.constant 0 : i32
    return %c0_i32, %c0_i32_0, %c0_i32_1 : i32, i32, i32
  }
  func.func @transform_12(%arg0: i32) -> (i32, i32, i32) {
    %c0_i32 = arith.constant 0 : i32
    %c0_i32_0 = arith.constant 0 : i32
    %c0_i32_1 = arith.constant 0 : i32
    %c0_i32_2 = arith.constant 0 : i32
    return %c0_i32, %c0_i32_0, %c0_i32_1 : i32, i32, i32
  }
  func.func @transform_13(%arg0: i32) -> (i32, i32, i32) {
    %c0_i32 = arith.constant 0 : i32
    %c0_i32_0 = arith.constant 0 : i32
    %c0_i32_1 = arith.constant 0 : i32
    %c0_i32_2 = arith.constant 0 : i32
    return %c0_i32, %c0_i32_0, %c0_i32_1 : i32, i32, i32
  }
  func.func @transform_14(%arg0: i32) -> (i32, i32, i32) {
    %c0_i32 = arith.constant 0 : i32
    %c0_i32_0 = arith.constant 0 : i32
    %c0_i32_1 = arith.constant 0 : i32
    %c0_i32_2 = arith.constant 0 : i32
    return %c0_i32, %c0_i32_0, %c0_i32_1 : i32, i32, i32
  }
  func.func @transform_15(%arg0: i32) -> (i32, i32, i32) {
    %c0_i32 = arith.constant 0 : i32
    %c0_i32_0 = arith.constant 0 : i32
    %c0_i32_1 = arith.constant 0 : i32
    %c0_i32_2 = arith.constant 0 : i32
    return %c0_i32, %c0_i32_0, %c0_i32_1 : i32, i32, i32
  }
  func.func @transform_16(%arg0: i32) -> (i32, i32) {
    %c0_i32 = arith.constant 0 : i32
    %c0_i32_0 = arith.constant 0 : i32
    %c0_i32_1 = arith.constant 0 : i32
    return %c0_i32, %c0_i32_0 : i32, i32
  }
  func.func @transform_17(%arg0: i32) -> (i32, i32) {
    %c0_i32 = arith.constant 0 : i32
    %c0_i32_0 = arith.constant 0 : i32
    %c0_i32_1 = arith.constant 0 : i32
    return %c0_i32, %c0_i32_0 : i32, i32
  }
  func.func @transform_18(%arg0: i32) -> (i32, i32) {
    %c0_i32 = arith.constant 0 : i32
    %c0_i32_0 = arith.constant 0 : i32
    %c0_i32_1 = arith.constant 0 : i32
    return %c0_i32, %c0_i32_0 : i32, i32
  }
  func.func @transform_19(%arg0: i32) -> (i32, i32) {
    %c0_i32 = arith.constant 0 : i32
    %c0_i32_0 = arith.constant 0 : i32
    %c0_i32_1 = arith.constant 0 : i32
    return %c0_i32, %c0_i32_0 : i32, i32
  }
  func.func @transform_20(%arg0: i32) -> (i32, i32, i32) {
    %c0_i32 = arith.constant 0 : i32
    %c0_i32_0 = arith.constant 0 : i32
    %c0_i32_1 = arith.constant 0 : i32
    return %arg0, %c0_i32, %c0_i32_0 : i32, i32, i32
  }
}

</mosaic_0001>

<bundles_post_ra>
// kernel: _lambda_.1
= control target key start
LH: loop header
LB: loop body
LE: loop exit
PB: predicated region body
PF: predicated region fallthrough
CT: control target
= control target key end

     0   :  { %s7402_s0 = inlined_call_operand.vmem [shape: f32[2,5,192], index: 0, kind: input, shape index: {}]   ;;  %s7403_s1 = inlined_call_operand.vmem [shape: f32[5,128], index: 1, kind: input, shape index: {}]   ;;  %s7404_s2 = inlined_call_operand.vmem [shape: bf16[192,128], index: 2, kind: input, shape index: {}]   ;;  %s7405_s3 = inlined_call_operand.vmem [shape: f32[1,128], index: 3, kind: input, shape index: {}]   ;;  %s7406_s4 = inlined_call_operand.vmem [shape: f32[3,1,128], index: 4, kind: input, shape index: {}]   ;;  %s7407_s5 = inlined_call_operand.vmem [shape: f32[3,1,128], index: 5, kind: input, shape index: {}]   ;;  %s7408_s6 = inlined_call_operand.vmem [shape: bf16[3,128,384], index: 6, kind: input, shape index: {}]   ;;  %s7409_s7 = inlined_call_operand.vmem [shape: f32[3,1,384], index: 7, kind: input, shape index: {}]   ;;  %s7410_s8 = inlined_call_operand.vmem [shape: bf16[3,128,128], index: 8, kind: input, shape index: {}]   ;;  %s7411_s9 = inlined_call_operand.vmem [shape: f32[3,1,128], index: 9, kind: input, shape index: {}]   ;;  %s7412_s10 = inlined_call_operand.vmem [shape: f32[3,1,128], index: 10, kind: input, shape index: {}]   ;;  %s7413_s11 = inlined_call_operand.vmem [shape: f32[3,1,128], index: 11, kind: input, shape index: {}]   ;;  %s7414_s12 = inlined_call_operand.vmem [shape: bf16[3,128,256], index: 12, kind: input, shape index: {}]   ;;  %s7415_s13 = inlined_call_operand.vmem [shape: f32[3,1,256], index: 13, kind: input, shape index: {}]   ;;  %s7416_s14 = inlined_call_operand.vmem [shape: bf16[3,256,128], index: 14, kind: input, shape index: {}]   ;;  %s7417_s15 = inlined_call_operand.vmem [shape: f32[3,1,128], index: 15, kind: input, shape index: {}]   ;;  %s7418_s16 = inlined_call_operand.vmem [shape: f32[1,128], index: 16, kind: input, shape index: {}]   ;;  %s7419_s17 = inlined_call_operand.vmem [shape: f32[1,128], index: 17, kind: input, shape index: {}]   ;;  %s7420_s18 = inlined_call_operand.vmem [shape: bf16[128,128], index: 18, kind: input, shape index: {}]   ;;  %s7421_s19 = inlined_call_operand.vmem [shape: f32[1,128], index: 19, kind: input, shape index: {}]   ;;  %s7422_s20 = inlined_call_operand.hbm [shape: f32[2,1,128], index: 20, kind: output, shape index: {}]  }
   0x1   :  { %7439 = sst [smem:[#allocation11_spill]] %s7402_s0 }
   0x2   :  { %7440 = sst [smem:[#allocation12_spill]] %s7403_s1 }
   0x3   :  { %7441 = sst [smem:[#allocation13_spill]] %s7404_s2 }
   0x4   :  { %7442 = sst [smem:[#allocation14_spill]] %s7405_s3 }
   0x5   :  { %7443 = sst [smem:[#allocation15_spill]] %s7406_s4 }
   0x6   :  { %7444 = sst [smem:[#allocation16_spill]] %s7422_s20 }
   0x7   :  { %25 = vsyncpa [#allocation3], 0 }
   0x8   :  { %27 = vsyncpa [#allocation3 + $0x1], 0  ;;  %s6205_s1 = smov 0   ;;  %s6207_s22 = smov 0  }
   0x9   :  { %s6209_s23 = smov 0   ;;  %s6211_s24 = smov 0  }
   0xa LB: > { %7445 = sst [smem:[#allocation5_spill]] %s6078_s1  ;;  %s6226_s2 = sadd.s32 4294967295, %s6090_s24   ;;  %s6090_s24 = sphi %s6211_s24, %s7466_s24   ;;  %s6086_s23 = sphi %s6209_s23, %s7468_s23   ;;  %s6082_s22 = sphi %s6207_s22, %s7470_s22   ;;  %s6078_s1 = sphi %s6205_s1, %s7469_s1  }
   0xb   : > { %7446 = sst [smem:[#allocation6_spill]] %s6086_s23  ;;  %s4713_s25 = sadd.s32 4294967294, %s6090_s24  }
   0xc   : > { %7447 = sst [smem:[#allocation7_spill]] %s6090_s24  ;;  %s6230_s3 = sadd.s32 1, %s6090_s24  }
   0xd   : > { %7448 = sst [smem:[#allocation8_spill]] %s6230_s3  ;;  %s465_s26 = sadd.s32 1, %s6086_s23 }
   0xe   : > { %s462_s27 = ssub.s32 %s6090_s24, %s6230_s3  ;;  %p475_p0 = scmp.ne.s32.totalorder %s6086_s23, %s6082_s22 }
   0xf   : > { %p463_p1 = scmp.eq.s32.totalorder %s462_s27, 0  ;;  %p476_p2 = scmp.eq.s32.totalorder %s6226_s2, 1 }
  0x10   : > { %p481_p3 = scmp.ne.s32.totalorder %s6082_s22, %s6078_s1  ;;  %p482_p4 = scmp.eq.s32.totalorder %s4713_s25, 1 }
  0x11   : > { %s6241_s28 = scalar_select %p463_p1, %s6086_s23, %s465_s26  }
  0x12   : > { %p6243_p5 = por %p476_p2, %p475_p0  ;;  %p6247_p6 = por %p482_p4, %p481_p3 }
  0x13   : > { %7449 = sst [smem:[#allocation9_spill]] %s6241_s28  ;;  %p4716_p7 = scmp.ge.s32.totalorder %s6090_s24, 1 }
  0x14   : > { %s7451_s29 = scalar_select %p6247_p6, 1, 0 }
  0x15   : > { %p565_p8 = scmp.lt.s32.totalorder %s6090_s24, 3 }
  0x16   : > { %7452 = sst [smem:[#allocation10_spill]] %s7451_s29 }
  0x17   : > { %p566_p9 = pnand %p4716_p7, %p565_p8 }
  0x18   : > { %s7453_s21 = sld [smem:[#allocation13_spill]] (!%p566_p9)  ;;  %v6092_v1 = vmov (!%p566_p9), 0   ;;  %p622_p10 = scmp.lt.s32.totalorder (!%p566_p9), %s6226_s2, 1  ;;  %vm735_vm0 = vcmask (!%p566_p9), 523264   ;;  %vm783_vm1 = vcmask (!%p566_p9), 1044480   ;;  %v6093_v43 = vmov (!%p566_p9), 0.0  }
  0x19   : > { %569 = sbr.rel (%p566_p9) target bundleno = 9680 (0x25d0), region = 100  ;;  %739 = vmatprep.subr.bf16.mxu0 (!%p566_p9), %v6092_v1  ;;  %1022 = vmatprep.mubr.bf16.mxu1 (!%p566_p9), %v6092_v1  ;;  %s7454_s29 = sld [smem:[#allocation11_spill]] (!%p566_p9)  ;;  %v5706_v26 = vld [vmem:[%s7408_s6 + $0x4] ss:$12 sps:$4 sm:$0xff] (!%p566_p9)   ;;  %v5708_v27 = vld [vmem:[%s7408_s6] ss:$12 sps:$4 sm:$0xff] (!%p566_p9)  }
  0x1a   : > { %s7455_s24 = sld [smem:[#allocation14_spill]] (!%p566_p9)  ;;  %v5709_v28 = vld [vmem:[%s7408_s6 + $0x1c] ss:$12 sps:$4 sm:$0xff] (!%p566_p9)   ;;  %990 = vmatprep.subr.bf16.mxu1 (!%p566_p9), %v5706_v26  ;;  %v5711_v29 = vld [vmem:[%s7408_s6 + $0x18] ss:$12 sps:$4 sm:$0xff] (!%p566_p9)   ;;  %vm6094_vm2 = vmmov (!%p566_p9), 0  }
  0x1b   : > { %991 = vmatpush1.bf16.msra.mxu1 (!%p566_p9), %v5708_v27  ;;  %v5712_v30 = vld [vmem:[%s7408_s6 + $0x34] ss:$12 sps:$4 sm:$0xff] (!%p566_p9)   ;;  %v5714_v31 = vld [vmem:[%s7408_s6 + $0x30] ss:$12 sps:$4 sm:$0xff] (!%p566_p9)   ;;  %v5715_v37 = vld [vmem:[%s7408_s6 + $0x4c] ss:$12 sps:$4 sm:$0xff] (!%p566_p9)  }
  0x1c   : > { %992 = vmatprep.subr.bf16.mxu1 (!%p566_p9), %v5709_v28  ;;  %v5717_v38 = vld [vmem:[%s7408_s6 + $0x48] ss:$12 sps:$4 sm:$0xff] (!%p566_p9)   ;;  %v5718_v39 = vld [vmem:[%s7408_s6 + $0x64] ss:$12 sps:$4 sm:$0xff] (!%p566_p9)   ;;  %v5720_v40 = vld [vmem:[%s7408_s6 + $0x60] ss:$12 sps:$4 sm:$0xff] (!%p566_p9)  }
  0x1d   : > { %v5721_v41 = vld [vmem:[%s7408_s6 + $0x7c] ss:$12 sps:$4 sm:$0xff] (!%p566_p9)   ;;  %v5723_v42 = vld [vmem:[%s7408_s6 + $0x78] ss:$12 sps:$4 sm:$0xff] (!%p566_p9)   ;;  %v5724_v44 = vld [vmem:[%s7408_s6 + $0x94] ss:$12 sps:$4 sm:$0xff] (!%p566_p9)  }
  0x1e   : > { %v5694_v0 = vld [vmem:[%s7453_s21] sm:$0xff] (!%p566_p9)   ;;  %v5695_v2 = vld [vmem:[%s7453_s21 + $0x8] sm:$0xff] (!%p566_p9)   ;;  %v5696_v3 = vld [vmem:[%s7453_s21 + $0x10] sm:$0xff] (!%p566_p9)   ;;  %s7457_s30 = sld [smem:[#allocation15_spill]] (!%p566_p9)  ;;  %vm1073_vm3 = vcmask (!%p566_p9), 261120   ;;  %vm1139_vm4 = vcmask (!%p566_p9), 1041408  }
  0x1f   : > { %740 = vmatpush1.bf16.msra.mxu0 (!%p566_p9), %v5694_v0  ;;  %v5697_v4 = vld [vmem:[%s7453_s21 + $0x18] sm:$0xff] (!%p566_p9)   ;;  %v5698_v5 = vld [vmem:[%s7453_s21 + $0x20] sm:$0xff] (!%p566_p9)   ;;  %v5699_v8 = vld [vmem:[%s7453_s21 + $0x28] sm:$0xff] (!%p566_p9)   ;;  %993 = vmatpush1.bf16.msra.mxu1 (!%p566_p9), %v5711_v29  ;;  %vm1140_vm5 = vcmask (!%p566_p9), 1042432   ;;  %vm1121_vm6 = vcmask (!%p566_p9), 36864   ;;  %vm1135_vm7 = vcmask (!%p566_p9), 39936  }
  0x20   : > { %741 = vmatprep.subr.bf16.mxu0 %v6092_v1  ;;  %s623_s27 = scalar_select %p622_p10, %s6226_s2, 1  ;;  %v5700_v9 = vld [vmem:[%s7453_s21 + $0x30] sm:$0xff]   ;;  %v5701_v10 = vld [vmem:[%s7453_s21 + $0x38] sm:$0xff]   ;;  %v5702_v11 = vld [vmem:[%s7453_s21 + $0x40] sm:$0xff]   ;;  %994 = vmatprep.subr.bf16.mxu1 %v5712_v30  ;;  %vm1536_vm8 = vcmask 785408   ;;  %vm4522_vm9 = vcmask 1040384  }
  0x21   : > { %v5703_v12 = vld [vmem:[%s7453_s21 + $0x48] sm:$0xff]   ;;  %v5704_v13 = vld [vmem:[%s7453_s21 + $0x50] sm:$0xff]   ;;  %v5705_v14 = vld [vmem:[%s7453_s21 + $0x58] sm:$0xff]   ;;  %s7459_s20 = smov 64   ;;  %s620_s3 = sand.u32 1, %s6082_s22  }
  0x22   : > { %s5186_s0 = sshll.u32 %s623_s27, 4  ;;  %v4719_v17 = vld [vmem:[%s7455_s24] ss:$0 sm:$0xff]  ;;  %v5726_v45 = vld [vmem:[%s7408_s6 + $0x90] ss:$12 sps:$4 sm:$0xff]   ;;  %s7436_s24 = smov 96  }
  0x23   : > { %742 = vmatpush1.bf16.msra.mxu0 %v5695_v2  ;;  %s6271_s1 = scalar_lea.vmem %s7454_s29, %s5186_s0  ;;  %s7456_s0 = sld [smem:[#allocation12_spill]]  ;;  %995 = vmatpush1.bf16.msra.mxu1 %v5714_v31  ;;  %v5727_v46 = vld [vmem:[%s7408_s6 + $0xac] ss:$12 sps:$4 sm:$0xff]   ;;  %v5729_v47 = vld [vmem:[%s7408_s6 + $0xa8] ss:$12 sps:$4 sm:$0xff]  }
  0x24   : > { %743 = vmatprep.subr.bf16.mxu0 %v6092_v1  ;;  %v629_v6 = vld [vmem:[%s6271_s1 + $0x8] sm:$0x1f]  ;;  %v628_v15 = vld [vmem:[%s6271_s1] sm:$0x1f]  ;;  %996 = vmatprep.subr.bf16.mxu1 %v5715_v37  ;;  %v5733_v61 = vld [vmem:[%s7408_s6 + $0x50] ss:$12 sps:$4 sm:$0xff]  }
  0x25   : > { %v655_v7 = vpack.c.bf16 %v629_v6, %v629_v6  ;;  %v654_v16 = vpack.c.bf16 %v628_v15, %v628_v15  ;;  %v4733_v52 = vld [vmem:[%s7457_s30] ss:$0 sm:$0xff]  ;;  %v5730_v57 = vld [vmem:[%s7408_s6 + $0x8] ss:$12 sps:$4 sm:$0xff]   ;;  %v5732_v60 = vld [vmem:[%s7408_s6 + $0x38] ss:$12 sps:$4 sm:$0xff]  }
  0x26   : > { %v4734_v54 = vld [vmem:[%s7407_s5] ss:$0 sm:$0xff]  ;;  %v5734_v62 = vld [vmem:[%s7408_s6 + $0x68] ss:$12 sps:$4 sm:$0xff]   ;;  %v5736_v0 = vld [vmem:[%s7408_s6 + $0x98] ss:$12 sps:$4 sm:$0xff]  }
  0x27   : > { %744 = vmatpush1.bf16.msra.mxu0 %v5696_v3  ;;  %4732 = vmatprep.mubr.msk.bf16.mxu0 %vm735_vm0, %v655_v7  ;;  %v5731_v59 = vld [vmem:[%s7408_s6 + $0x20] ss:$12 sps:$4 sm:$0xff]   ;;  %v5737_v2 = vld [vmem:[%s7408_s6 + $0xb0] ss:$12 sps:$4 sm:$0xff]   ;;  %v847_v3 = vlaneseq  ;;  %s7434_s27 = smov 32   ;;  %s7458_s29 = smov 32  }
  0x28   : > { %745 = vmatprep.subr.bf16.mxu0 %v6092_v1  ;;  %997 = vmatpush1.bf16.msra.mxu1 %v5717_v38  ;;  %v5735_v63 = vld [vmem:[%s7408_s6 + $0x80] ss:$12 sps:$4 sm:$0xff]   ;;  %s7461_s1 = sld [smem:[#allocation16_spill]]  ;;  %s4646_s23 = scalar_lea.sflag [#allocation3], %s620_s3 }
  0x29   : > { %v779_v19 = vld [vmem:[%s7456_s0] sm:$0x1f]  ;;  %998 = vmatprep.subr.bf16.mxu1 %v5718_v39  ;;  %s7432_s0 = smov 64   ;;  %s6099_s28 = smov [#allocation2]  }
  0x2a   : > { %v845_v6 = vld [vmem:[%s7409_s7] sm:$0x7] }
  0x2b   : > { %746 = vmatpush1.bf16.msra.mxu0 %v5697_v4  ;;  %v848_v4 = vshrl.u32 %v847_v3, 7 }
  0x2c   : > { %747 = vmatprep.subr.bf16.mxu0 %v6092_v1  ;;  %999 = vmatpush1.bf16.msra.mxu1 %v5720_v40 }
  0x2d   : > { %1000 = vmatprep.subr.bf16.mxu1 %v5721_v41 }
  0x2e   : > { %s7462_s25 = smov %s7461_s1 }
  0x2f   : > { %748 = vmatpush1.bf16.msra.mxu0 %v5698_v5  ;;  %v6418_v5 = vsub.s32 1, %v848_v4 }
  0x30   : > { %749 = vmatprep.subr.bf16.mxu0 %v6092_v1  ;;  %1001 = vmatpush1.bf16.msra.mxu1 %v5723_v42 }
  0x31   : > { %1002 = vmatprep.subr.bf16.mxu1 %v5724_v44  ;;  %v854_v7 = vrot.slane %v845_v6, %v6418_v5 }
  0x33   : > { %750 = vmatpush1.bf16.msra.mxu0 %v5699_v8  ;;  %v6424_v8 = vsub.s32 0, %v848_v4 }
  0x34   : > { %751 = vmatprep.subr.bf16.mxu0 %v6092_v1  ;;  %1003 = vmatpush1.bf16.msra.mxu1 %v5726_v45 }
  0x35   : > { %1004 = vmatprep.subr.bf16.mxu1 %v5727_v46 }
  0x37   : > { %752 = vmatpush1.bf16.msra.mxu0 %v5700_v9 }
  0x38   : > { %753 = vmatprep.subr.bf16.mxu0 %v6092_v1  ;;  %1005 = vmatpush1.bf16.msra.mxu1 %v5729_v47 }
  0x39   : > { %5364 = vmatprep.subr.bf16.mxu1 %v6093_v43 }
  0x3b   : > { %754 = vmatpush1.bf16.msra.mxu0 %v5701_v10 }
  0x3c   : > { %755 = vmatprep.subr.bf16.mxu0 %v6092_v1 }
  0x3f   : > { %756 = vmatpush1.bf16.msra.mxu0 %v5702_v11 }
  0x40   : > { %757 = vmatprep.subr.bf16.mxu0 %v6092_v1 }
  0x43   : > { %758 = vmatpush1.bf16.msra.mxu0 %v5703_v12 }
  0x44   : > { %759 = vmatprep.subr.bf16.mxu0 %v6092_v1 }
  0x47   : > { %760 = vmatpush1.bf16.msra.mxu0 %v5704_v13 }
  0x48   : > { %761 = vmatprep.subr.bf16.mxu0 %v6092_v1 }
  0x4b   : > { %762 = vmatpush1.bf16.msra.mxu0 %v5705_v14  ;;  %v850_v14 = vrot.slane %v845_v6, %v6424_v8 }
  0x4c   : > { %5384 = vmatprep.subr.bf16.mxu0 %v6093_v43 }
  0x4e   : > { %772 = vmatmul.mubr.bf16.vlgmr.msra.gmra.mrb[0].mxu0 %v654_v16 }
  0x4f   : > { %5386 = vmatprep.mubr.msk.bf16.mxu0 %vm6094_vm2, %v6093_v43 }
 0x121   : > { %v773_v18 = vpop.f32.mrb[0].mxu0 }
 0x122   : > { %v774_v20 = vadd.f32 %v4719_v17, %v773_v18  ;;  %v775_v21 = vpop.f32.mrb[1].mxu0 }
 0x123   : > { %v776_v22 = vpop.f32.mrb[2].mxu0  ;;  %v6097_v21 = vmov 65535  }
 0x124   : > { %v6318_v23 = vadd.f32 %v779_v19, %v774_v20  ;;  %v777_v24 = vpop.f32.mrb[3].mxu0  ;;  %v6434_v19 = vsub.s32 2, %v848_v4  ;;  %v1141_v22 = vsel %vm1139_vm4, 4294967295, %v6097_v21 }
 0x125   : > { %v6437_v28 = vsel %vm1140_vm5, %v1141_v22, 0 }
 0x126   : > { %v784_v25 = vsel %vm783_vm1, %v6318_v23, 0.0  ;;  %v858_v20 = vrot.slane %v845_v6, %v6434_v19 }
 0x127   : > { %785 = vadd.xlane.f32.xlu0 %v784_v25 }
 0x1b4   : > { %v786_v32 = vpop.xlane.xlu0 %785 }
 0x1b5   : > { %v788_v33 = vmul.f32 0.0078125, %v786_v32 }
 0x1b7   : > { %v789_v34 = vsub.f32 %v6318_v23, %v788_v33 }
 0x1b9   : > { %v790_v35 = vmul.f32 %v789_v34, %v789_v34 }
 0x1bb   : > { %v791_v36 = vsel %vm783_vm1, %v790_v35, 0.0 }
 0x1bc   : > { %792 = vadd.xlane.f32.xlu0 %v791_v36 }
 0x249   : > { %v793_v48 = vpop.xlane.xlu0 %792 }
 0x24a   : > { %v794_v49 = vmul.f32 0.0078125, %v793_v48 }
 0x24c   : > { %v795_v50 = vadd.f32 1e-05, %v794_v49 }
 0x24e   : > { %5954 = vrsqrt.f32 %v795_v50 }
 0x258   : > { %v5955_v51 = vpop.eup %5954 }
 0x259   : > { %v797_v53 = vmul.f32 %v5955_v51, %v789_v34 }
 0x25b   : > { %v804_v55 = vmul.f32 %v4733_v52, %v797_v53 }
 0x25d   : > { %v811_v56 = vadd.f32 %v4734_v54, %v804_v55 }
 0x25f   : > { %v844_v58 = vpack.c.bf16 %v811_v56, %v811_v56 }
 0x261   : > { %1023 = vmatmul.mubr.bf16.vlgmr.msra.gmra.mrb[0].mxu1 %v844_v58 }
 0x262   : > { %5365 = vmatpush3.bf16.msra.mxu1 %v5730_v57  ;;  %5380 = vmatprep.mubr.msk.bf16.mxu1 %vm6094_vm2, %v6093_v43 }
 0x263   : > { %5366 = vmatprep.subr.bf16.mxu1 %v6093_v43 }
 0x266   : > { %5367 = vmatpush3.bf16.msra.mxu1 %v5731_v59 }
 0x267   : > { %5368 = vmatprep.subr.bf16.mxu1 %v6093_v43 }
 0x26a   : > { %5369 = vmatpush3.bf16.msra.mxu1 %v5732_v60 }
 0x26b   : > { %5370 = vmatprep.subr.bf16.mxu1 %v6093_v43 }
 0x26e   : > { %5371 = vmatpush3.bf16.msra.mxu1 %v5733_v61 }
 0x26f   : > { %5372 = vmatprep.subr.bf16.mxu1 %v6093_v43 }
 0x272   : > { %5373 = vmatpush3.bf16.msra.mxu1 %v5734_v62 }
 0x273   : > { %5374 = vmatprep.subr.bf16.mxu1 %v6093_v43 }
 0x276   : > { %5375 = vmatpush3.bf16.msra.mxu1 %v5735_v63 }
 0x277   : > { %5376 = vmatprep.subr.bf16.mxu1 %v6093_v43 }
 0x27a   : > { %5377 = vmatpush3.bf16.msra.mxu1 %v5736_v0 }
 0x27b   : > { %5378 = vmatprep.subr.bf16.mxu1 %v6093_v43 }
 0x27e   : > { %5379 = vmatpush3.bf16.msra.mxu1 %v5737_v2 }
 0x27f   : > { %5402 = vmatprep.subr.bf16.mxu1 %v6093_v43 }
 0x281   : > { %5381 = vmatmul.mubr.bf16.vlgmr.msra.gmra.mrb[4].mxu1 %v844_v58 }
 0x282   : > { %5404 = vmatprep.mubr.msk.bf16.mxu1 %vm6094_vm2, %v6093_v43 }
 0x334   : > { %v1024_v9 = vpop.f32.mrb[0].mxu1 }
 0x335   : > { %v1026_v10 = vpop.f32.mrb[1].mxu1  ;;  %v1025_v17 = vadd.f32 %v1024_v9, %v850_v14 }
 0x336   : > { %v1027_v11 = vadd.f32 %v1026_v10, %v854_v7  ;;  %v1028_v12 = vpop.f32.mrb[2].mxu1 }
 0x337   : > { %v1029_v13 = vpop.f32.mrb[3].mxu1  ;;  %v1071_v18 = vpack.c.bf16 %v1025_v17, %v1025_v17 }
 0x338   : > { %v1072_v15 = vpack.c.bf16 %v1027_v11, %v1027_v11 }
 0x33a   : > { %1190 = vrot.lane.b32.xlu0 %v1072_v15, %s7436_s24  ;;  %v1078_v16 = vsel %vm1073_vm3, %v1072_v15, 0 }
 0x33b   : > { %5385 = vmatpush3.bf16.xpose.msra.mxu0 %v1078_v16 }
 0x33c   : > { %5390 = vmatprep.subr.bf16.mxu0 %v6093_v43 }
 0x33e   : > { %1413 = vrot.lane.b32.xlu0 %v1072_v15, %s7434_s27 }
 0x342   : > { %5387 = vmatmul.mubr.msk.bf16.vlgmr.msra.gmra.mrb[4].mxu0 %vm1073_vm3, %v1071_v18 }
 0x343   : > { %5392 = vmatprep.mubr.msk.bf16.mxu0 %vm6094_vm2, %v6093_v43 }
 0x354   : > { %v1065_v24 = vpop.f32.mrb[4].mxu1 }
 0x355   : > { %v1066_v25 = vadd.f32 %v1065_v24, %v858_v20  ;;  %v5382_v26 = vpop.f32.mrb[5].mxu1 }
 0x356   : > { %v1068_v27 = vpop.f32.mrb[6].mxu1 }
 0x357   : > { %v6439_v29 = vpack.c.bf16 %v1066_v25, %v1066_v25  ;;  %v5383_v30 = vpop.f32.mrb[7].mxu1 }
 0x359   : > { %v1144_v31 = vand.u32 %v6437_v28, %v6439_v29 }
 0x35b   : > { %5391 = vmatpush3.bf16.msra.mxu0 %v1144_v31 }
 0x35c   : > { %5396 = vmatprep.subr.bf16.mxu0 %v6093_v43 }
 0x3ac   : > { %v1191_v47 = vpop.permute.xlu0 %1190 }
 0x3ad   : > { %v1196_v50 = vsel %vm1073_vm3, %v1191_v47, 0 }
 0x3b0   : > { %v1414_v53 = vpop.permute.xlu0 %1413 }
 0x3b1   : > { %v1419_v55 = vsel %vm1073_vm3, %v1414_v53, 0 }
 0x415   : > { %v1114_v32 = vpop.f32.mrb[4].mxu0 }
 0x416   : > { %v1120_v33 = vmul.f32 0.17677669, %v1114_v32  ;;  %v5388_v34 = vpop.f32.mrb[5].mxu0 }
 0x417   : > { %v1117_v35 = vpop.f32.mrb[6].mxu0 }
 0x418   : > { %v5389_v36 = vpop.f32.mrb[7].mxu0  ;;  %v1122_v37 = vsel %vm1121_vm6, %v1120_v33, -inf }
 0x419   : > { %1123 = vmax.xlane.f32.xlu1 %v1122_v37 }
 0x4a6   : > { %v1124_v38 = vpop.xlane.xlu1 %1123 }
 0x4a7   : > { %v1125_v39 = vsub.f32 %v1120_v33, %v1124_v38 }
 0x4a9   : > { %v1126_v40 = vmul.f32 1.442695, %v1125_v39 }
 0x4ab   : > { %5956 = vpow2.f32 %v1126_v40 }
 0x4b5   : > { %v5957_v41 = vpop.eup %5956 }
 0x4b6   : > { %v1128_v42 = vsel %vm1121_vm6, %v5957_v41, 0.0 }
 0x4b7   : > { %1129 = vadd.xlane.f32.xlu1 %v1128_v42 }
 0x4c8   : > { %1187 = vrot.lane.b32.xlu1 %v1071_v18, %s7436_s24 }
 0x4cc   : > { %1302 = vrot.lane.b32.xlu1 %v1072_v15, %s7432_s0 }
 0x4d0   : > { %1300 = vrot.lane.b32.xlu1 %v1071_v18, %s7432_s0 }
 0x4d4   : > { %1411 = vrot.lane.b32.xlu1 %v1071_v18, %s7434_s27 }
 0x544   : > { %v1130_v44 = vpop.xlane.xlu1 %1129 }
 0x545   : > { %5958 = vrcp.f32 %v1130_v44 }
 0x548   : > { %v1188_v49 = vpop.permute.xlu1 %1187 }
 0x54c   : > { %v1303_v51 = vpop.permute.xlu1 %1302 }
 0x54d   : > { %v1308_v52 = vsel %vm1073_vm3, %v1303_v51, 0 }
 0x54f   : > { %v5959_v45 = vpop.eup %5958 }
 0x550   : > { %v1132_v46 = vmul.f32 %v5959_v45, %v5957_v41  ;;  %v1301_v54 = vpop.permute.xlu1 %1300 }
 0x552   : > { %v1133_v48 = vpack.c.bf16 %v1132_v46, %v1132_v46 }
 0x554   : > { %5393 = vmatmul.mubr.msk.bf16.vlgmr.msra.gmra.mrb[8].mxu0 %vm1135_vm7, %v1133_v48  ;;  %v1412_v56 = vpop.permute.xlu1 %1411 }
 0x555   : > { %5397 = vmatpush3.bf16.xpose.msra.mxu0 %v1196_v50  ;;  %5398 = vmatprep.mubr.msk.bf16.mxu0 %vm6094_vm2, %v6093_v43 }
 0x556   : > { %5408 = vmatprep.subr.bf16.mxu0 %v6093_v43 }
 0x55c   : > { %5399 = vmatmul.mubr.msk.bf16.vlgmr.msra.gmra.mrb[12].mxu0 %vm1073_vm3, %v1188_v49 }
 0x55d   : > { %5409 = vmatpush3.bf16.xpose.msra.mxu0 %v1308_v52  ;;  %5410 = vmatprep.mubr.msk.bf16.mxu0 %vm6094_vm2, %v6093_v43 }
 0x55e   : > { %5420 = vmatprep.subr.bf16.mxu0 %v6093_v43 }
 0x564   : > { %5411 = vmatmul.mubr.msk.bf16.vlgmr.msra.gmra.mrb[16].mxu0 %vm1073_vm3, %v1301_v54 }
 0x565   : > { %5421 = vmatpush3.bf16.xpose.msra.mxu0 %v1419_v55  ;;  %5422 = vmatprep.mubr.msk.bf16.mxu0 %vm6094_vm2, %v6093_v43  ;;  %v5738_v55 = vld [vmem:[%s7410_s8] sm:$0xff]  }
 0x566   : > { %5432 = vmatprep.subr.bf16.mxu0 %v6093_v43 }
 0x56c   : > { %5423 = vmatmul.mubr.msk.bf16.vlgmr.msra.gmra.mrb[20].mxu0 %vm1073_vm3, %v1412_v56  ;;  %v5739_v56 = vld [vmem:[%s7410_s8 + $0x8] sm:$0xff]  }
 0x56d   : > { %5448 = vmatprep.mubr.msk.bf16.mxu0 %vm6094_vm2, %v6093_v43  ;;  %5433 = vmatpush3.bf16.msra.mxu0 %v5738_v55 }
 0x56e   : > { %5434 = vmatprep.subr.bf16.mxu0 %v6093_v43 }
 0x571   : > { %5435 = vmatpush3.bf16.msra.mxu0 %v5739_v56 }
 0x572   : > { %5436 = vmatprep.subr.bf16.mxu0 %v6093_v43 }
 0x627   : > { %v6468_v57 = vpop.f32.mrb[8].mxu0 }
 0x628   : > { %v5394_v58 = vpop.f32.mrb[9].mxu0 }
 0x629   : > { %v1183_v59 = vpop.f32.mrb[10].mxu0  ;;  %v5740_v58 = vld [vmem:[%s7410_s8 + $0x10] sm:$0xff]  }
 0x62a   : > { %v5395_v60 = vpop.f32.mrb[11].mxu0  ;;  %5437 = vmatpush3.bf16.msra.mxu0 %v5740_v58  ;;  %v5741_v59 = vld [vmem:[%s7410_s8 + $0x18] sm:$0xff]   ;;  %v4776_v58 = vld [vmem:[%s7412_s10] ss:$0 sm:$0xff] }
 0x62b   : > { %5438 = vmatprep.subr.bf16.mxu0 %v6093_v43  ;;  %v5742_v60 = vld [vmem:[%s7410_s8 + $0x20] sm:$0xff]  }
 0x62e   : > { %5439 = vmatpush3.bf16.msra.mxu0 %v5741_v59 }
 0x62f   : > { %v1232_v61 = vpop.f32.mrb[12].mxu0  ;;  %5440 = vmatprep.subr.bf16.mxu0 %v6093_v43 }
 0x630   : > { %v1238_v62 = vmul.f32 0.17677669, %v1232_v61  ;;  %v5400_v63 = vpop.f32.mrb[13].mxu0  ;;  %v5743_v61 = vld [vmem:[%s7410_s8 + $0x28] sm:$0xff]  }
 0x631   : > { %v1235_v0 = vpop.f32.mrb[14].mxu0 }
 0x632   : > { %v5401_v2 = vpop.f32.mrb[15].mxu0  ;;  %v1239_v3 = vsel %vm1121_vm6, %v1238_v62, -inf  ;;  %5441 = vmatpush3.bf16.msra.mxu0 %v5742_v60  ;;  %v4777_v60 = vld [vmem:[%s7413_s11] ss:$0 sm:$0xff] }
 0x633   : > { %1240 = vmax.xlane.f32.xlu0 %v1239_v3  ;;  %5442 = vmatprep.subr.bf16.mxu0 %v6093_v43 }
 0x636   : > { %5443 = vmatpush3.bf16.msra.mxu0 %v5743_v61 }
 0x637   : > { %v1344_v4 = vpop.f32.mrb[16].mxu0  ;;  %5444 = vmatprep.subr.bf16.mxu0 %v6093_v43 }
 0x638   : > { %v1350_v6 = vmul.f32 0.17677669, %v1344_v4  ;;  %v5412_v7 = vpop.f32.mrb[17].mxu0  ;;  %v5745_v4 = vld [vmem:[%s7410_s8 + $0x38] sm:$0xff]  }
 0x639   : > { %v1347_v9 = vpop.f32.mrb[18].mxu0 }
 0x63a   : > { %v5413_v10 = vpop.f32.mrb[19].mxu0  ;;  %v1351_v11 = vsel %vm1121_vm6, %v1350_v6, -inf }
 0x63b   : > { %1352 = vmax.xlane.f32.xlu1 %v1351_v11 }
 0x63f   : > { %v1455_v12 = vpop.f32.mrb[20].mxu0 }
 0x640   : > { %v1461_v13 = vmul.f32 0.17677669, %v1455_v12  ;;  %v5424_v14 = vpop.f32.mrb[21].mxu0 }
 0x641   : > { %v1458_v15 = vpop.f32.mrb[22].mxu0 }
 0x642   : > { %v5425_v16 = vpop.f32.mrb[23].mxu0  ;;  %v1462_v17 = vsel %vm1121_vm6, %v1461_v13, -inf }
 0x643   : > { %1463 = vmax.xlane.f32.xlu0 %v1462_v17 }
 0x64c   : > { %1363 = vrot.lane.b32.xlu1 %v6439_v29, %s7432_s0 }
 0x6c0   : > { %v1241_v18 = vpop.xlane.xlu0 %1240 }
 0x6c1   : > { %v1242_v20 = vsub.f32 %v1238_v62, %v1241_v18  ;;  %v5744_v62 = vld [vmem:[%s7410_s8 + $0x30] sm:$0xff]  }
 0x6c2   : > { %5445 = vmatpush3.bf16.msra.mxu0 %v5744_v62 }
 0x6c3   : > { %v1243_v21 = vmul.f32 1.442695, %v1242_v20  ;;  %5446 = vmatprep.subr.bf16.mxu0 %v6093_v43 }
 0x6c5   : > { %5960 = vpow2.f32 %v1243_v21 }
 0x6c6   : > { %5447 = vmatpush3.bf16.msra.mxu0 %v5745_v4  ;;  %v5773_v4 = vld [vmem:[%s7416_s14 + $0x8] sm:$0xff]  }
 0x6c8   : > { %v1353_v22 = vpop.xlane.xlu1 %1352 }
 0x6c9   : > { %v1354_v24 = vsub.f32 %v1350_v6, %v1353_v22 }
 0x6cb   : > { %v1355_v25 = vmul.f32 1.442695, %v1354_v24  ;;  %v4767_v24 = vld [vmem:[%s7411_s9] ss:$0 sm:$0xff] }
 0x6cc   : > { %v1364_v40 = vpop.permute.xlu1 %1363 }
 0x6cd   : > { %5962 = vpow2.f32 %v1355_v25  ;;  %v1369_v47 = vand.u32 %v1364_v40, %v6437_v28 }
 0x6cf   : > { %v5961_v26 = vpop.eup %5960 }
 0x6d0   : > { %v1464_v27 = vpop.xlane.xlu0 %1463  ;;  %v1245_v30 = vsel %vm1121_vm6, %v5961_v26, 0.0 }
 0x6d1   : > { %v1465_v31 = vsub.f32 %v1461_v13, %v1464_v27  ;;  %1246 = vadd.xlane.f32.xlu0 %v1245_v30 }
 0x6d3   : > { %v1466_v32 = vmul.f32 1.442695, %v1465_v31 }
 0x6d5   : > { %5964 = vpow2.f32 %v1466_v32 }
 0x6d7   : > { %v5963_v33 = vpop.eup %5962 }
 0x6d8   : > { %v1357_v34 = vsel %vm1121_vm6, %v5963_v33, 0.0 }
 0x6d9   : > { %1358 = vadd.xlane.f32.xlu0 %v1357_v34  ;;  %v5748_v34 = vld [vmem:[%s7414_s12 + $0x4] ss:$8 sps:$4 sm:$0xff]  }
 0x6df   : > { %v5965_v35 = vpop.eup %5964 }
 0x6e0   : > { %v1468_v36 = vsel %vm1121_vm6, %v5965_v35, 0.0 }
 0x6e1   : > { %1469 = vadd.xlane.f32.xlu1 %v1468_v36  ;;  %v5754_v36 = vld [vmem:[%s7414_s12 + $0x24] ss:$8 sps:$4 sm:$0xff]  }
 0x6ef   : > { %1252 = vrot.lane.b32.xlu0 %v6439_v29, %s7436_s24 }
 0x6f2   : > { %1474 = vrot.lane.b32.xlu1 %v6439_v29, %s7434_s27 }
 0x75e   : > { %v1247_v37 = vpop.xlane.xlu0 %1246 }
 0x75f   : > { %5966 = vrcp.f32 %v1247_v37  ;;  %v5752_v37 = vld [vmem:[%s7414_s12 + $0x20] ss:$8 sps:$4 sm:$0xff]  }
 0x766   : > { %v1359_v38 = vpop.xlane.xlu0 %1358 }
 0x767   : > { %5968 = vrcp.f32 %v1359_v38 }
 0x769   : > { %v5967_v39 = vpop.eup %5966 }
 0x76a   : > { %v1249_v41 = vmul.f32 %v5967_v39, %v5961_v26  ;;  %v1253_v42 = vpop.permute.xlu0 %1252 }
 0x76b   : > { %v1258_v44 = vand.u32 %v1253_v42, %v6437_v28 }
 0x76c   : > { %v1250_v46 = vpack.c.bf16 %v1249_v41, %v1249_v41 }
 0x76d   : > { %5403 = vmatpush3.bf16.msra.mxu1 %v1258_v44  ;;  %v5757_v44 = vld [vmem:[%s7414_s12 + $0x34] ss:$8 sps:$4 sm:$0xff]  }
 0x76e   : > { %v1470_v45 = vpop.xlane.xlu1 %1469  ;;  %5414 = vmatprep.subr.bf16.mxu1 %v6093_v43 }
 0x76f   : > { %5970 = vrcp.f32 %v1470_v45  ;;  %v5755_v45 = vld [vmem:[%s7414_s12 + $0x30] ss:$8 sps:$4 sm:$0xff]  }
 0x770   : > { %5405 = vmatmul.mubr.msk.bf16.vlgmr.msra.gmra.mrb[8].mxu1 %vm1135_vm7, %v1250_v46  ;;  %v5760_v46 = vld [vmem:[%s7414_s12 + $0x44] ss:$8 sps:$4 sm:$0xff]  }
 0x771   : > { %v5969_v29 = vpop.eup %5968  ;;  %5415 = vmatpush3.bf16.msra.mxu1 %v1369_v47  ;;  %5416 = vmatprep.mubr.msk.bf16.mxu1 %vm6094_vm2, %v6093_v43  ;;  %v5758_v47 = vld [vmem:[%s7414_s12 + $0x40] ss:$8 sps:$4 sm:$0xff]  }
 0x772   : > { %v1361_v48 = vmul.f32 %v5969_v29, %v5963_v33  ;;  %5426 = vmatprep.subr.bf16.mxu1 %v6093_v43  ;;  %v1475_v49 = vpop.permute.xlu1 %1474  ;;  %v5746_v33 = vld [vmem:[%s7414_s12] ss:$8 sps:$4 sm:$0xff]   ;;  %v5763_v29 = vld [vmem:[%s7414_s12 + $0x54] ss:$8 sps:$4 sm:$0xff]  }
 0x773   : > { %v1480_v51 = vand.u32 %v1475_v49, %v6437_v28  ;;  %v5766_v49 = vld [vmem:[%s7414_s12 + $0x64] ss:$8 sps:$4 sm:$0xff]  }
 0x774   : > { %v1362_v50 = vpack.c.bf16 %v1361_v48, %v1361_v48  ;;  %v5761_v48 = vld [vmem:[%s7414_s12 + $0x50] ss:$8 sps:$4 sm:$0xff]  }
 0x778   : > { %5417 = vmatmul.mubr.msk.bf16.vlgmr.msra.gmra.mrb[12].mxu1 %vm1135_vm7, %v1362_v50  ;;  %v5764_v50 = vld [vmem:[%s7414_s12 + $0x60] ss:$8 sps:$4 sm:$0xff]  }
 0x779   : > { %v5971_v52 = vpop.eup %5970  ;;  %5427 = vmatpush3.bf16.msra.mxu1 %v1480_v51  ;;  %5428 = vmatprep.mubr.msk.bf16.mxu1 %vm6094_vm2, %v6093_v43  ;;  %v5769_v51 = vld [vmem:[%s7414_s12 + $0x74] ss:$8 sps:$4 sm:$0xff]  }
 0x77a   : > { %v1472_v53 = vmul.f32 %v5971_v52, %v5965_v35  ;;  %v5751_v35 = vld [vmem:[%s7414_s12 + $0x14] ss:$8 sps:$4 sm:$0xff]   ;;  %1789 = vmatprep.subr.bf16.mxu1 %v5748_v34  ;;  %v5767_v52 = vld [vmem:[%s7414_s12 + $0x70] ss:$8 sps:$4 sm:$0xff]  }
 0x77c   : > { %v1473_v54 = vpack.c.bf16 %v1472_v53, %v1472_v53 }
 0x780   : > { %5429 = vmatmul.mubr.msk.bf16.vlgmr.msra.gmra.mrb[16].mxu1 %vm1135_vm7, %v1473_v54 }
 0x781   : > { %1821 = vmatprep.mubr.bf16.mxu1 %v6092_v1  ;;  %1790 = vmatpush1.bf16.msra.mxu1 %v5746_v33 }
 0x782   : > { %1791 = vmatprep.subr.bf16.mxu1 %v5751_v35 }
 0x843   : > { %v1294_v63 = vpop.f32.mrb[8].mxu1 }
 0x844   : > { %1523 = vrot.lane.b32.xlu1 %v1294_v63, %s7434_s27  ;;  %v5406_v0 = vpop.f32.mrb[9].mxu1  ;;  %s7460_s27 = smov 96  }
 0x845   : > { %v1297_v2 = vpop.f32.mrb[10].mxu1  ;;  %v5770_v0 = vld [vmem:[%s7416_s14 + $0x40] sm:$0xff]  }
 0x846   : > { %v5407_v3 = vpop.f32.mrb[11].mxu1  ;;  %v5771_v2 = vld [vmem:[%s7416_s14] sm:$0xff]   ;;  %5221 = vmatprep.subr.bf16.mxu0 %v5770_v0 }
 0x847   : > { %v5772_v3 = vld [vmem:[%s7416_s14 + $0x48] sm:$0xff]  }
 0x848   : > { %v5793_v0 = vld [vmem:[%s7408_s6 + $0xe0] ss:$12 sps:$4 sm:$0xff]  }
 0x84b   : > { %v1405_v6 = vpop.f32.mrb[12].mxu1 }
 0x84c   : > { %1527 = vrot.lane.b32.xlu0 %v1405_v6, %s7432_s0  ;;  %v5418_v7 = vpop.f32.mrb[13].mxu1  ;;  %v5774_v6 = vld [vmem:[%s7416_s14 + $0x50] sm:$0xff]  }
 0x84d   : > { %v1408_v9 = vpop.f32.mrb[14].mxu1  ;;  %v5775_v7 = vld [vmem:[%s7416_s14 + $0x10] sm:$0xff]  }
 0x84e   : > { %v5419_v10 = vpop.f32.mrb[15].mxu1  ;;  %v5776_v9 = vld [vmem:[%s7416_s14 + $0x58] sm:$0xff]  }
 0x84f   : > { %v5777_v10 = vld [vmem:[%s7416_s14 + $0x18] sm:$0xff]  }
 0x853   : > { %v1516_v11 = vpop.f32.mrb[16].mxu1 }
 0x854   : > { %1531 = vrot.lane.b32.xlu1 %v1516_v11, %s7436_s24  ;;  %v5430_v12 = vpop.f32.mrb[17].mxu1  ;;  %v5778_v11 = vld [vmem:[%s7416_s14 + $0x60] sm:$0xff]  }
 0x855   : > { %v1519_v13 = vpop.f32.mrb[18].mxu1  ;;  %v5779_v12 = vld [vmem:[%s7416_s14 + $0x20] sm:$0xff]  }
 0x856   : > { %v5431_v14 = vpop.f32.mrb[19].mxu1  ;;  %v5780_v13 = vld [vmem:[%s7416_s14 + $0x68] sm:$0xff]  }
 0x857   : > { %v5781_v14 = vld [vmem:[%s7416_s14 + $0x28] sm:$0xff]  }
 0x8b6   : > { %v1524_v15 = vpop.permute.xlu1 %1523 }
 0x8b7   : > { %v1534_v17 = vsel %vm1073_vm3, %v6468_v57, %v1524_v15  ;;  %v5782_v15 = vld [vmem:[%s7416_s14 + $0x70] sm:$0xff]  }
 0x8be   : > { %v1528_v16 = vpop.permute.xlu0 %1527 }
 0x8bf   : > { %v1535_v18 = vsel %vm735_vm0, %v1534_v17, %v1528_v16  ;;  %v5783_v16 = vld [vmem:[%s7416_s14 + $0x30] sm:$0xff]   ;;  %v5784_v17 = vld [vmem:[%s7416_s14 + $0x78] sm:$0xff]  }
 0x8c6   : > { %v1532_v20 = vpop.permute.xlu1 %1531 }
 0x8c7   : > { %v1537_v21 = vsel %vm1536_vm8, %v1535_v18, %v1532_v20  ;;  %v5785_v18 = vld [vmem:[%s7416_s14 + $0x38] sm:$0xff]   ;;  %v1697_v20 = vld [vmem:[%s7415_s13] sm:$0x3] }
 0x8c8   : > { %v1554_v22 = vpack.c.bf16 %v1537_v21, %v1537_v21  ;;  %v1702_v21 = vrot.slane %v1697_v20, %v6424_v8 }
 0x8ca   : > { %5449 = vmatmul.mubr.bf16.vlgmr.msra.gmra.mrb[24].mxu0 %v1554_v22  ;;  %v1706_v22 = vrot.slane %v1697_v20, %v6418_v5  ;;  %v5808_v20 = vld [vmem:[%s7408_s6 + $0x13c] ss:$12 sps:$4 sm:$0xff]  }
 0x8cb   : > { %5222 = vmatpush3.bf16.msra.mxu0 %v5771_v2  ;;  %v5790_v2 = vld [vmem:[%s7408_s6 + $0xd8] ss:$12 sps:$4 sm:$0xff]  }
 0x8cc   : > { %5223 = vmatprep.subr.bf16.mxu0 %v5772_v3  ;;  %v5796_v3 = vld [vmem:[%s7408_s6 + $0xf4] ss:$12 sps:$4 sm:$0xff]  }
 0x8cf   : > { %5224 = vmatpush3.bf16.msra.mxu0 %v5773_v4  ;;  %v5794_v4 = vld [vmem:[%s7408_s6 + $0xf0] ss:$12 sps:$4 sm:$0xff]  }
 0x8d0   : > { %5225 = vmatprep.subr.bf16.mxu0 %v5774_v6 }
 0x8d3   : > { %5226 = vmatpush3.bf16.msra.mxu0 %v5775_v7 }
 0x8d4   : > { %5227 = vmatprep.subr.bf16.mxu0 %v5776_v9 }
 0x8d7   : > { %5228 = vmatpush3.bf16.msra.mxu0 %v5777_v10 }
 0x8d8   : > { %5229 = vmatprep.subr.bf16.mxu0 %v5778_v11 }
 0x8db   : > { %5230 = vmatpush3.bf16.msra.mxu0 %v5779_v12  ;;  %v5797_v12 = vld [vmem:[%s7408_s6 + $0xf8] ss:$12 sps:$4 sm:$0xff]  }
 0x8dc   : > { %5231 = vmatprep.subr.bf16.mxu0 %v5780_v13  ;;  %v5800_v13 = vld [vmem:[%s7408_s6 + $0x10c] ss:$12 sps:$4 sm:$0xff]  }
 0x8df   : > { %5232 = vmatpush3.bf16.msra.mxu0 %v5781_v14  ;;  %v5798_v14 = vld [vmem:[%s7408_s6 + $0x108] ss:$12 sps:$4 sm:$0xff]  }
 0x8e0   : > { %5233 = vmatprep.subr.bf16.mxu0 %v5782_v15  ;;  %v5801_v15 = vld [vmem:[%s7408_s6 + $0x110] ss:$12 sps:$4 sm:$0xff]  }
 0x8e3   : > { %5234 = vmatpush3.bf16.msra.mxu0 %v5783_v16  ;;  %v5804_v16 = vld [vmem:[%s7408_s6 + $0x124] ss:$12 sps:$4 sm:$0xff]  }
 0x8e4   : > { %5235 = vmatprep.subr.bf16.mxu0 %v5784_v17  ;;  %v5802_v17 = vld [vmem:[%s7408_s6 + $0x120] ss:$12 sps:$4 sm:$0xff]  }
 0x8e7   : > { %5236 = vmatpush3.bf16.msra.mxu0 %v5785_v18  ;;  %v5805_v18 = vld [vmem:[%s7408_s6 + $0x128] ss:$12 sps:$4 sm:$0xff]  }
 0x8e8   : > { %5452 = vmatprep.subr.bf16.mxu0 %v6093_v43 }
 0x99d   : > { %v1644_v25 = vpop.f32.mrb[24].mxu0 }
 0x99e   : > { %v1645_v26 = vadd.f32 %v4767_v24, %v1644_v25  ;;  %v5450_v27 = vpop.f32.mrb[25].mxu0 }
 0x99f   : > { %v1647_v30 = vpop.f32.mrb[26].mxu0 }
 0x9a0   : > { %v6537_v31 = vadd.f32 %v1645_v26, %v6318_v23  ;;  %v5451_v32 = vpop.f32.mrb[27].mxu0  ;;  %v5749_v23 = vld [vmem:[%s7414_s12 + $0x10] ss:$8 sps:$4 sm:$0xff]  }
 0x9a1   : > { %1792 = vmatpush1.bf16.msra.mxu1 %v5749_v23 }
 0x9a2   : > { %v1653_v57 = vsel %vm783_vm1, %v6537_v31, 0.0  ;;  %1793 = vmatprep.subr.bf16.mxu1 %v5754_v36 }
 0x9a3   : > { %1654 = vadd.xlane.f32.xlu0 %v1653_v57 }
 0x9a5   : > { %1794 = vmatpush1.bf16.msra.mxu1 %v5752_v37 }
 0x9a6   : > { %1795 = vmatprep.subr.bf16.mxu1 %v5757_v44 }
 0x9a9   : > { %1796 = vmatpush1.bf16.msra.mxu1 %v5755_v45 }
 0x9aa   : > { %1797 = vmatprep.subr.bf16.mxu1 %v5760_v46 }
 0x9ad   : > { %1798 = vmatpush1.bf16.msra.mxu1 %v5758_v47 }
 0x9ae   : > { %1799 = vmatprep.subr.bf16.mxu1 %v5763_v29 }
 0x9b1   : > { %1800 = vmatpush1.bf16.msra.mxu1 %v5761_v48 }
 0x9b2   : > { %1801 = vmatprep.subr.bf16.mxu1 %v5766_v49 }
 0x9b5   : > { %1802 = vmatpush1.bf16.msra.mxu1 %v5764_v50 }
 0x9b6   : > { %1803 = vmatprep.subr.bf16.mxu1 %v5769_v51 }
 0x9b9   : > { %1804 = vmatpush1.bf16.msra.mxu1 %v5767_v52  ;;  %v4794_v52 = vld [vmem:[%s7417_s15] ss:$0 sm:$0xff] }
 0xa30   : > { %v1655_v38 = vpop.xlane.xlu0 %1654 }
 0xa31   : > { %v1656_v39 = vmul.f32 0.0078125, %v1655_v38 }
 0xa33   : > { %v1657_v40 = vsub.f32 %v6537_v31, %v1656_v39 }
 0xa35   : > { %v1658_v41 = vmul.f32 %v1657_v40, %v1657_v40 }
 0xa37   : > { %v1659_v42 = vsel %vm783_vm1, %v1658_v41, 0.0 }
 0xa38   : > { %1660 = vadd.xlane.f32.xlu1 %v1659_v42 }
 0xac5   : > { %v1661_v53 = vpop.xlane.xlu1 %1660 }
 0xac6   : > { %v1662_v54 = vmul.f32 0.0078125, %v1661_v53 }
 0xac8   : > { %v1663_v55 = vadd.f32 1e-05, %v1662_v54 }
 0xaca   : > { %5972 = vrsqrt.f32 %v1663_v55 }
 0xad4   : > { %v5973_v56 = vpop.eup %5972 }
 0xad5   : > { %v1665_v59 = vmul.f32 %v5973_v56, %v1657_v40 }
 0xad7   : > { %v1672_v61 = vmul.f32 %v4776_v58, %v1665_v59 }
 0xad9   : > { %v1679_v62 = vadd.f32 %v4777_v60, %v1672_v61  ;;  %v5786_v61 = vld [vmem:[%s7408_s6 + $0xc0] ss:$12 sps:$4 sm:$0xff]  }
 0xadb   : > { %v1696_v63 = vpack.c.bf16 %v1679_v62, %v1679_v62  ;;  %v5788_v62 = vld [vmem:[%s7408_s6 + $0xc4] ss:$12 sps:$4 sm:$0xff]  }
 0xadc   : > { %2237 = vmatprep.subr.bf16.mxu1 %v5788_v62 }
 0xadd   : > { %1822 = vmatmul.mubr.bf16.vlgmr.msra.gmra.mrb[20].mxu1 %v1696_v63  ;;  %v5789_v63 = vld [vmem:[%s7408_s6 + $0xc8] ss:$12 sps:$4 sm:$0xff]  }
 0xade   : > { %2269 = vmatprep.mubr.bf16.mxu1 %v6092_v1  ;;  %2238 = vmatpush1.bf16.msra.mxu1 %v5786_v61 }
 0xbb0   : > { %v1823_v24 = vpop.f32.mrb[20].mxu1 }
 0xbb1   : > { %v1824_v25 = vadd.f32 %v1823_v24, %v1702_v21  ;;  %v1825_v26 = vpop.f32.mrb[21].mxu1  ;;  %v5806_v21 = vld [vmem:[%s7408_s6 + $0x138] ss:$12 sps:$4 sm:$0xff]   ;;  %v5812_v24 = vld [vmem:[%s7408_s6 + $0x154] ss:$12 sps:$4 sm:$0xff]  }
 0xbb2   : > { %v1826_v27 = vadd.f32 %v1825_v26, %v1706_v22  ;;  %v1827_v30 = vpop.f32.mrb[22].mxu1  ;;  %v5809_v22 = vld [vmem:[%s7408_s6 + $0x140] ss:$12 sps:$4 sm:$0xff]   ;;  %v5813_v26 = vld [vmem:[%s7408_s6 + $0x158] ss:$12 sps:$4 sm:$0xff]  }
 0xbb3   : > { %v1832_v32 = vmul.f32 0.044715, %v1824_v25  ;;  %v1828_v57 = vpop.f32.mrb[23].mxu1  ;;  %v1830_v44 = vmul.f32 0.5, %v1824_v25  ;;  %v5814_v30 = vld [vmem:[%s7408_s6 + $0x168] ss:$12 sps:$4 sm:$0xff]  }
 0xbb4   : > { %v1833_v33 = vmul.f32 0.044715, %v1826_v27  ;;  %v1831_v46 = vmul.f32 0.5, %v1826_v27 }
 0xbb5   : > { %v1834_v34 = vmul.f32 %v1832_v32, %v1824_v25  ;;  %v5817_v32 = vld [vmem:[%s7408_s6 + $0x170] ss:$12 sps:$4 sm:$0xff]  }
 0xbb6   : > { %v1835_v35 = vmul.f32 %v1833_v33, %v1826_v27 }
 0xbb7   : > { %v1836_v23 = vmul.f32 %v1834_v34, %v1824_v25 }
 0xbb8   : > { %v1837_v36 = vmul.f32 %v1835_v35, %v1826_v27 }
 0xbb9   : > { %v1838_v37 = vadd.f32 %v1836_v23, %v1824_v25  ;;  %v5810_v25 = vld [vmem:[%s7408_s6 + $0x150] ss:$12 sps:$4 sm:$0xff]   ;;  %v4813_v23 = vld [vmem:[%s7457_s30 + $0x1] ss:$0 sm:$0xff] }
 0xbba   : > { %v1839_v38 = vadd.f32 %v1837_v36, %v1826_v27  ;;  %v5816_v27 = vld [vmem:[%s7408_s6 + $0x16c] ss:$12 sps:$4 sm:$0xff]  }
 0xbbb   : > { %v1840_v39 = vmul.f32 0.7978846, %v1838_v37  ;;  %v4814_v37 = vld [vmem:[%s7407_s5 + $0x1] ss:$0 sm:$0xff] }
 0xbbc   : > { %v1841_v40 = vmul.f32 0.7978846, %v1839_v38 }
 0xbbd   : > { %5974 = vtanh.f32 %v1840_v39 }
 0xbbe   : > { %5976 = vtanh.f32 %v1841_v40 }
 0xbc7   : > { %v5975_v41 = vpop.eup %5974 }
 0xbc8   : > { %v5977_v42 = vpop.eup %5976  ;;  %v1844_v45 = vadd.f32 1.0, %v5975_v41  ;;  %v4847_v41 = vld [vmem:[%s7409_s7 + $0x3] sm:$0x7] }
 0xbc9   : > { %v1845_v47 = vadd.f32 1.0, %v5977_v42  ;;  %v2101_v42 = vrot.slane %v4847_v41, %v6418_v5 }
 0xbca   : > { %v1846_v29 = vmul.f32 %v1844_v45, %v1830_v44 }
 0xbcb   : > { %v1847_v48 = vmul.f32 %v1845_v47, %v1831_v46  ;;  %v2105_v46 = vrot.slane %v4847_v41, %v6434_v19 }
 0xbcc   : > { %v1880_v50 = vpack.c.bf16 %v1846_v29, %v1846_v29 }
 0xbcd   : > { %v1881_v49 = vpack.c.bf16 %v1847_v48, %v1847_v48 }
 0xbcf   : > { %2017 = vmatprep.mubr.bf16.mxu0 %v1881_v49 }
 0xbd0   : > { %2018 = vmatmul.mubr.bf16.vlgmr.msra.gmra.mrb[28].mxu0 %v1880_v50 }
 0xbd1   : > { %5468 = vmatprep.mubr.msk.bf16.mxu0 %vm6094_vm2, %v6093_v43  ;;  %5453 = vmatpush3.bf16.msra.mxu0 %v5789_v63 }
 0xbd2   : > { %5454 = vmatprep.subr.bf16.mxu0 %v6093_v43 }
 0xbd5   : > { %5455 = vmatpush3.bf16.msra.mxu0 %v5793_v0 }
 0xbd6   : > { %5456 = vmatprep.subr.bf16.mxu0 %v6093_v43 }
 0xbd9   : > { %5457 = vmatpush3.bf16.msra.mxu0 %v5797_v12 }
 0xbda   : > { %5458 = vmatprep.subr.bf16.mxu0 %v6093_v43 }
 0xbdd   : > { %5459 = vmatpush3.bf16.msra.mxu0 %v5801_v15 }
 0xbde   : > { %5460 = vmatprep.subr.bf16.mxu0 %v6093_v43 }
 0xbe1   : > { %5461 = vmatpush3.bf16.msra.mxu0 %v5805_v18 }
 0xbe2   : > { %5462 = vmatprep.subr.bf16.mxu0 %v6093_v43 }
 0xbe5   : > { %5463 = vmatpush3.bf16.msra.mxu0 %v5809_v22 }
 0xbe6   : > { %5464 = vmatprep.subr.bf16.mxu0 %v6093_v43 }
 0xbe9   : > { %5465 = vmatpush3.bf16.msra.mxu0 %v5813_v26 }
 0xbea   : > { %5466 = vmatprep.subr.bf16.mxu0 %v6093_v43 }
 0xbed   : > { %5467 = vmatpush3.bf16.msra.mxu0 %v5817_v32 }
 0xbee   : > { %5496 = vmatprep.subr.bf16.mxu0 %v6093_v43 }
 0xca3   : > { %v5237_v51 = vpop.f32.mrb[28].mxu0 }
 0xca4   : > { %v5238_v53 = vpop.f32.mrb[29].mxu0 }
 0xca5   : > { %v5239_v54 = vadd.f32 %v5238_v53, %v5237_v51  ;;  %v5240_v55 = vpop.f32.mrb[30].mxu0  ;;  %v2097_v53 = vrot.slane %v4847_v41, %v6424_v8 }
 0xca6   : > { %v5241_v56 = vpop.f32.mrb[31].mxu0 }
 0xca7   : > { %v2020_v58 = vadd.f32 %v5239_v54, %v4794_v52 }
 0xca9   : > { %v6658_v59 = vadd.f32 %v2020_v58, %v6537_v31  ;;  %v5792_v31 = vld [vmem:[%s7408_s6 + $0xdc] ss:$12 sps:$4 sm:$0xff]  }
 0xcaa   : > { %2239 = vmatprep.subr.bf16.mxu1 %v5792_v31 }
 0xcab   : > { %v2030_v60 = vsel %vm783_vm1, %v6658_v59, 0.0  ;;  %2240 = vmatpush1.bf16.msra.mxu1 %v5790_v2 }
 0xcac   : > { %2031 = vadd.xlane.f32.xlu0 %v2030_v60  ;;  %2241 = vmatprep.subr.bf16.mxu1 %v5796_v3 }
 0xcaf   : > { %2242 = vmatpush1.bf16.msra.mxu1 %v5794_v4 }
 0xcb0   : > { %2243 = vmatprep.subr.bf16.mxu1 %v5800_v13 }
 0xcb3   : > { %2244 = vmatpush1.bf16.msra.mxu1 %v5798_v14 }
 0xcb4   : > { %2245 = vmatprep.subr.bf16.mxu1 %v5804_v16 }
 0xcb7   : > { %2246 = vmatpush1.bf16.msra.mxu1 %v5802_v17 }
 0xcb8   : > { %2247 = vmatprep.subr.bf16.mxu1 %v5808_v20 }
 0xcbb   : > { %2248 = vmatpush1.bf16.msra.mxu1 %v5806_v21 }
 0xcbc   : > { %2249 = vmatprep.subr.bf16.mxu1 %v5812_v24 }
 0xcbf   : > { %2250 = vmatpush1.bf16.msra.mxu1 %v5810_v25 }
 0xcc0   : > { %2251 = vmatprep.subr.bf16.mxu1 %v5816_v27 }
 0xcc3   : > { %2252 = vmatpush1.bf16.msra.mxu1 %v5814_v30 }
 0xcc4   : > { %5472 = vmatprep.subr.bf16.mxu1 %v6093_v43 }
 0xd39   : > { %v2032_v6 = vpop.xlane.xlu0 %2031 }
 0xd3a   : > { %v2033_v7 = vmul.f32 0.0078125, %v2032_v6 }
 0xd3c   : > { %v2034_v9 = vsub.f32 %v6658_v59, %v2033_v7 }
 0xd3e   : > { %v2035_v10 = vmul.f32 %v2034_v9, %v2034_v9 }
 0xd40   : > { %v2036_v11 = vsel %vm783_vm1, %v2035_v10, 0.0 }
 0xd41   : > { %2037 = vadd.xlane.f32.xlu0 %v2036_v11 }
 0xdce   : > { %v2038_v57 = vpop.xlane.xlu0 %2037 }
 0xdcf   : > { %v2039_v33 = vmul.f32 0.0078125, %v2038_v57 }
 0xdd1   : > { %v2040_v34 = vadd.f32 1e-05, %v2039_v33 }
 0xdd3   : > { %5978 = vrsqrt.f32 %v2040_v34 }
 0xddd   : > { %v5979_v35 = vpop.eup %5978 }
 0xdde   : > { %v2042_v36 = vmul.f32 %v5979_v35, %v2034_v9 }
 0xde0   : > { %v2049_v38 = vmul.f32 %v4813_v23, %v2042_v36 }
 0xde2   : > { %v2056_v39 = vadd.f32 %v4814_v37, %v2049_v38 }
 0xde4   : > { %v2090_v40 = vpack.c.bf16 %v2056_v39, %v2056_v39 }
 0xde6   : > { %2270 = vmatmul.mubr.bf16.vlgmr.msra.gmra.mrb[24].mxu1 %v2090_v40  ;;  %5469 = vmatmul.mubr.bf16.vlgmr.msra.gmra.mrb[32].mxu0 %v2090_v40 }
 0xde7   : > { %5474 = vmatprep.mubr.msk.bf16.mxu1 %vm6094_vm2, %v6093_v43  ;;  %5498 = vmatprep.mubr.msk.bf16.mxu0 %vm6094_vm2, %v6093_v43 }
 0xeb9   : > { %v2271_v44 = vpop.f32.mrb[24].mxu1  ;;  %v2312_v45 = vpop.f32.mrb[32].mxu0 }
 0xeba   : > { %v2273_v47 = vpop.f32.mrb[25].mxu1  ;;  %v5470_v29 = vpop.f32.mrb[33].mxu0  ;;  %v2313_v55 = vadd.f32 %v2312_v45, %v2105_v46  ;;  %v2272_v58 = vadd.f32 %v2271_v44, %v2097_v53 }
 0xebb   : > { %v2274_v48 = vadd.f32 %v2273_v47, %v2101_v42  ;;  %v2275_v49 = vpop.f32.mrb[26].mxu1  ;;  %v2315_v50 = vpop.f32.mrb[34].mxu0 }
 0xebc   : > { %v2276_v51 = vpop.f32.mrb[27].mxu1  ;;  %v5471_v52 = vpop.f32.mrb[35].mxu0  ;;  %v6763_v60 = vpack.c.bf16 %v2313_v55, %v2313_v55  ;;  %v2318_v61 = vpack.c.bf16 %v2272_v58, %v2272_v58 }
 0xebd   : > { %v2319_v54 = vpack.c.bf16 %v2274_v48, %v2274_v48 }
 0xebe   : > { %v2384_v62 = vand.u32 %v6763_v60, %v6437_v28 }
 0xebf   : > { %v2324_v56 = vsel %vm1073_vm3, %v2319_v54, 0 }
 0xec0   : > { %5473 = vmatpush3.bf16.xpose.msra.mxu1 %v2324_v56 }
 0xec1   : > { %5478 = vmatprep.subr.bf16.mxu1 %v6093_v43 }
 0xec7   : > { %5475 = vmatmul.mubr.msk.bf16.vlgmr.msra.gmra.mrb[28].mxu1 %vm1073_vm3, %v2318_v61 }
 0xec8   : > { %5479 = vmatpush3.bf16.msra.mxu1 %v2384_v62  ;;  %5480 = vmatprep.mubr.msk.bf16.mxu1 %vm6094_vm2, %v6093_v43 }
 0xec9   : > { %5484 = vmatprep.subr.bf16.mxu1 %v6093_v43 }
 0xf9a   : > { %v2360_v63 = vpop.f32.mrb[28].mxu1 }
 0xf9b   : > { %v2366_v31 = vmul.f32 0.17677669, %v2360_v63  ;;  %v5476_v0 = vpop.f32.mrb[29].mxu1 }
 0xf9c   : > { %v2363_v2 = vpop.f32.mrb[30].mxu1 }
 0xf9d   : > { %v5477_v3 = vpop.f32.mrb[31].mxu1  ;;  %v2367_v4 = vsel %vm1121_vm6, %v2366_v31, -inf }
 0xf9e   : > { %2368 = vmax.xlane.f32.xlu0 %v2367_v4 }
 0xfb4   : > { %2430 = vrot.lane.b32.xlu0 %v2319_v54, %s7436_s24 }
 0xfb8   : > { %2653 = vrot.lane.b32.xlu0 %v2319_v54, %s7458_s29 }
0x102b   : > { %v2369_v6 = vpop.xlane.xlu0 %2368 }
0x102c   : > { %v2370_v7 = vsub.f32 %v2366_v31, %v2369_v6 }
0x102e   : > { %v2371_v9 = vmul.f32 1.442695, %v2370_v7 }
0x102f   : > { %v2431_v14 = vpop.permute.xlu0 %2430 }
0x1030   : > { %5980 = vpow2.f32 %v2371_v9  ;;  %v2436_v22 = vsel %vm1073_vm3, %v2431_v14, 0 }
0x1033   : > { %v2654_v20 = vpop.permute.xlu0 %2653 }
0x1034   : > { %v2659_v25 = vsel %vm1073_vm3, %v2654_v20, 0 }
0x103a   : > { %v5981_v10 = vpop.eup %5980 }
0x103b   : > { %v2373_v11 = vsel %vm1121_vm6, %v5981_v10, 0.0 }
0x103c   : > { %2374 = vadd.xlane.f32.xlu1 %v2373_v11 }
0x104d   : > { %2427 = vrot.lane.b32.xlu1 %v2318_v61, %s7436_s24 }
0x1051   : > { %2542 = vrot.lane.b32.xlu1 %v2319_v54, %s7459_s20 }
0x1055   : > { %2540 = vrot.lane.b32.xlu1 %v2318_v61, %s7459_s20 }
0x1059   : > { %2651 = vrot.lane.b32.xlu1 %v2318_v61, %s7458_s29 }
0x10c9   : > { %v2375_v12 = vpop.xlane.xlu1 %2374 }
0x10ca   : > { %5982 = vrcp.f32 %v2375_v12 }
0x10cd   : > { %v2428_v13 = vpop.permute.xlu1 %2427 }
0x10d1   : > { %v2543_v15 = vpop.permute.xlu1 %2542 }
0x10d2   : > { %v2548_v16 = vsel %vm1073_vm3, %v2543_v15, 0 }
0x10d3   : > { %5497 = vmatpush3.bf16.xpose.msra.mxu0 %v2548_v16 }
0x10d4   : > { %v5983_v17 = vpop.eup %5982  ;;  %5508 = vmatprep.subr.bf16.mxu0 %v6093_v43 }
0x10d5   : > { %v2377_v18 = vmul.f32 %v5983_v17, %v5981_v10  ;;  %v2541_v24 = vpop.permute.xlu1 %2540 }
0x10d7   : > { %v2378_v21 = vpack.c.bf16 %v2377_v18, %v2377_v18 }
0x10d9   : > { %5481 = vmatmul.mubr.msk.bf16.vlgmr.msra.gmra.mrb[32].mxu1 %vm1135_vm7, %v2378_v21  ;;  %v2652_v26 = vpop.permute.xlu1 %2651 }
0x10da   : > { %5485 = vmatpush3.bf16.xpose.msra.mxu1 %v2436_v22  ;;  %5499 = vmatmul.mubr.msk.bf16.vlgmr.msra.gmra.mrb[36].mxu0 %vm1073_vm3, %v2541_v24 }
0x10db   : > { %5509 = vmatpush3.bf16.xpose.msra.mxu0 %v2659_v25  ;;  %5486 = vmatprep.mubr.msk.bf16.mxu1 %vm6094_vm2, %v6093_v43  ;;  %v5818_v25 = vld [vmem:[%s7410_s8 + $0x40] sm:$0xff]  }
0x10dc   : > { %5510 = vmatprep.mubr.msk.bf16.mxu0 %vm6094_vm2, %v6093_v43  ;;  %5490 = vmatprep.subr.bf16.mxu1 %v6093_v43 }
0x10dd   : > { %5520 = vmatprep.subr.bf16.mxu0 %v6093_v43 }
0x10e1   : > { %5487 = vmatmul.mubr.msk.bf16.vlgmr.msra.gmra.mrb[36].mxu1 %vm1073_vm3, %v2428_v13 }
0x10e2   : > { %5511 = vmatmul.mubr.msk.bf16.vlgmr.msra.gmra.mrb[40].mxu0 %vm1073_vm3, %v2652_v26  ;;  %5492 = vmatprep.mubr.msk.bf16.mxu1 %vm6094_vm2, %v6093_v43  ;;  %v5819_v26 = vld [vmem:[%s7410_s8 + $0x48] sm:$0xff]  }
0x10e3   : > { %5536 = vmatprep.mubr.msk.bf16.mxu0 %vm6094_vm2, %v6093_v43  ;;  %5521 = vmatpush3.bf16.msra.mxu0 %v5818_v25 }
0x10e4   : > { %5522 = vmatprep.subr.bf16.mxu0 %v6093_v43 }
0x10e7   : > { %5523 = vmatpush3.bf16.msra.mxu0 %v5819_v26 }
0x10e8   : > { %5524 = vmatprep.subr.bf16.mxu0 %v6093_v43 }
0x11ac   : > { %v6797_v27 = vpop.f32.mrb[32].mxu1 }
0x11ad   : > { %v5482_v30 = vpop.f32.mrb[33].mxu1  ;;  %v2584_v32 = vpop.f32.mrb[36].mxu0 }
0x11ae   : > { %v2590_v57 = vmul.f32 0.17677669, %v2584_v32  ;;  %v2423_v33 = vpop.f32.mrb[34].mxu1  ;;  %v5500_v34 = vpop.f32.mrb[37].mxu0  ;;  %v5820_v30 = vld [vmem:[%s7410_s8 + $0x50] sm:$0xff]   ;;  %v5821_v32 = vld [vmem:[%s7410_s8 + $0x58] sm:$0xff]  }
0x11af   : > { %v5483_v35 = vpop.f32.mrb[35].mxu1  ;;  %v2587_v23 = vpop.f32.mrb[38].mxu0  ;;  %5525 = vmatpush3.bf16.msra.mxu0 %v5820_v30  ;;  %v5823_v33 = vld [vmem:[%s7410_s8 + $0x68] sm:$0xff]   ;;  %v5824_v34 = vld [vmem:[%s7410_s8 + $0x70] sm:$0xff]   ;;  %v4908_v30 = vld [vmem:[%s7412_s10 + $0x1] ss:$0 sm:$0xff] }
0x11b0   : > { %v5501_v36 = vpop.f32.mrb[39].mxu0  ;;  %v2591_v37 = vsel %vm1121_vm6, %v2590_v57, -inf  ;;  %5526 = vmatprep.subr.bf16.mxu0 %v6093_v43 }
0x11b1   : > { %2592 = vmax.xlane.f32.xlu1 %v2591_v37 }
0x11b3   : > { %5527 = vmatpush3.bf16.msra.mxu0 %v5821_v32 }
0x11b4   : > { %v2472_v38 = vpop.f32.mrb[36].mxu1  ;;  %5528 = vmatprep.subr.bf16.mxu0 %v6093_v43 }
0x11b5   : > { %v2478_v39 = vmul.f32 0.17677669, %v2472_v38  ;;  %v5488_v40 = vpop.f32.mrb[37].mxu1  ;;  %v2695_v41 = vpop.f32.mrb[40].mxu0  ;;  %v5825_v38 = vld [vmem:[%s7410_s8 + $0x78] sm:$0xff]  }
0x11b6   : > { %v2475_v42 = vpop.f32.mrb[38].mxu1  ;;  %v5512_v44 = vpop.f32.mrb[41].mxu0  ;;  %v2701_v45 = vmul.f32 0.17677669, %v2695_v41 }
0x11b7   : > { %v5489_v46 = vpop.f32.mrb[39].mxu1  ;;  %v2698_v47 = vpop.f32.mrb[42].mxu0  ;;  %v2479_v29 = vsel %vm1121_vm6, %v2478_v39, -inf }
0x11b8   : > { %v5513_v48 = vpop.f32.mrb[43].mxu0  ;;  %2480 = vmax.xlane.f32.xlu0 %v2479_v29  ;;  %v2702_v49 = vsel %vm1121_vm6, %v2701_v45, -inf }
0x11bc   : > { %2703 = vmax.xlane.f32.xlu0 %v2702_v49 }
0x123e   : > { %v2593_v50 = vpop.xlane.xlu1 %2592 }
0x123f   : > { %v2594_v51 = vsub.f32 %v2590_v57, %v2593_v50  ;;  %v5822_v57 = vld [vmem:[%s7410_s8 + $0x60] sm:$0xff]  }
0x1240   : > { %5529 = vmatpush3.bf16.msra.mxu0 %v5822_v57  ;;  %v4909_v57 = vld [vmem:[%s7413_s11 + $0x1] ss:$0 sm:$0xff] }
0x1241   : > { %v2595_v52 = vmul.f32 1.442695, %v2594_v51  ;;  %5530 = vmatprep.subr.bf16.mxu0 %v6093_v43 }
0x1243   : > { %5984 = vpow2.f32 %v2595_v52 }
0x1244   : > { %5531 = vmatpush3.bf16.msra.mxu0 %v5823_v33 }
0x1245   : > { %v2481_v53 = vpop.xlane.xlu0 %2480  ;;  %5532 = vmatprep.subr.bf16.mxu0 %v6093_v43 }
0x1246   : > { %v2482_v54 = vsub.f32 %v2478_v39, %v2481_v53 }
0x1248   : > { %v2483_v55 = vmul.f32 1.442695, %v2482_v54  ;;  %5533 = vmatpush3.bf16.msra.mxu0 %v5824_v34  ;;  %v4897_v54 = vld [vmem:[%s7411_s9 + $0x1] ss:$0 sm:$0xff] }
0x1249   : > { %v2704_v56 = vpop.xlane.xlu0 %2703  ;;  %5534 = vmatprep.subr.bf16.mxu0 %v6093_v43 }
0x124a   : > { %5986 = vpow2.f32 %v2483_v55  ;;  %v2705_v58 = vsub.f32 %v2701_v45, %v2704_v56 }
0x124c   : > { %v2706_v61 = vmul.f32 1.442695, %v2705_v58  ;;  %5535 = vmatpush3.bf16.msra.mxu0 %v5825_v38  ;;  %v5853_v38 = vld [vmem:[%s7416_s14 + $0x88] sm:$0xff]  }
0x124d   : > { %v5985_v62 = vpop.eup %5984 }
0x124e   : > { %5988 = vpow2.f32 %v2706_v61  ;;  %v2597_v63 = vsel %vm1121_vm6, %v5985_v62, 0.0 }
0x124f   : > { %2598 = vadd.xlane.f32.xlu0 %v2597_v63 }
0x1254   : > { %v5987_v31 = vpop.eup %5986 }
0x1255   : > { %v2485_v0 = vsel %vm1121_vm6, %v5987_v31, 0.0 }
0x1256   : > { %2486 = vadd.xlane.f32.xlu0 %v2485_v0  ;;  %v5828_v0 = vld [vmem:[%s7414_s12 + $0x84] ss:$8 sps:$4 sm:$0xff]  }
0x1258   : > { %v5989_v2 = vpop.eup %5988 }
0x1259   : > { %v2708_v3 = vsel %vm1121_vm6, %v5989_v2, 0.0 }
0x125a   : > { %2709 = vadd.xlane.f32.xlu1 %v2708_v3  ;;  %v5834_v3 = vld [vmem:[%s7414_s12 + $0xa4] ss:$8 sps:$4 sm:$0xff]  }
0x126b   : > { %2603 = vrot.lane.b32.xlu1 %v6763_v60, %s7459_s20 }
0x126c   : > { %2492 = vrot.lane.b32.xlu0 %v6763_v60, %s7436_s24 }
0x126f   : > { %2714 = vrot.lane.b32.xlu1 %v6763_v60, %s7458_s29 }
0x12dc   : > { %v2599_v4 = vpop.xlane.xlu0 %2598 }
0x12e3   : > { %v2487_v6 = vpop.xlane.xlu0 %2486 }
0x12e4   : > { %5990 = vrcp.f32 %v2487_v6 }
0x12e5   : > { %5992 = vrcp.f32 %v2599_v4  ;;  %v5832_v4 = vld [vmem:[%s7414_s12 + $0xa0] ss:$8 sps:$4 sm:$0xff]  }
0x12e7   : > { %v2493_v7 = vpop.permute.xlu0 %2492  ;;  %v2710_v10 = vpop.xlane.xlu1 %2709 }
0x12e8   : > { %v2498_v9 = vand.u32 %v2493_v7, %v6437_v28  ;;  %5994 = vrcp.f32 %v2710_v10 }
0x12ea   : > { %5491 = vmatpush3.bf16.msra.mxu1 %v2498_v9 }
0x12eb   : > { %5502 = vmatprep.subr.bf16.mxu1 %v6093_v43  ;;  %v2604_v13 = vpop.permute.xlu1 %2603 }
0x12ec   : > { %v2609_v16 = vand.u32 %v2604_v13, %v6437_v28  ;;  %v5835_v13 = vld [vmem:[%s7414_s12 + $0xb0] ss:$8 sps:$4 sm:$0xff]  }
0x12ee   : > { %v5991_v11 = vpop.eup %5990 }
0x12ef   : > { %v2489_v12 = vmul.f32 %v5991_v11, %v5987_v31  ;;  %v5993_v15 = vpop.eup %5992  ;;  %v2715_v17 = vpop.permute.xlu1 %2714  ;;  %v5826_v31 = vld [vmem:[%s7414_s12 + $0x80] ss:$8 sps:$4 sm:$0xff]  }
0x12f0   : > { %v2601_v60 = vmul.f32 %v5993_v15, %v5985_v62  ;;  %v2720_v21 = vand.u32 %v2715_v17, %v6437_v28  ;;  %v5838_v15 = vld [vmem:[%s7414_s12 + $0xc0] ss:$8 sps:$4 sm:$0xff]   ;;  %v5846_v17 = vld [vmem:[%s7414_s12 + $0xe4] ss:$8 sps:$4 sm:$0xff]  }
0x12f1   : > { %v2490_v14 = vpack.c.bf16 %v2489_v12, %v2489_v12  ;;  %v5837_v12 = vld [vmem:[%s7414_s12 + $0xb4] ss:$8 sps:$4 sm:$0xff]  }
0x12f2   : > { %v2602_v18 = vpack.c.bf16 %v2601_v60, %v2601_v60  ;;  %v5995_v20 = vpop.eup %5994  ;;  %v5841_v60 = vld [vmem:[%s7414_s12 + $0xd0] ss:$8 sps:$4 sm:$0xff]  }
0x12f3   : > { %5493 = vmatmul.mubr.msk.bf16.vlgmr.msra.gmra.mrb[40].mxu1 %vm1135_vm7, %v2490_v14  ;;  %v2712_v22 = vmul.f32 %v5995_v20, %v5989_v2  ;;  %v5831_v2 = vld [vmem:[%s7414_s12 + $0x94] ss:$8 sps:$4 sm:$0xff]   ;;  %v5840_v14 = vld [vmem:[%s7414_s12 + $0xc4] ss:$8 sps:$4 sm:$0xff]  }
0x12f4   : > { %5503 = vmatpush3.bf16.msra.mxu1 %v2609_v16  ;;  %5504 = vmatprep.mubr.msk.bf16.mxu1 %vm6094_vm2, %v6093_v43  ;;  %v5843_v16 = vld [vmem:[%s7414_s12 + $0xd4] ss:$8 sps:$4 sm:$0xff]  }
0x12f5   : > { %5514 = vmatprep.subr.bf16.mxu1 %v6093_v43  ;;  %v2713_v24 = vpack.c.bf16 %v2712_v22, %v2712_v22  ;;  %v5849_v20 = vld [vmem:[%s7414_s12 + $0xf4] ss:$8 sps:$4 sm:$0xff]  }
0x12fb   : > { %5505 = vmatmul.mubr.msk.bf16.vlgmr.msra.gmra.mrb[44].mxu1 %vm1135_vm7, %v2602_v18  ;;  %v5844_v18 = vld [vmem:[%s7414_s12 + $0xe0] ss:$8 sps:$4 sm:$0xff]  }
0x12fc   : > { %5515 = vmatpush3.bf16.msra.mxu1 %v2720_v21  ;;  %5516 = vmatprep.mubr.msk.bf16.mxu1 %vm6094_vm2, %v6093_v43  ;;  %v5847_v21 = vld [vmem:[%s7414_s12 + $0xf0] ss:$8 sps:$4 sm:$0xff]  }
0x12fd   : > { %3034 = vmatprep.subr.bf16.mxu1 %v5828_v0 }
0x1303   : > { %5517 = vmatmul.mubr.msk.bf16.vlgmr.msra.gmra.mrb[48].mxu1 %vm1135_vm7, %v2713_v24 }
0x1304   : > { %3066 = vmatprep.mubr.bf16.mxu1 %v6092_v1  ;;  %3035 = vmatpush1.bf16.msra.mxu1 %v5826_v31 }
0x1305   : > { %3036 = vmatprep.subr.bf16.mxu1 %v5831_v2 }
0x13c6   : > { %v2534_v35 = vpop.f32.mrb[40].mxu1 }
0x13c7   : > { %2763 = vrot.lane.b32.xlu1 %v2534_v35, %s7458_s29  ;;  %v5494_v23 = vpop.f32.mrb[41].mxu1 }
0x13c8   : > { %v2537_v36 = vpop.f32.mrb[42].mxu1  ;;  %v5850_v23 = vld [vmem:[%s7416_s14 + $0xc0] sm:$0xff]  }
0x13c9   : > { %v5495_v37 = vpop.f32.mrb[43].mxu1  ;;  %v5851_v36 = vld [vmem:[%s7416_s14 + $0x80] sm:$0xff]   ;;  %5277 = vmatprep.subr.bf16.mxu0 %v5850_v23 }
0x13ca   : > { %v5852_v37 = vld [vmem:[%s7416_s14 + $0xc8] sm:$0xff]  }
0x13cb   : > { %v5873_v23 = vld [vmem:[%s7408_s6 + $0x1a0] ss:$12 sps:$4 sm:$0xff]  }
0x13ce   : > { %v2645_v39 = vpop.f32.mrb[44].mxu1 }
0x13cf   : > { %2767 = vrot.lane.b32.xlu0 %v2645_v39, %s7459_s20  ;;  %v5506_v40 = vpop.f32.mrb[45].mxu1  ;;  %v5854_v39 = vld [vmem:[%s7416_s14 + $0xd0] sm:$0xff]  }
0x13d0   : > { %v2648_v41 = vpop.f32.mrb[46].mxu1  ;;  %v5855_v40 = vld [vmem:[%s7416_s14 + $0x90] sm:$0xff]  }
0x13d1   : > { %v5507_v42 = vpop.f32.mrb[47].mxu1  ;;  %v5856_v41 = vld [vmem:[%s7416_s14 + $0xd8] sm:$0xff]  }
0x13d2   : > { %v5857_v42 = vld [vmem:[%s7416_s14 + $0x98] sm:$0xff]  }
0x13d6   : > { %v2756_v44 = vpop.f32.mrb[48].mxu1 }
0x13d7   : > { %2771 = vrot.lane.b32.xlu1 %v2756_v44, %s7436_s24  ;;  %v5518_v45 = vpop.f32.mrb[49].mxu1  ;;  %v5858_v44 = vld [vmem:[%s7416_s14 + $0xe0] sm:$0xff]  }
0x13d8   : > { %v2759_v46 = vpop.f32.mrb[50].mxu1  ;;  %v5859_v45 = vld [vmem:[%s7416_s14 + $0xa0] sm:$0xff]  }
0x13d9   : > { %v5519_v47 = vpop.f32.mrb[51].mxu1  ;;  %v5860_v46 = vld [vmem:[%s7416_s14 + $0xe8] sm:$0xff]  }
0x13da   : > { %v5861_v47 = vld [vmem:[%s7416_s14 + $0xa8] sm:$0xff]  }
0x1439   : > { %v2764_v29 = vpop.permute.xlu1 %2763 }
0x143a   : > { %v2774_v49 = vsel %vm1073_vm3, %v6797_v27, %v2764_v29  ;;  %v5862_v29 = vld [vmem:[%s7416_s14 + $0xf0] sm:$0xff]  }
0x1441   : > { %v2768_v48 = vpop.permute.xlu0 %2767 }
0x1442   : > { %v2775_v50 = vsel %vm735_vm0, %v2774_v49, %v2768_v48  ;;  %v5863_v48 = vld [vmem:[%s7416_s14 + $0xb0] sm:$0xff]   ;;  %v5864_v49 = vld [vmem:[%s7416_s14 + $0xf8] sm:$0xff]  }
0x1449   : > { %v2772_v51 = vpop.permute.xlu1 %2771 }
0x144a   : > { %v2776_v52 = vsel %vm1536_vm8, %v2775_v50, %v2772_v51  ;;  %v5865_v50 = vld [vmem:[%s7416_s14 + $0xb8] sm:$0xff]   ;;  %v4926_v51 = vld [vmem:[%s7415_s13 + $0x2] sm:$0x3] }
0x144b   : > { %v2794_v53 = vpack.c.bf16 %v2776_v52, %v2776_v52  ;;  %v2947_v52 = vrot.slane %v4926_v51, %v6424_v8 }
0x144d   : > { %5537 = vmatmul.mubr.bf16.vlgmr.msra.gmra.mrb[44].mxu0 %v2794_v53  ;;  %v2951_v53 = vrot.slane %v4926_v51, %v6418_v5  ;;  %v5888_v51 = vld [vmem:[%s7408_s6 + $0x1fc] ss:$12 sps:$4 sm:$0xff]  }
0x144e   : > { %5278 = vmatpush3.bf16.msra.mxu0 %v5851_v36  ;;  %v5870_v36 = vld [vmem:[%s7408_s6 + $0x198] ss:$12 sps:$4 sm:$0xff]  }
0x144f   : > { %5279 = vmatprep.subr.bf16.mxu0 %v5852_v37  ;;  %v5876_v37 = vld [vmem:[%s7408_s6 + $0x1b4] ss:$12 sps:$4 sm:$0xff]  }
0x1452   : > { %5280 = vmatpush3.bf16.msra.mxu0 %v5853_v38  ;;  %v5874_v38 = vld [vmem:[%s7408_s6 + $0x1b0] ss:$12 sps:$4 sm:$0xff]  }
0x1453   : > { %5281 = vmatprep.subr.bf16.mxu0 %v5854_v39 }
0x1456   : > { %5282 = vmatpush3.bf16.msra.mxu0 %v5855_v40 }
0x1457   : > { %5283 = vmatprep.subr.bf16.mxu0 %v5856_v41 }
0x145a   : > { %5284 = vmatpush3.bf16.msra.mxu0 %v5857_v42 }
0x145b   : > { %5285 = vmatprep.subr.bf16.mxu0 %v5858_v44 }
0x145e   : > { %5286 = vmatpush3.bf16.msra.mxu0 %v5859_v45  ;;  %v5877_v45 = vld [vmem:[%s7408_s6 + $0x1b8] ss:$12 sps:$4 sm:$0xff]  }
0x145f   : > { %5287 = vmatprep.subr.bf16.mxu0 %v5860_v46  ;;  %v5880_v46 = vld [vmem:[%s7408_s6 + $0x1cc] ss:$12 sps:$4 sm:$0xff]  }
0x1462   : > { %5288 = vmatpush3.bf16.msra.mxu0 %v5861_v47  ;;  %v5878_v47 = vld [vmem:[%s7408_s6 + $0x1c8] ss:$12 sps:$4 sm:$0xff]  }
0x1463   : > { %5289 = vmatprep.subr.bf16.mxu0 %v5862_v29  ;;  %v5881_v29 = vld [vmem:[%s7408_s6 + $0x1d0] ss:$12 sps:$4 sm:$0xff]  }
0x1466   : > { %5290 = vmatpush3.bf16.msra.mxu0 %v5863_v48  ;;  %v5884_v48 = vld [vmem:[%s7408_s6 + $0x1e4] ss:$12 sps:$4 sm:$0xff]  }
0x1467   : > { %5291 = vmatprep.subr.bf16.mxu0 %v5864_v49  ;;  %v5882_v49 = vld [vmem:[%s7408_s6 + $0x1e0] ss:$12 sps:$4 sm:$0xff]  }
0x146a   : > { %5292 = vmatpush3.bf16.msra.mxu0 %v5865_v50  ;;  %v5885_v50 = vld [vmem:[%s7408_s6 + $0x1e8] ss:$12 sps:$4 sm:$0xff]  }
0x146b   : > { %5540 = vmatprep.subr.bf16.mxu0 %v6093_v43 }
0x1520   : > { %v2885_v55 = vpop.f32.mrb[44].mxu0 }
0x1521   : > { %v2886_v56 = vadd.f32 %v4897_v54, %v2885_v55  ;;  %v5538_v58 = vpop.f32.mrb[45].mxu0 }
0x1522   : > { %v2888_v61 = vpop.f32.mrb[46].mxu0 }
0x1523   : > { %v6866_v62 = vadd.f32 %v2886_v56, %v6658_v59  ;;  %v5539_v63 = vpop.f32.mrb[47].mxu0  ;;  %v5829_v59 = vld [vmem:[%s7414_s12 + $0x90] ss:$8 sps:$4 sm:$0xff]  }
0x1524   : > { %3037 = vmatpush1.bf16.msra.mxu1 %v5829_v59 }
0x1525   : > { %v2896_v27 = vsel %vm783_vm1, %v6866_v62, 0.0  ;;  %3038 = vmatprep.subr.bf16.mxu1 %v5834_v3 }
0x1526   : > { %2897 = vadd.xlane.f32.xlu0 %v2896_v27 }
0x1528   : > { %3039 = vmatpush1.bf16.msra.mxu1 %v5832_v4 }
0x1529   : > { %3040 = vmatprep.subr.bf16.mxu1 %v5837_v12 }
0x152c   : > { %3041 = vmatpush1.bf16.msra.mxu1 %v5835_v13 }
0x152d   : > { %3042 = vmatprep.subr.bf16.mxu1 %v5840_v14 }
0x1530   : > { %3043 = vmatpush1.bf16.msra.mxu1 %v5838_v15 }
0x1531   : > { %3044 = vmatprep.subr.bf16.mxu1 %v5843_v16 }
0x1534   : > { %3045 = vmatpush1.bf16.msra.mxu1 %v5841_v60 }
0x1535   : > { %3046 = vmatprep.subr.bf16.mxu1 %v5846_v17 }
0x1538   : > { %3047 = vmatpush1.bf16.msra.mxu1 %v5844_v18 }
0x1539   : > { %3048 = vmatprep.subr.bf16.mxu1 %v5849_v20 }
0x153c   : > { %3049 = vmatpush1.bf16.msra.mxu1 %v5847_v21  ;;  %v4976_v21 = vld [vmem:[%s7417_s15 + $0x1] ss:$0 sm:$0xff] }
0x15b3   : > { %v2898_v6 = vpop.xlane.xlu0 %2897 }
0x15b4   : > { %v2899_v7 = vmul.f32 0.0078125, %v2898_v6 }
0x15b6   : > { %v2900_v9 = vsub.f32 %v6866_v62, %v2899_v7 }
0x15b8   : > { %v2901_v10 = vmul.f32 %v2900_v9, %v2900_v9 }
0x15ba   : > { %v2902_v11 = vsel %vm783_vm1, %v2901_v10, 0.0 }
0x15bb   : > { %2903 = vadd.xlane.f32.xlu1 %v2902_v11 }
0x1648   : > { %v2904_v22 = vpop.xlane.xlu1 %2903 }
0x1649   : > { %v2905_v24 = vmul.f32 0.0078125, %v2904_v22 }
0x164b   : > { %v2906_v25 = vadd.f32 1e-05, %v2905_v24 }
0x164d   : > { %5996 = vrsqrt.f32 %v2906_v25 }
0x1657   : > { %v5997_v26 = vpop.eup %5996 }
0x1658   : > { %v2908_v32 = vmul.f32 %v5997_v26, %v2900_v9 }
0x165a   : > { %v2915_v33 = vmul.f32 %v4908_v30, %v2908_v32 }
0x165c   : > { %v2922_v34 = vadd.f32 %v4909_v57, %v2915_v33  ;;  %v5866_v33 = vld [vmem:[%s7408_s6 + $0x180] ss:$12 sps:$4 sm:$0xff]  }
0x165e   : > { %v2940_v35 = vpack.c.bf16 %v2922_v34, %v2922_v34  ;;  %v5868_v34 = vld [vmem:[%s7408_s6 + $0x184] ss:$12 sps:$4 sm:$0xff]  }
0x165f   : > { %3484 = vmatprep.subr.bf16.mxu1 %v5868_v34 }
0x1660   : > { %3067 = vmatmul.mubr.bf16.vlgmr.msra.gmra.mrb[52].mxu1 %v2940_v35  ;;  %v5869_v35 = vld [vmem:[%s7408_s6 + $0x188] ss:$12 sps:$4 sm:$0xff]  }
0x1661   : > { %3516 = vmatprep.mubr.bf16.mxu1 %v6092_v1  ;;  %3485 = vmatpush1.bf16.msra.mxu1 %v5866_v33 }
0x1733   : > { %v3068_v54 = vpop.f32.mrb[52].mxu1 }
0x1734   : > { %v3069_v55 = vadd.f32 %v3068_v54, %v2947_v52  ;;  %v3070_v56 = vpop.f32.mrb[53].mxu1  ;;  %v5886_v52 = vld [vmem:[%s7408_s6 + $0x1f8] ss:$12 sps:$4 sm:$0xff]   ;;  %v5892_v54 = vld [vmem:[%s7408_s6 + $0x214] ss:$12 sps:$4 sm:$0xff]  }
0x1735   : > { %v3071_v58 = vadd.f32 %v3070_v56, %v2951_v53  ;;  %v3072_v61 = vpop.f32.mrb[54].mxu1  ;;  %v5889_v53 = vld [vmem:[%s7408_s6 + $0x200] ss:$12 sps:$4 sm:$0xff]   ;;  %v5893_v56 = vld [vmem:[%s7408_s6 + $0x218] ss:$12 sps:$4 sm:$0xff]  }
0x1736   : > { %v3077_v63 = vmul.f32 0.044715, %v3069_v55  ;;  %v3073_v27 = vpop.f32.mrb[55].mxu1  ;;  %v3075_v12 = vmul.f32 0.5, %v3069_v55  ;;  %v5894_v61 = vld [vmem:[%s7408_s6 + $0x228] ss:$12 sps:$4 sm:$0xff]  }
0x1737   : > { %v3078_v31 = vmul.f32 0.044715, %v3071_v58  ;;  %v3076_v14 = vmul.f32 0.5, %v3071_v58 }
0x1738   : > { %v3079_v0 = vmul.f32 %v3077_v63, %v3069_v55  ;;  %v5897_v63 = vld [vmem:[%s7408_s6 + $0x230] ss:$12 sps:$4 sm:$0xff]  }
0x1739   : > { %v3080_v2 = vmul.f32 %v3078_v31, %v3071_v58 }
0x173a   : > { %v3081_v59 = vmul.f32 %v3079_v0, %v3069_v55 }
0x173b   : > { %v3082_v3 = vmul.f32 %v3080_v2, %v3071_v58 }
0x173c   : > { %v3083_v4 = vadd.f32 %v3081_v59, %v3069_v55  ;;  %v5890_v55 = vld [vmem:[%s7408_s6 + $0x210] ss:$12 sps:$4 sm:$0xff]   ;;  %v4995_v59 = vld [vmem:[%s7457_s30 + $0x2] ss:$0 sm:$0xff] }
0x173d   : > { %v3084_v6 = vadd.f32 %v3082_v3, %v3071_v58  ;;  %v5896_v58 = vld [vmem:[%s7408_s6 + $0x22c] ss:$12 sps:$4 sm:$0xff]  }
0x173e   : > { %v3085_v7 = vmul.f32 0.7978846, %v3083_v4  ;;  %v4996_v4 = vld [vmem:[%s7407_s5 + $0x2] ss:$0 sm:$0xff] }
0x173f   : > { %v3086_v9 = vmul.f32 0.7978846, %v3084_v6 }
0x1740   : > { %5998 = vtanh.f32 %v3085_v7 }
0x1741   : > { %6000 = vtanh.f32 %v3086_v9 }
0x174a   : > { %v5999_v10 = vpop.eup %5998 }
0x174b   : > { %v6001_v11 = vpop.eup %6000  ;;  %v3089_v13 = vadd.f32 1.0, %v5999_v10  ;;  %v5029_v10 = vld [vmem:[%s7409_s7 + $0x6] sm:$0x7] }
0x174c   : > { %v3090_v15 = vadd.f32 1.0, %v6001_v11  ;;  %v3348_v11 = vrot.slane %v5029_v10, %v6418_v5 }
0x174d   : > { %v3091_v16 = vmul.f32 %v3089_v13, %v3075_v12 }
0x174e   : > { %v3092_v60 = vmul.f32 %v3090_v15, %v3076_v14  ;;  %v3352_v14 = vrot.slane %v5029_v10, %v6434_v19 }
0x174f   : > { %v3126_v18 = vpack.c.bf16 %v3091_v16, %v3091_v16 }
0x1750   : > { %v3127_v17 = vpack.c.bf16 %v3092_v60, %v3092_v60 }
0x1752   : > { %3264 = vmatprep.mubr.bf16.mxu0 %v3127_v17 }
0x1753   : > { %3265 = vmatmul.mubr.bf16.vlgmr.msra.gmra.mrb[48].mxu0 %v3126_v18 }
0x1754   : > { %5556 = vmatprep.mubr.msk.bf16.mxu0 %vm6094_vm2, %v6093_v43  ;;  %5541 = vmatpush3.bf16.msra.mxu0 %v5869_v35 }
0x1755   : > { %5542 = vmatprep.subr.bf16.mxu0 %v6093_v43 }
0x1758   : > { %5543 = vmatpush3.bf16.msra.mxu0 %v5873_v23 }
0x1759   : > { %5544 = vmatprep.subr.bf16.mxu0 %v6093_v43 }
0x175c   : > { %5545 = vmatpush3.bf16.msra.mxu0 %v5877_v45 }
0x175d   : > { %5546 = vmatprep.subr.bf16.mxu0 %v6093_v43 }
0x1760   : > { %5547 = vmatpush3.bf16.msra.mxu0 %v5881_v29 }
0x1761   : > { %5548 = vmatprep.subr.bf16.mxu0 %v6093_v43 }
0x1764   : > { %5549 = vmatpush3.bf16.msra.mxu0 %v5885_v50 }
0x1765   : > { %5550 = vmatprep.subr.bf16.mxu0 %v6093_v43 }
0x1768   : > { %5551 = vmatpush3.bf16.msra.mxu0 %v5889_v53 }
0x1769   : > { %5552 = vmatprep.subr.bf16.mxu0 %v6093_v43 }
0x176c   : > { %5553 = vmatpush3.bf16.msra.mxu0 %v5893_v56 }
0x176d   : > { %5554 = vmatprep.subr.bf16.mxu0 %v6093_v43 }
0x1770   : > { %5555 = vmatpush3.bf16.msra.mxu0 %v5897_v63 }
0x1771   : > { %5584 = vmatprep.subr.bf16.mxu0 %v6093_v43 }
0x1826   : > { %v5293_v20 = vpop.f32.mrb[48].mxu0 }
0x1827   : > { %v5294_v22 = vpop.f32.mrb[49].mxu0 }
0x1828   : > { %v5295_v24 = vadd.f32 %v5294_v22, %v5293_v20  ;;  %v5296_v25 = vpop.f32.mrb[50].mxu0  ;;  %v3344_v22 = vrot.slane %v5029_v10, %v6424_v8 }
0x1829   : > { %v5297_v26 = vpop.f32.mrb[51].mxu0 }
0x182a   : > { %v3267_v30 = vadd.f32 %v5295_v24, %v4976_v21 }
0x182c   : > { %v6987_v32 = vadd.f32 %v3267_v30, %v6866_v62  ;;  %v5872_v62 = vld [vmem:[%s7408_s6 + $0x19c] ss:$12 sps:$4 sm:$0xff]  }
0x182d   : > { %3486 = vmatprep.subr.bf16.mxu1 %v5872_v62 }
0x182e   : > { %v3277_v57 = vsel %vm783_vm1, %v6987_v32, 0.0  ;;  %3487 = vmatpush1.bf16.msra.mxu1 %v5870_v36 }
0x182f   : > { %3278 = vadd.xlane.f32.xlu0 %v3277_v57  ;;  %3488 = vmatprep.subr.bf16.mxu1 %v5876_v37 }
0x1832   : > { %3489 = vmatpush1.bf16.msra.mxu1 %v5874_v38 }
0x1833   : > { %3490 = vmatprep.subr.bf16.mxu1 %v5880_v46 }
0x1836   : > { %3491 = vmatpush1.bf16.msra.mxu1 %v5878_v47 }
0x1837   : > { %3492 = vmatprep.subr.bf16.mxu1 %v5884_v48 }
0x183a   : > { %3493 = vmatpush1.bf16.msra.mxu1 %v5882_v49 }
0x183b   : > { %3494 = vmatprep.subr.bf16.mxu1 %v5888_v51 }
0x183e   : > { %3495 = vmatpush1.bf16.msra.mxu1 %v5886_v52 }
0x183f   : > { %3496 = vmatprep.subr.bf16.mxu1 %v5892_v54 }
0x1842   : > { %3497 = vmatpush1.bf16.msra.mxu1 %v5890_v55 }
0x1843   : > { %3498 = vmatprep.subr.bf16.mxu1 %v5896_v58 }
0x1846   : > { %3499 = vmatpush1.bf16.msra.mxu1 %v5894_v61 }
0x1847   : > { %5560 = vmatprep.subr.bf16.mxu1 %v6093_v43 }
0x18bc   : > { %v3279_v39 = vpop.xlane.xlu0 %3278 }
0x18bd   : > { %v3280_v40 = vmul.f32 0.0078125, %v3279_v39 }
0x18bf   : > { %v3281_v41 = vsub.f32 %v6987_v32, %v3280_v40 }
0x18c1   : > { %v3282_v42 = vmul.f32 %v3281_v41, %v3281_v41 }
0x18c3   : > { %v3283_v44 = vsel %vm783_vm1, %v3282_v42, 0.0 }
0x18c4   : > { %3284 = vadd.xlane.f32.xlu0 %v3283_v44 }
0x1951   : > { %v3285_v27 = vpop.xlane.xlu0 %3284 }
0x1952   : > { %v3286_v31 = vmul.f32 0.0078125, %v3285_v27 }
0x1954   : > { %v3287_v0 = vadd.f32 1e-05, %v3286_v31 }
0x1956   : > { %6002 = vrsqrt.f32 %v3287_v0 }
0x1960   : > { %v6003_v2 = vpop.eup %6002 }
0x1961   : > { %v3289_v3 = vmul.f32 %v6003_v2, %v3281_v41 }
0x1963   : > { %v3296_v6 = vmul.f32 %v4995_v59, %v3289_v3 }
0x1965   : > { %v3303_v7 = vadd.f32 %v4996_v4, %v3296_v6 }
0x1967   : > { %v3337_v9 = vpack.c.bf16 %v3303_v7, %v3303_v7 }
0x1969   : > { %3517 = vmatmul.mubr.bf16.vlgmr.msra.gmra.mrb[56].mxu1 %v3337_v9  ;;  %5557 = vmatmul.mubr.bf16.vlgmr.msra.gmra.mrb[52].mxu0 %v3337_v9 }
0x196a   : > { %5562 = vmatprep.mubr.msk.bf16.mxu1 %vm6094_vm2, %v6093_v43  ;;  %5586 = vmatprep.mubr.msk.bf16.mxu0 %vm6094_vm2, %v6093_v43 }
0x1a3c   : > { %v3518_v12 = vpop.f32.mrb[56].mxu1  ;;  %v3559_v13 = vpop.f32.mrb[52].mxu0 }
0x1a3d   : > { %v3520_v15 = vpop.f32.mrb[57].mxu1  ;;  %v5558_v16 = vpop.f32.mrb[53].mxu0  ;;  %v3560_v25 = vadd.f32 %v3559_v13, %v3352_v14  ;;  %v3519_v30 = vadd.f32 %v3518_v12, %v3344_v22 }
0x1a3e   : > { %v3521_v60 = vadd.f32 %v3520_v15, %v3348_v11  ;;  %v3522_v17 = vpop.f32.mrb[58].mxu1  ;;  %v3562_v18 = vpop.f32.mrb[54].mxu0 }
0x1a3f   : > { %v3523_v20 = vpop.f32.mrb[59].mxu1  ;;  %v5559_v21 = vpop.f32.mrb[55].mxu0  ;;  %v7092_v57 = vpack.c.bf16 %v3560_v25, %v3560_v25  ;;  %v3565_v19 = vpack.c.bf16 %v3519_v30, %v3519_v30 }
0x1a40   : > { %v3566_v24 = vpack.c.bf16 %v3521_v60, %v3521_v60 }
0x1a41   : > { %v3631_v33 = vand.u32 %v7092_v57, %v6437_v28 }
0x1a42   : > { %v3571_v26 = vsel %vm1073_vm3, %v3566_v24, 0 }
0x1a43   : > { %5561 = vmatpush3.bf16.xpose.msra.mxu1 %v3571_v26 }
0x1a44   : > { %5566 = vmatprep.subr.bf16.mxu1 %v6093_v43 }
0x1a4a   : > { %5563 = vmatmul.mubr.msk.bf16.vlgmr.msra.gmra.mrb[60].mxu1 %vm1073_vm3, %v3565_v19 }
0x1a4b   : > { %5567 = vmatpush3.bf16.msra.mxu1 %v3631_v33  ;;  %5568 = vmatprep.mubr.msk.bf16.mxu1 %vm6094_vm2, %v6093_v43 }
0x1a4c   : > { %5572 = vmatprep.subr.bf16.mxu1 %v6093_v43 }
0x1b1d   : > { %v3607_v34 = vpop.f32.mrb[60].mxu1 }
0x1b1e   : > { %v3613_v35 = vmul.f32 0.17677669, %v3607_v34  ;;  %v5564_v62 = vpop.f32.mrb[61].mxu1 }
0x1b1f   : > { %v3610_v23 = vpop.f32.mrb[62].mxu1 }
0x1b20   : > { %v5565_v36 = vpop.f32.mrb[63].mxu1  ;;  %v3614_v37 = vsel %vm1121_vm6, %v3613_v35, -inf }
0x1b21   : > { %3615 = vmax.xlane.f32.xlu0 %v3614_v37 }
0x1b37   : > { %3677 = vrot.lane.b32.xlu0 %v3566_v24, %s7460_s27 }
0x1b3b   : > { %3900 = vrot.lane.b32.xlu0 %v3566_v24, %s7458_s29 }
0x1bae   : > { %v3616_v38 = vpop.xlane.xlu0 %3615 }
0x1baf   : > { %v3617_v39 = vsub.f32 %v3613_v35, %v3616_v38 }
0x1bb1   : > { %v3618_v40 = vmul.f32 1.442695, %v3617_v39 }
0x1bb2   : > { %v3678_v46 = vpop.permute.xlu0 %3677 }
0x1bb3   : > { %6004 = vpow2.f32 %v3618_v40  ;;  %v3683_v52 = vsel %vm1073_vm3, %v3678_v46, 0 }
0x1bb6   : > { %v3901_v50 = vpop.permute.xlu0 %3900 }
0x1bb7   : > { %v3906_v54 = vsel %vm1073_vm3, %v3901_v50, 0 }
0x1bbd   : > { %v6005_v41 = vpop.eup %6004 }
0x1bbe   : > { %v3620_v42 = vsel %vm1121_vm6, %v6005_v41, 0.0 }
0x1bbf   : > { %3621 = vadd.xlane.f32.xlu1 %v3620_v42 }
0x1bd0   : > { %3674 = vrot.lane.b32.xlu1 %v3565_v19, %s7460_s27 }
0x1bd4   : > { %3789 = vrot.lane.b32.xlu1 %v3566_v24, %s7459_s20 }
0x1bd8   : > { %3787 = vrot.lane.b32.xlu1 %v3565_v19, %s7459_s20 }
0x1bdc   : > { %3898 = vrot.lane.b32.xlu1 %v3565_v19, %s7458_s29 }
0x1c4c   : > { %v3622_v44 = vpop.xlane.xlu1 %3621 }
0x1c4d   : > { %6006 = vrcp.f32 %v3622_v44 }
0x1c50   : > { %v3675_v45 = vpop.permute.xlu1 %3674 }
0x1c54   : > { %v3790_v47 = vpop.permute.xlu1 %3789 }
0x1c55   : > { %v3795_v29 = vsel %vm1073_vm3, %v3790_v47, 0 }
0x1c56   : > { %5585 = vmatpush3.bf16.xpose.msra.mxu0 %v3795_v29 }
0x1c57   : > { %v6007_v48 = vpop.eup %6006  ;;  %5596 = vmatprep.subr.bf16.mxu0 %v6093_v43 }
0x1c58   : > { %v3624_v49 = vmul.f32 %v6007_v48, %v6005_v41  ;;  %v3788_v53 = vpop.permute.xlu1 %3787 }
0x1c5a   : > { %v3625_v51 = vpack.c.bf16 %v3624_v49, %v3624_v49 }
0x1c5c   : > { %5569 = vmatmul.mubr.msk.bf16.vlgmr.msra.gmra.mrb[64].mxu1 %vm1135_vm7, %v3625_v51  ;;  %v3899_v55 = vpop.permute.xlu1 %3898 }
0x1c5d   : > { %5573 = vmatpush3.bf16.xpose.msra.mxu1 %v3683_v52  ;;  %5587 = vmatmul.mubr.msk.bf16.vlgmr.msra.gmra.mrb[56].mxu0 %vm1073_vm3, %v3788_v53  ;;  %v5898_v53 = vld [vmem:[%s7410_s8 + $0x80] sm:$0xff]  }
0x1c5e   : > { %5597 = vmatpush3.bf16.xpose.msra.mxu0 %v3906_v54  ;;  %5574 = vmatprep.mubr.msk.bf16.mxu1 %vm6094_vm2, %v6093_v43  ;;  %v5900_v54 = vld [vmem:[%s7410_s8 + $0x90] sm:$0xff]  }
0x1c5f   : > { %5598 = vmatprep.mubr.msk.bf16.mxu0 %vm6094_vm2, %v6093_v43  ;;  %5578 = vmatprep.subr.bf16.mxu1 %v6093_v43 }
0x1c60   : > { %5608 = vmatprep.subr.bf16.mxu0 %v6093_v43 }
0x1c64   : > { %5575 = vmatmul.mubr.msk.bf16.vlgmr.msra.gmra.mrb[68].mxu1 %vm1073_vm3, %v3675_v45 }
0x1c65   : > { %5599 = vmatmul.mubr.msk.bf16.vlgmr.msra.gmra.mrb[60].mxu0 %vm1073_vm3, %v3899_v55  ;;  %5580 = vmatprep.mubr.msk.bf16.mxu1 %vm6094_vm2, %v6093_v43  ;;  %v5902_v55 = vld [vmem:[%s7410_s8 + $0xa0] sm:$0xff]  }
0x1c66   : > { %5624 = vmatprep.mubr.msk.bf16.mxu0 %vm6094_vm2, %v6093_v43  ;;  %5609 = vmatpush3.bf16.msra.mxu0 %v5898_v53 }
0x1c67   : > { %5610 = vmatprep.subr.bf16.mxu0 %v6093_v43 }
0x1d2f   : > { %v7126_v56 = vpop.f32.mrb[64].mxu1 }
0x1d30   : > { %v5570_v58 = vpop.f32.mrb[65].mxu1  ;;  %v3831_v61 = vpop.f32.mrb[56].mxu0 }
0x1d31   : > { %v3837_v63 = vmul.f32 0.17677669, %v3831_v61  ;;  %v3670_v27 = vpop.f32.mrb[66].mxu1  ;;  %v5588_v31 = vpop.f32.mrb[57].mxu0  ;;  %v5903_v58 = vld [vmem:[%s7410_s8 + $0xa8] sm:$0xff]   ;;  %v5904_v61 = vld [vmem:[%s7410_s8 + $0xb0] sm:$0xff]  }
0x1d32   : > { %v5571_v0 = vpop.f32.mrb[67].mxu1  ;;  %v3834_v2 = vpop.f32.mrb[58].mxu0 }
0x1d33   : > { %v5589_v59 = vpop.f32.mrb[59].mxu0  ;;  %v3838_v3 = vsel %vm1121_vm6, %v3837_v63, -inf  ;;  %v5905_v2 = vld [vmem:[%s7410_s8 + $0xb8] sm:$0xff]  }
0x1d34   : > { %3839 = vmax.xlane.f32.xlu1 %v3838_v3 }
0x1d37   : > { %v3719_v4 = vpop.f32.mrb[68].mxu1 }
0x1d38   : > { %v3725_v6 = vmul.f32 0.17677669, %v3719_v4  ;;  %v5576_v7 = vpop.f32.mrb[69].mxu1  ;;  %v3942_v9 = vpop.f32.mrb[60].mxu0 }
0x1d39   : > { %v3722_v10 = vpop.f32.mrb[70].mxu1  ;;  %v5600_v11 = vpop.f32.mrb[61].mxu0  ;;  %v3948_v12 = vmul.f32 0.17677669, %v3942_v9 }
0x1d3a   : > { %v5577_v13 = vpop.f32.mrb[71].mxu1  ;;  %v3945_v14 = vpop.f32.mrb[62].mxu0  ;;  %v3726_v15 = vsel %vm1121_vm6, %v3725_v6, -inf }
0x1d3b   : > { %v5601_v16 = vpop.f32.mrb[63].mxu0  ;;  %3727 = vmax.xlane.f32.xlu0 %v3726_v15  ;;  %v3949_v60 = vsel %vm1121_vm6, %v3948_v12, -inf }
0x1d3f   : > { %3950 = vmax.xlane.f32.xlu0 %v3949_v60 }
0x1dc1   : > { %v3840_v17 = vpop.xlane.xlu1 %3839 }
0x1dc2   : > { %v3841_v18 = vsub.f32 %v3837_v63, %v3840_v17 }
0x1dc4   : > { %v3842_v20 = vmul.f32 1.442695, %v3841_v18  ;;  %v5079_v18 = vld [vmem:[%s7411_s9 + $0x2] ss:$0 sm:$0xff] }
0x1dc6   : > { %6008 = vpow2.f32 %v3842_v20 }
0x1dc8   : > { %v3728_v21 = vpop.xlane.xlu0 %3727 }
0x1dc9   : > { %v3729_v22 = vsub.f32 %v3725_v6, %v3728_v21 }
0x1dcb   : > { %v3730_v24 = vmul.f32 1.442695, %v3729_v22 }
0x1dcc   : > { %v3951_v25 = vpop.xlane.xlu0 %3950 }
0x1dcd   : > { %6010 = vpow2.f32 %v3730_v24  ;;  %v3952_v26 = vsub.f32 %v3948_v12, %v3951_v25 }
0x1dcf   : > { %v3953_v30 = vmul.f32 1.442695, %v3952_v26 }
0x1dd0   : > { %v6009_v19 = vpop.eup %6008 }
0x1dd1   : > { %6012 = vpow2.f32 %v3953_v30  ;;  %v3844_v33 = vsel %vm1121_vm6, %v6009_v19, 0.0  ;;  %v5906_v30 = vld [vmem:[%s7414_s12 + $0x100] ss:$8 sps:$4 sm:$0xff]  }
0x1dd2   : > { %3845 = vadd.xlane.f32.xlu0 %v3844_v33  ;;  %v5911_v33 = vld [vmem:[%s7414_s12 + $0x114] ss:$8 sps:$4 sm:$0xff]  }
0x1dd7   : > { %v6011_v34 = vpop.eup %6010 }
0x1dd8   : > { %v3732_v35 = vsel %vm1121_vm6, %v6011_v34, 0.0 }
0x1dd9   : > { %3733 = vadd.xlane.f32.xlu0 %v3732_v35  ;;  %v5912_v35 = vld [vmem:[%s7414_s12 + $0x120] ss:$8 sps:$4 sm:$0xff]  }
0x1ddb   : > { %v6013_v62 = vpop.eup %6012 }
0x1ddc   : > { %v3955_v23 = vsel %vm1121_vm6, %v6013_v62, 0.0 }
0x1ddd   : > { %3956 = vadd.xlane.f32.xlu1 %v3955_v23 }
0x1dee   : > { %3850 = vrot.lane.b32.xlu1 %v7092_v57, %s7459_s20 }
0x1def   : > { %3739 = vrot.lane.b32.xlu0 %v7092_v57, %s7460_s27 }
0x1df2   : > { %3961 = vrot.lane.b32.xlu1 %v7092_v57, %s7458_s29 }
0x1e5f   : > { %v3846_v36 = vpop.xlane.xlu0 %3845 }
0x1e66   : > { %v3734_v37 = vpop.xlane.xlu0 %3733 }
0x1e67   : > { %6014 = vrcp.f32 %v3734_v37 }
0x1e68   : > { %6016 = vrcp.f32 %v3846_v36 }
0x1e6a   : > { %v3740_v38 = vpop.permute.xlu0 %3739  ;;  %v3957_v40 = vpop.xlane.xlu1 %3956 }
0x1e6b   : > { %v3745_v39 = vand.u32 %v3740_v38, %v6437_v28  ;;  %6018 = vrcp.f32 %v3957_v40  ;;  %v5915_v40 = vld [vmem:[%s7414_s12 + $0x130] ss:$8 sps:$4 sm:$0xff]  }
0x1e6d   : > { %5579 = vmatpush3.bf16.msra.mxu1 %v3745_v39  ;;  %v5917_v39 = vld [vmem:[%s7414_s12 + $0x134] ss:$8 sps:$4 sm:$0xff]  }
0x1e6e   : > { %5590 = vmatprep.subr.bf16.mxu1 %v6093_v43  ;;  %v3851_v44 = vpop.permute.xlu1 %3850 }
0x1e6f   : > { %v3856_v47 = vand.u32 %v3851_v44, %v6437_v28  ;;  %v5923_v44 = vld [vmem:[%s7414_s12 + $0x154] ss:$8 sps:$4 sm:$0xff]  }
0x1e71   : > { %v6015_v41 = vpop.eup %6014 }
0x1e72   : > { %v3736_v42 = vmul.f32 %v6015_v41, %v6011_v34  ;;  %v6017_v46 = vpop.eup %6016  ;;  %v3962_v29 = vpop.permute.xlu1 %3961  ;;  %v5914_v34 = vld [vmem:[%s7414_s12 + $0x124] ss:$8 sps:$4 sm:$0xff]  }
0x1e73   : > { %v3848_v57 = vmul.f32 %v6017_v46, %v6009_v19  ;;  %v3967_v50 = vand.u32 %v3962_v29, %v6437_v28  ;;  %v5899_v28 = vld [vmem:[%s7410_s8 + $0x88] sm:$0xff]   ;;  %v5927_v29 = vld [vmem:[%s7414_s12 + $0x170] ss:$8 sps:$4 sm:$0xff]  }
0x1e74   : > { %v3737_v45 = vpack.c.bf16 %v3736_v42, %v3736_v42  ;;  %5611 = vmatpush3.bf16.msra.mxu0 %v5899_v28  ;;  %v5908_v19 = vld [vmem:[%s7414_s12 + $0x104] ss:$8 sps:$4 sm:$0xff]   ;;  %v5918_v42 = vld [vmem:[%s7414_s12 + $0x140] ss:$8 sps:$4 sm:$0xff]  }
0x1e75   : > { %v3849_v48 = vpack.c.bf16 %v3848_v57, %v3848_v57  ;;  %v6019_v49 = vpop.eup %6018  ;;  %5612 = vmatprep.subr.bf16.mxu0 %v6093_v43  ;;  %v5920_v41 = vld [vmem:[%s7414_s12 + $0x144] ss:$8 sps:$4 sm:$0xff]   ;;  %v5929_v57 = vld [vmem:[%s7414_s12 + $0x174] ss:$8 sps:$4 sm:$0xff]   ;;  %v5091_v28 = vld [vmem:[%s7413_s11 + $0x2] ss:$0 sm:$0xff] }
0x1e76   : > { %5581 = vmatmul.mubr.msk.bf16.vlgmr.msra.gmra.mrb[72].mxu1 %vm1135_vm7, %v3737_v45  ;;  %v3959_v51 = vmul.f32 %v6019_v49, %v6013_v62  ;;  %v5921_v45 = vld [vmem:[%s7414_s12 + $0x150] ss:$8 sps:$4 sm:$0xff]   ;;  %v5926_v46 = vld [vmem:[%s7414_s12 + $0x164] ss:$8 sps:$4 sm:$0xff]  }
0x1e77   : > { %5591 = vmatpush3.bf16.msra.mxu1 %v3856_v47  ;;  %5592 = vmatprep.mubr.msk.bf16.mxu1 %vm6094_vm2, %v6093_v43  ;;  %v5924_v47 = vld [vmem:[%s7414_s12 + $0x160] ss:$8 sps:$4 sm:$0xff]  }
0x1e78   : > { %5602 = vmatprep.subr.bf16.mxu1 %v6093_v43  ;;  %v3960_v52 = vpack.c.bf16 %v3959_v51, %v3959_v51  ;;  %5613 = vmatpush3.bf16.msra.mxu0 %v5900_v54 }
0x1e79   : > { %5614 = vmatprep.subr.bf16.mxu0 %v6093_v43 }
0x1e7e   : > { %5593 = vmatmul.mubr.msk.bf16.vlgmr.msra.gmra.mrb[76].mxu1 %vm1135_vm7, %v3849_v48 }
0x1e7f   : > { %5603 = vmatpush3.bf16.msra.mxu1 %v3967_v50  ;;  %5604 = vmatprep.mubr.msk.bf16.mxu1 %vm6094_vm2, %v6093_v43 }
0x1e80   : > { %4281 = vmatprep.subr.bf16.mxu1 %v5908_v19 }
0x1e86   : > { %5605 = vmatmul.mubr.msk.bf16.vlgmr.msra.gmra.mrb[80].mxu1 %vm1135_vm7, %v3960_v52  ;;  %v5090_v52 = vld [vmem:[%s7412_s10 + $0x2] ss:$0 sm:$0xff] }
0x1e87   : > { %4313 = vmatprep.mubr.bf16.mxu1 %v6092_v1  ;;  %v5901_v1 = vld [vmem:[%s7410_s8 + $0x98] sm:$0xff]   ;;  %4282 = vmatpush1.bf16.msra.mxu1 %v5906_v30 }
0x1e88   : > { %5615 = vmatpush3.bf16.msra.mxu0 %v5901_v1  ;;  %4283 = vmatprep.subr.bf16.mxu1 %v5911_v33 }
0x1e89   : > { %5616 = vmatprep.subr.bf16.mxu0 %v6093_v43 }
0x1e8c   : > { %5617 = vmatpush3.bf16.msra.mxu0 %v5902_v55 }
0x1e8d   : > { %5618 = vmatprep.subr.bf16.mxu0 %v6093_v43 }
0x1e90   : > { %5619 = vmatpush3.bf16.msra.mxu0 %v5903_v58  ;;  %v5930_v58 = vld [vmem:[%s7416_s14 + $0x140] sm:$0xff]  }
0x1e91   : > { %5620 = vmatprep.subr.bf16.mxu0 %v6093_v43 }
0x1e94   : > { %5621 = vmatpush3.bf16.msra.mxu0 %v5904_v61  ;;  %v5931_v61 = vld [vmem:[%s7416_s14 + $0x100] sm:$0xff]  }
0x1e95   : > { %5622 = vmatprep.subr.bf16.mxu0 %v6093_v43 }
0x1e98   : > { %5623 = vmatpush3.bf16.msra.mxu0 %v5905_v2  ;;  %v5936_v2 = vld [vmem:[%s7416_s14 + $0x158] sm:$0xff]  }
0x1e99   : > { %5333 = vmatprep.subr.bf16.mxu0 %v5930_v58  ;;  %v5950_v58 = vld [vmem:[%s7420_s18 + $0x20] sm:$0xff]  }
0x1f49   : > { %v3781_v63 = vpop.f32.mrb[72].mxu1 }
0x1f4a   : > { %4010 = vrot.lane.b32.xlu1 %v3781_v63, %s7458_s29  ;;  %v5582_v27 = vpop.f32.mrb[73].mxu1  ;;  %v5932_v63 = vld [vmem:[%s7416_s14 + $0x148] sm:$0xff]   ;;  %s6032_s29 = sshll.u32 %s6099_s28, 4  ;;  %s6033_s29 = int_to_ptr.vmem [resolvable:$false] %s6032_s29 }
0x1f4b   : > { %v3784_v31 = vpop.f32.mrb[74].mxu1  ;;  %v5933_v27 = vld [vmem:[%s7416_s14 + $0x108] sm:$0xff]   ;;  %s6034_s24 = scalar_lea.vmem %s6033_s29, 32 }
0x1f4c   : > { %v5583_v0 = vpop.f32.mrb[75].mxu1  ;;  %v5934_v31 = vld [vmem:[%s7416_s14 + $0x150] sm:$0xff]  }
0x1f4d   : > { %v5935_v0 = vld [vmem:[%s7416_s14 + $0x110] sm:$0xff]  }
0x1f51   : > { %v3892_v59 = vpop.f32.mrb[76].mxu1 }
0x1f52   : > { %4014 = vrot.lane.b32.xlu0 %v3892_v59, %s7459_s20  ;;  %v5594_v3 = vpop.f32.mrb[77].mxu1  ;;  %v5937_v59 = vld [vmem:[%s7416_s14 + $0x118] sm:$0xff]   ;;  %s5183_s20 = sshll.u32 %s6226_s2, 4 }
0x1f53   : > { %v3895_v4 = vpop.f32.mrb[78].mxu1  ;;  %v5938_v3 = vld [vmem:[%s7416_s14 + $0x160] sm:$0xff]   ;;  %s7360_s26 = scalar_lea.hbm %s7461_s1, %s5183_s20 }
0x1f54   : > { %v5595_v6 = vpop.f32.mrb[79].mxu1  ;;  %v5939_v4 = vld [vmem:[%s7416_s14 + $0x120] sm:$0xff]  }
0x1f55   : > { %v5940_v6 = vld [vmem:[%s7416_s14 + $0x168] sm:$0xff]  }
0x1f59   : > { %v4003_v7 = vpop.f32.mrb[80].mxu1 }
0x1f5a   : > { %4018 = vrot.lane.b32.xlu1 %v4003_v7, %s7460_s27  ;;  %v5606_v9 = vpop.f32.mrb[81].mxu1  ;;  %v5941_v7 = vld [vmem:[%s7416_s14 + $0x128] sm:$0xff]   ;;  %s621_s27 = scalar_lea.vmem [#allocation2], %s620_s3 }
0x1f5b   : > { %v4006_v10 = vpop.f32.mrb[82].mxu1  ;;  %v5942_v9 = vld [vmem:[%s7416_s14 + $0x170] sm:$0xff]   ;;  %s4658_s21 = sshll.u32 %s621_s27, 4  ;;  %s7362_s21 = int_to_ptr.vmem [resolvable:$true] %s4658_s21 }
0x1f5c   : > { %v5607_v11 = vpop.f32.mrb[83].mxu1  ;;  %v5943_v10 = vld [vmem:[%s7416_s14 + $0x130] sm:$0xff]   ;;  %s6028_s2 = scalar_lea.vmem %s7362_s21, 16  ;;  %p6035_p0 = scmp.lt.s32.totalorder %s7362_s21, %s6033_s29 }
0x1f5d   : > { %v5944_v11 = vld [vmem:[%s7416_s14 + $0x178] sm:$0xff]   ;;  %p6029_p11 = scmp.ne.s32.totalorder %s7362_s21, %s6028_s2  ;;  %p6036_p1 = scmp.lt.s32.totalorder %s6034_s24, %s6028_s2 }
0x1f5f   : > { %p6030_p12 = pnand %p6029_p11, %p6243_p5  ;;  %p6037_p2 = por %p6036_p1, %p6035_p0 }
0x1f61   : > { %p6031_p13 = pneg %p6030_p12 }
0x1f63   : > { %p6038_p3 = pnand %p6037_p2, %p6031_p13 }
0x1fbc   : > { %v4011_v12 = vpop.permute.xlu1 %4010 }
0x1fbd   : > { %v4021_v14 = vsel %vm1073_vm3, %v7126_v56, %v4011_v12  ;;  %v5945_v12 = vld [vmem:[%s7416_s14 + $0x138] sm:$0xff]  }
0x1fc4   : > { %v4015_v13 = vpop.permute.xlu0 %4014 }
0x1fc5   : > { %v4022_v15 = vsel %vm735_vm0, %v4021_v14, %v4015_v13  ;;  %v5108_v13 = vld [vmem:[%s7415_s13 + $0x4] sm:$0x3] }
0x1fc6   : > { %v4194_v14 = vrot.slane %v5108_v13, %v6424_v8 }
0x1fcc   : > { %v4019_v16 = vpop.permute.xlu1 %4018 }
0x1fcd   : > { %v4023_v60 = vsel %vm1536_vm8, %v4022_v15, %v4019_v16  ;;  %v4198_v15 = vrot.slane %v5108_v13, %v6418_v5 }
0x1fce   : > { %v4041_v17 = vpack.c.bf16 %v4023_v60, %v4023_v60 }
0x1fd0   : > { %5625 = vmatmul.mubr.bf16.vlgmr.msra.gmra.mrb[64].mxu0 %v4041_v17 }
0x1fd1   : > { %5334 = vmatpush3.bf16.msra.mxu0 %v5931_v61  ;;  %v5951_v61 = vld [vmem:[%s7420_s18 + $0x28] sm:$0xff]  }
0x1fd2   : > { %5335 = vmatprep.subr.bf16.mxu0 %v5932_v63  ;;  %v5952_v63 = vld [vmem:[%s7420_s18 + $0x30] sm:$0xff]  }
0x1fd5   : > { %5336 = vmatpush3.bf16.msra.mxu0 %v5933_v27  ;;  %v5953_v27 = vld [vmem:[%s7420_s18 + $0x38] sm:$0xff]  }
0x1fd6   : > { %5337 = vmatprep.subr.bf16.mxu0 %v5934_v31 }
0x1fd9   : > { %5338 = vmatpush3.bf16.msra.mxu0 %v5935_v0 }
0x1fda   : > { %5339 = vmatprep.subr.bf16.mxu0 %v5936_v2 }
0x1fdd   : > { %5340 = vmatpush3.bf16.msra.mxu0 %v5937_v59 }
0x1fde   : > { %5341 = vmatprep.subr.bf16.mxu0 %v5938_v3  ;;  %v4520_v3 = vld [vmem:[%s7418_s16] sm:$0x1] }
0x1fe1   : > { %5342 = vmatpush3.bf16.msra.mxu0 %v5939_v4 }
0x1fe2   : > { %5343 = vmatprep.subr.bf16.mxu0 %v5940_v6  ;;  %v4521_v6 = vld [vmem:[%s7419_s17] sm:$0x1] }
0x1fe5   : > { %5344 = vmatpush3.bf16.msra.mxu0 %v5941_v7 }
0x1fe6   : > { %5345 = vmatprep.subr.bf16.mxu0 %v5942_v9 }
0x1fe9   : > { %5346 = vmatpush3.bf16.msra.mxu0 %v5943_v10 }
0x1fea   : > { %5347 = vmatprep.subr.bf16.mxu0 %v5944_v11 }
0x1fed   : > { %5348 = vmatpush3.bf16.msra.mxu0 %v5945_v12 }
0x20a3   : > { %v4132_v20 = vpop.f32.mrb[64].mxu0 }
0x20a4   : > { %v4133_v21 = vadd.f32 %v5079_v18, %v4132_v20  ;;  %v5626_v22 = vpop.f32.mrb[65].mxu0 }
0x20a5   : > { %v4135_v24 = vpop.f32.mrb[66].mxu0 }
0x20a6   : > { %v7195_v25 = vadd.f32 %v4133_v21, %v6987_v32  ;;  %v5627_v26 = vpop.f32.mrb[67].mxu0  ;;  %v5909_v32 = vld [vmem:[%s7414_s12 + $0x110] ss:$8 sps:$4 sm:$0xff]  }
0x20a7   : > { %4284 = vmatpush1.bf16.msra.mxu1 %v5909_v32 }
0x20a8   : > { %v4143_v56 = vsel %vm783_vm1, %v7195_v25, 0.0  ;;  %4285 = vmatprep.subr.bf16.mxu1 %v5914_v34 }
0x20a9   : > { %4144 = vadd.xlane.f32.xlu0 %v4143_v56 }
0x20ab   : > { %4286 = vmatpush1.bf16.msra.mxu1 %v5912_v35 }
0x20ac   : > { %4287 = vmatprep.subr.bf16.mxu1 %v5917_v39 }
0x20af   : > { %4288 = vmatpush1.bf16.msra.mxu1 %v5915_v40 }
0x20b0   : > { %4289 = vmatprep.subr.bf16.mxu1 %v5920_v41 }
0x20b3   : > { %4290 = vmatpush1.bf16.msra.mxu1 %v5918_v42 }
0x20b4   : > { %4291 = vmatprep.subr.bf16.mxu1 %v5923_v44  ;;  %v5158_v44 = vld [vmem:[%s7417_s15 + $0x2] ss:$0 sm:$0xff] }
0x20b7   : > { %4292 = vmatpush1.bf16.msra.mxu1 %v5921_v45 }
0x20b8   : > { %4293 = vmatprep.subr.bf16.mxu1 %v5926_v46 }
0x20bb   : > { %4294 = vmatpush1.bf16.msra.mxu1 %v5924_v47 }
0x20bc   : > { %4295 = vmatprep.subr.bf16.mxu1 %v5929_v57 }
0x20bf   : > { %4296 = vmatpush1.bf16.msra.mxu1 %v5927_v29 }
0x20c0   : > { %5628 = vmatprep.subr.bf16.mxu1 %v6093_v43 }
0x2136   : > { %v4145_v62 = vpop.xlane.xlu0 %4144 }
0x2137   : > { %v4146_v23 = vmul.f32 0.0078125, %v4145_v62 }
0x2139   : > { %v4147_v36 = vsub.f32 %v7195_v25, %v4146_v23 }
0x213b   : > { %v4148_v37 = vmul.f32 %v4147_v36, %v4147_v36 }
0x213d   : > { %v4149_v38 = vsel %vm783_vm1, %v4148_v37, 0.0 }
0x213e   : > { %4150 = vadd.xlane.f32.xlu1 %v4149_v38 }
0x21cb   : > { %v4151_v48 = vpop.xlane.xlu1 %4150 }
0x21cc   : > { %v4152_v49 = vmul.f32 0.0078125, %v4151_v48 }
0x21ce   : > { %v4153_v50 = vadd.f32 1e-05, %v4152_v49 }
0x21d0   : > { %6020 = vrsqrt.f32 %v4153_v50  ;;  %v5946_v50 = vld [vmem:[%s7420_s18] sm:$0xff]  }
0x21da   : > { %v6021_v51 = vpop.eup %6020 }
0x21db   : > { %v4155_v53 = vmul.f32 %v6021_v51, %v4147_v36  ;;  %v5947_v51 = vld [vmem:[%s7420_s18 + $0x8] sm:$0xff]  }
0x21dd   : > { %v4162_v54 = vmul.f32 %v5090_v52, %v4155_v53 }
0x21df   : > { %v4169_v1 = vadd.f32 %v5091_v28, %v4162_v54 }
0x21e1   : > { %v4187_v55 = vpack.c.bf16 %v4169_v1, %v4169_v1  ;;  %v5948_v1 = vld [vmem:[%s7420_s18 + $0x10] sm:$0xff]  }
0x21e3   : > { %4314 = vmatmul.mubr.bf16.vlgmr.msra.gmra.mrb[84].mxu1 %v4187_v55  ;;  %v5949_v55 = vld [vmem:[%s7420_s18 + $0x18] sm:$0xff]  }
0x21e4   : > { %5644 = vmatprep.mubr.msk.bf16.mxu1 %vm6094_vm2, %v6093_v43  ;;  %5629 = vmatpush3.bf16.msra.mxu1 %v5946_v50 }
0x21e5   : > { %5630 = vmatprep.subr.bf16.mxu1 %v6093_v43 }
0x21e8   : > { %5631 = vmatpush3.bf16.msra.mxu1 %v5947_v51 }
0x21e9   : > { %5632 = vmatprep.subr.bf16.mxu1 %v6093_v43 }
0x21ec   : > { %5633 = vmatpush3.bf16.msra.mxu1 %v5948_v1 }
0x21ed   : > { %5634 = vmatprep.subr.bf16.mxu1 %v6093_v43 }
0x21f0   : > { %5635 = vmatpush3.bf16.msra.mxu1 %v5949_v55 }
0x21f1   : > { %5636 = vmatprep.subr.bf16.mxu1 %v6093_v43 }
0x21f4   : > { %5637 = vmatpush3.bf16.msra.mxu1 %v5950_v58 }
0x21f5   : > { %5638 = vmatprep.subr.bf16.mxu1 %v6093_v43 }
0x21f8   : > { %5639 = vmatpush3.bf16.msra.mxu1 %v5951_v61 }
0x21f9   : > { %5640 = vmatprep.subr.bf16.mxu1 %v6093_v43 }
0x21fc   : > { %5641 = vmatpush3.bf16.msra.mxu1 %v5952_v63 }
0x21fd   : > { %5642 = vmatprep.subr.bf16.mxu1 %v6093_v43  ;;  %v4555_v43 = vld [vmem:[%s7421_s19] sm:$0x1] }
0x2200   : > { %5643 = vmatpush3.bf16.msra.mxu1 %v5953_v27 }
0x22b6   : > { %v4315_v16 = vpop.f32.mrb[84].mxu1 }
0x22b7   : > { %v4316_v60 = vadd.f32 %v4315_v16, %v4194_v14  ;;  %v4317_v17 = vpop.f32.mrb[85].mxu1 }
0x22b8   : > { %v4318_v18 = vadd.f32 %v4317_v17, %v4198_v15  ;;  %v4319_v20 = vpop.f32.mrb[86].mxu1 }
0x22b9   : > { %v4324_v21 = vmul.f32 0.044715, %v4316_v60  ;;  %v4320_v22 = vpop.f32.mrb[87].mxu1  ;;  %v4322_v62 = vmul.f32 0.5, %v4316_v60 }
0x22ba   : > { %v4325_v24 = vmul.f32 0.044715, %v4318_v18  ;;  %v4323_v36 = vmul.f32 0.5, %v4318_v18 }
0x22bb   : > { %v4326_v26 = vmul.f32 %v4324_v21, %v4316_v60 }
0x22bc   : > { %v4327_v56 = vmul.f32 %v4325_v24, %v4318_v18 }
0x22bd   : > { %v4328_v30 = vmul.f32 %v4326_v26, %v4316_v60 }
0x22be   : > { %v4329_v19 = vmul.f32 %v4327_v56, %v4318_v18 }
0x22bf   : > { %v4330_v33 = vadd.f32 %v4328_v30, %v4316_v60 }
0x22c0   : > { %v4331_v32 = vadd.f32 %v4329_v19, %v4318_v18 }
0x22c1   : > { %v4332_v34 = vmul.f32 0.7978846, %v4330_v33 }
0x22c2   : > { %v4333_v35 = vmul.f32 0.7978846, %v4331_v32 }
0x22c3   : > { %6022 = vtanh.f32 %v4332_v34 }
0x22c4   : > { %6024 = vtanh.f32 %v4333_v35 }
0x22cd   : > { %v6023_v8 = vpop.eup %6022 }
0x22ce   : > { %v6025_v5 = vpop.eup %6024  ;;  %v4336_v23 = vadd.f32 1.0, %v6023_v8 }
0x22cf   : > { %v4337_v37 = vadd.f32 1.0, %v6025_v5 }
0x22d0   : > { %v4338_v38 = vmul.f32 %v4336_v23, %v4322_v62 }
0x22d1   : > { %v4339_v39 = vmul.f32 %v4337_v37, %v4323_v36 }
0x22d2   : > { %v4373_v41 = vpack.c.bf16 %v4338_v38, %v4338_v38 }
0x22d3   : > { %v4374_v40 = vpack.c.bf16 %v4339_v39, %v4339_v39 }
0x22d5   : > { %4511 = vmatprep.mubr.bf16.mxu0 %v4374_v40 }
0x22d6   : > { %4512 = vmatmul.mubr.bf16.vlgmr.msra.gmra.mrb[68].mxu0 %v4373_v41 }
0x23a9   : > { %v5349_v42 = vpop.f32.mrb[68].mxu0 }
0x23aa   : > { %v5350_v45 = vpop.f32.mrb[69].mxu0 }
0x23ab   : > { %v5351_v46 = vadd.f32 %v5350_v45, %v5349_v42  ;;  %v5352_v47 = vpop.f32.mrb[70].mxu0 }
0x23ac   : > { %v5353_v57 = vpop.f32.mrb[71].mxu0 }
0x23ad   : > { %v4514_v29 = vadd.f32 %v5351_v46, %v5158_v44 }
0x23af   : > { %v4519_v48 = vadd.f32 %v4514_v29, %v7195_v25 }
0x23b1   : > { %v4523_v49 = vsel %vm4522_vm9, %v4519_v48, 0.0 }
0x23b2   : > { %4524 = vadd.xlane.f32.xlu0 %v4523_v49 }
0x243f   : > { %v4525_v52 = vpop.xlane.xlu0 %4524 }
0x2440   : > { %v4526_v53 = vmul.f32 0.0078125, %v4525_v52 }
0x2442   : > { %v4527_v28 = vsub.f32 %v4519_v48, %v4526_v53 }
0x2444   : > { %v4528_v25 = vmul.f32 %v4527_v28, %v4527_v28 }
0x2446   : > { %v4529_v54 = vsel %vm4522_vm9, %v4528_v25, 0.0 }
0x2447   : > { %4530 = vadd.xlane.f32.xlu0 %v4529_v54 }
0x24d4   : > { %v4531_v31 = vpop.xlane.xlu0 %4530 }
0x24d5   : > { %v4532_v0 = vmul.f32 0.0078125, %v4531_v31 }
0x24d7   : > { %v4533_v2 = vadd.f32 1e-05, %v4532_v0 }
0x24d9   : > { %6026 = vrsqrt.f32 %v4533_v2 }
0x24e3   : > { %v6027_v59 = vpop.eup %6026 }
0x24e4   : > { %v4535_v4 = vmul.f32 %v6027_v59, %v4527_v28 }
0x24e6   : > { %v4536_v7 = vmul.f32 %v4535_v4, %v4520_v3 }
0x24e8   : > { %v4537_v9 = vadd.f32 %v4536_v7, %v4521_v6 }
0x24ea   : > { %v4554_v10 = vpack.c.bf16 %v4537_v9, %v4537_v9 }
0x24ec   : > { %5645 = vmatmul.mubr.bf16.vlgmr.msra.gmra.mrb[88].mxu1 %v4554_v10 }
0x25bf   : > { %v4638_v11 = vpop.f32.mrb[88].mxu1 }
0x25c0   : > { %v4639_v12 = vadd.f32 %v4638_v11, %v4555_v43  ;;  %v5646_v13 = vpop.f32.mrb[89].mxu1 }
0x25c1   : > { %v4641_v14 = vpop.f32.mrb[90].mxu1 }
0x25c2   : > { %4644 = vst [vmem:[%s621_s27] sm:$0x1] %v4639_v12  ;;  %v5647_v15 = vpop.f32.mrb[91].mxu1 }
0x25c3   : > { %6041 = shalt.err (!%p6038_p3)
}
0x25c4   : > { %s6042_s3 = scalar_lea.hbm %s7360_s26, 16  ;;  %s6046_s0 = scalar_lea.hbm %s7462_s25, 32 }
0x25c5   : > { %p6043_p4 = scmp.ne.s32.totalorder %s7360_s26, %s6042_s3  ;;  %p6047_p9 = scmp.lt.u32.totalorder %s7360_s26, %s7462_s25 }
0x25c6   : > { %p6048_p10 = scmp.lt.u32.totalorder %s6046_s0, %s6042_s3  ;;  %p6050_p12 = scmp.lt.u32.totalorder %s6042_s3, %s7360_s26 }
0x25c7   : > { %p6044_p7 = pnand %p6043_p4, %p6243_p5 }
0x25c8   : > { %p6049_p11 = por %p6048_p10, %p6047_p9 }
0x25c9   : > { %p6045_p8 = pneg %p6044_p7 }
0x25ca   : > { %p6051_p13 = por %p6050_p12, %p6049_p11 }
0x25cc   : > { %p6052_p0 = pnand %p6051_p13, %p6045_p8 }
0x25ce   : > { %6055 = shalt.err (!%p6052_p0)
}
0x25cf   : > { %5648 = dma.vmem_to_hbm [thread:$0]  (%p6243_p5), %s7362_s21, 16, %s7360_s26, %s4646_s23  }
0x25d0 PF: > { %s7463_s2 = sld [smem:[#allocation7_spill]]  ;;  %s7464_s29 = sld [smem:[#allocation5_spill]] }
0x25d6   : > { %p5654_p1 = scmp.ge.s32.totalorder %s7463_s2, 2  ;;  %s4670_s20 = sand.u32 1, %s7464_s29  }
0x25d7   : > { %s4671_s27 = scalar_lea.sflag [#allocation3], %s4670_s20 }
0x25d8   : > { %p5651_p2 = pnand %p5654_p1, %p6247_p6 }
0x25da   : > { %6073 = dma.done.wait (!%p5651_p2), %s4671_s27, 16  }
0x25db   : > { %6075 = vsyncadd (!%p5651_p2), %s4671_s27, 4294967280  ;;  %s7466_s24 = sld [smem:[#allocation8_spill]]  ;;  %s7467_s3 = sld [smem:[#allocation6_spill]] }
0x25dc   : > { %s7468_s23 = sld [smem:[#allocation9_spill]]  ;;  %s7469_s1 = smov %s6082_s22 }
0x25e1   : > { %p30_p3 = scmp.ge.s32.totalorder %s7466_s24, 4   ;;  %s7470_s22 = smov %s7467_s3 }
0x25e3   :  { %32 = sbr.rel (!%p30_p3) target bundleno = 10 (0xa), region = 159 }
0x25ea   :  { %4675 = vsyncpa [#allocation3], 1 }
0x25eb   :  { %4677 = vsyncpa [#allocation3 + $0x1], 1 }

</bundles_post_ra>
